<compile_context>
chip_gen: v5e
topology: v5e:2x2
jax: 0.10.0
libtpu: 0.0.40
codegen_flags: <defaults>
</compile_context>

<pallas_src>
import math

import jax
import jax.numpy as jnp
from jax.experimental import pallas as pl
from jax.experimental.pallas import tpu as pltpu

DIM_EMB = 256
D = DIM_EMB // 16            # 16 : model width inside the block
N_HEAD = 2
HEAD_DIM = D // N_HEAD       # 8
DIM_FF = 2048                # nn.TransformerEncoderLayer default dim_feedforward
N_LAYERS = 2
LN_EPS = 1e-5                # PyTorch LayerNorm / layer_norm_eps default
WEIGHT_DTYPE = jnp.bfloat16  # storage dtype for weight matrices (f32 accumulation)


def _erf(x):
    # Abramowitz & Stegun 7.1.26, max abs error ~1.5e-7 (~fp32 resolution),
    # built only from exp/abs/where so it lowers cleanly in Mosaic.
    # TODO(synk): switch to jax.lax.erf once its Mosaic lowering is guaranteed.
    p = 0.3275911
    a1, a2, a3, a4, a5 = (0.254829592, -0.284496736, 1.421413741,
                          -1.453152027, 1.061405429)
    sign = jnp.where(x < 0.0, -1.0, 1.0)
    z = jnp.abs(x)
    t = 1.0 / (1.0 + p * z)
    poly = ((((a5 * t + a4) * t + a3) * t + a2) * t + a1) * t
    return sign * (1.0 - poly * jnp.exp(-z * z))


def _gelu_exact(x):
    # nn.GELU() default = erf-based GELU (NOT the tanh approximation).
    return 0.5 * x * (1.0 + _erf(x * (1.0 / math.sqrt(2.0))))


def _layer_norm(x, gamma, beta):
    mu = jnp.mean(x, axis=-1, keepdims=True)
    var = jnp.mean(jnp.square(x - mu), axis=-1, keepdims=True)
    return (x - mu) * jax.lax.rsqrt(var + LN_EPS) * gamma + beta


def _softmax(x):
    m = jnp.max(x, axis=-1, keepdims=True)
    e = jnp.exp(x - m)
    # approx reciprocal rides the EUP slot; softmax is on the serial critical
    # path between tiny matmuls.
    return e * pl.reciprocal(jnp.sum(e, axis=-1, keepdims=True), approx=True)


def _block_kernel(x_ref, w_in_ref, vec_ref, w_qkv_ref, b_qkv_ref, w_o_ref,
                  w_ff1_ref, b_ff1_ref, w_ff2_ref, w_bil_ref, tile_ref,
                  gsum_ref, out_ref):
    S, P, _ = x_ref.shape
    bf16 = jnp.bfloat16
    f32 = jnp.float32

    # Packed (16, D) block of every 16-wide bias / LayerNorm parameter.
    vec = vec_ref[...]

    def row(i):                       # (1, D) broadcastable row, static slice
        return vec[i:i + 1, :]

    # ---- nn.Linear(256, 16): batch folded into M, p-major row order --------
    xin = x_ref[...]                                               # (S, P, E)
    xcat = jnp.concatenate([xin[:, p, :] for p in range(P)], axis=0)  # (P*S, E)
    x = jnp.dot(xcat.astype(bf16), w_in_ref[...],
                preferred_element_type=f32) + row(0)               # (P*S, D)
    x = _layer_norm(x, row(1), row(2))                             # nn.LayerNorm(16)

    # ---- nn.TransformerEncoder: 2 post-norm layers (eval: dropout = id) ----
    h = x
    for l in range(N_LAYERS):
        base = 3 + 6 * l

        # Fused QKV projection (batch in M). 1/sqrt(head_dim) is pre-folded
        # into the Q columns of w_qkv / b_qkv at init.
        qkv = jnp.dot(h.astype(bf16), w_qkv_ref[l],
                      preferred_element_type=f32) + b_qkv_ref[l]   # (P*S, 3D)

        # Softmax attention core: P independent unrolled chains (per item),
        # only this part is sequence-coupled.  Tiny f32 dots, f32 softmax.
        ctxs = []
        for p in range(P):
            qkv_p = qkv[p * S:(p + 1) * S, :]       # aligned (S, 3D) row slice
            heads = []
            for hh in range(N_HEAD):
                q = qkv_p[:, hh * HEAD_DIM:(hh + 1) * HEAD_DIM]
                k = qkv_p[:, D + hh * HEAD_DIM:D + (hh + 1) * HEAD_DIM]
                v = qkv_p[:, 2 * D + hh * HEAD_DIM:2 * D + (hh + 1) * HEAD_DIM]
                s = jax.lax.dot_general(q, k, (((1,), (1,)), ((), ())),
                                        preferred_element_type=f32)   # (S, S)
                heads.append(jnp.dot(_softmax(s), v,
                                     preferred_element_type=f32))     # (S, Hd)
            ctxs.append(jnp.concatenate(heads, axis=-1))              # (S, D)
        ctx = jnp.concatenate(ctxs, axis=0)                           # (P*S, D)

        attn = jnp.dot(ctx.astype(bf16), w_o_ref[l],
                       preferred_element_type=f32) + row(base + 0)
        h = _layer_norm(h + attn, row(base + 1), row(base + 2))

        # feed-forward block (ReLU; dropout = identity in eval), batch in M.
        f = jnp.dot(h.astype(bf16), w_ff1_ref[l],
                    preferred_element_type=f32) + b_ff1_ref[l]        # (P*S, FF)
        f = jnp.maximum(f, 0.0)
        f = jnp.dot(f.astype(bf16), w_ff2_ref[l],
                    preferred_element_type=f32) + row(base + 3)
        h = _layer_norm(h + f, row(base + 4), row(base + 5))

    # ---- bilinear(x0 + dropout(x0), x): eval dropout -> first arg = 2*x0 ---
    # y[n,k] = b[k] + sum_ij 2*x0[n,i] W[k,i,j] x[n,j]
    #   m    = x0 @ W_flat   with W_flat[i, k*D+j] = 2*W[k,i,j]   (factor 2 folded)
    #   c_t  = x  @ T        with T[j, k*D+j'] = (j == j')        (lane replication on MXU)
    #   y    = (m * c_t) @ gsum   with gsum[r, k] = (r // D == k) (group sum on MXU)
    m = jnp.dot(h.astype(bf16), w_bil_ref[...],
                preferred_element_type=f32)                           # (P*S, D*D)
    c_t = jnp.dot(x.astype(bf16), tile_ref[...],
                  preferred_element_type=f32)                         # (P*S, D*D)
    prod = (m * c_t).astype(bf16)
    y = jnp.dot(prod, gsum_ref[...],
                preferred_element_type=f32) + row(3 + 6 * N_LAYERS)   # (P*S, D)

    # ---- nn.GELU() (exact, erf-based) --------------------------------------
    y = _gelu_exact(y)

    # un-fold p-major rows back into the (S, P, D) output block
    for p in range(P):
        out_ref[:, p:p + 1, :] = y[p * S:(p + 1) * S, :][:, None, :]


def init_params(key):
    """Deterministic synthetic parameters; shapes mirror the PyTorch module.

    Pure layout glue done once at parameter construction:
      * every weight stored in plain (K, N) MXU layout (torch weight^T) in bf16,
      * attention in-proj packed as a single (D, 3D) Wqkv per layer with the
        1/sqrt(head_dim) scale folded into its Q columns (and b_q),
      * all (1,16) biases / LayerNorm params packed into one (16, D) block,
      * bilinear weight flattened to (D, D*D) with the eval-mode factor 2
        folded in, plus constant 0/1 'tile' and group-sum matrices.
    A loader for real PyTorch checkpoints must reproduce these transposes /
    foldings exactly.
    """
    keys = iter(jax.random.split(key, 64))

    def nrm(shape, scale=0.02):
        return scale * jax.random.normal(next(keys), shape, jnp.float32)

    w_in = nrm((DIM_EMB, D))                              # linear.weight^T : (K, N)

    vec_rows = [nrm((D,)),                                # 0: linear bias
                1.0 + nrm((D,), 0.1), nrm((D,), 0.1)]     # 1,2: layer_norm gamma, beta

    # scale applied to the Q third of the fused in-proj (weights AND bias)
    qkv_scale = jnp.concatenate(
        [jnp.full((D,), 1.0 / math.sqrt(HEAD_DIM), jnp.float32),
         jnp.ones((2 * D,), jnp.float32)])[None, :]

    w_qkv, b_qkv, w_o, w_ff1, b_ff1, w_ff2 = [], [], [], [], [], []
    for _ in range(N_LAYERS):
        w_qkv.append(nrm((D, 3 * D)) * qkv_scale)         # in_proj_weight^T, Q pre-scaled
        b_qkv.append(nrm((1, 3 * D)) * qkv_scale)         # in_proj_bias, Q pre-scaled
        w_o.append(nrm((D, D)))                           # out_proj.weight^T
        vec_rows += [nrm((D,)),                           # out_proj bias
                     1.0 + nrm((D,), 0.1), nrm((D,), 0.1),  # norm1 gamma, beta
                     nrm((D,)),                           # linear2 bias
                     1.0 + nrm((D,), 0.1), nrm((D,), 0.1)]  # norm2 gamma, beta
        w_ff1.append(nrm((D, DIM_FF)))                    # linear1.weight^T : (K, N)
        b_ff1.append(nrm((1, DIM_FF)))                    # linear1 bias
        w_ff2.append(nrm((DIM_FF, D)))                    # linear2.weight^T : (K, N)
    vec_rows.append(nrm((D,)))                            # last: bilinear bias

    w_bil = nrm((D, D, D))                                # bilinear.weight (out, in1, in2)
    # W_flat[i, k*D + j] = 2 * W[k, i, j]   (eval-mode "x0 + dropout(x0)" = 2*x0 folded)
    w_bil_flat = 2.0 * jnp.transpose(w_bil, (1, 0, 2)).reshape(D, D * D)

    # T[j, k*D + j'] = (j == j')  -- lane-replication of the second bilinear arg
    tile = jnp.tile(jnp.eye(D, dtype=jnp.float32), (1, D))
    # gsum[r, k] = (r // D == k) -- group-sum over j, stored (K, N)
    gsum = (jnp.arange(D * D)[:, None] // D
            == jnp.arange(D)[None, :]).astype(jnp.float32)

    wd = WEIGHT_DTYPE
    return dict(
        w_in=w_in.astype(wd),                             # (256, 16)
        vec16=jnp.stack(vec_rows),                        # (16, 16) f32
        w_qkv=jnp.stack(w_qkv).astype(wd),                # (L, 16, 48)
        b_qkv=jnp.stack(b_qkv),                           # (L, 1, 48) f32
        w_o=jnp.stack(w_o).astype(wd),                    # (L, 16, 16)
        w_ff1=jnp.stack(w_ff1).astype(wd),                # (L, 16, 2048)
        b_ff1=jnp.stack(b_ff1),                           # (L, 1, 2048) f32
        w_ff2=jnp.stack(w_ff2).astype(wd),                # (L, 2048, 16)
        w_bil=w_bil_flat.astype(wd),                      # (16, 256)
        tile=tile.astype(wd),                             # (16, 256)
        gsum=gsum.astype(wd),                             # (256, 16)
    )


_PARAM_ORDER = ("w_in", "vec16", "w_qkv", "b_qkv", "w_o",
                "w_ff1", "b_ff1", "w_ff2", "w_bil", "tile", "gsum")


def linear_weight_block(x, params, *, batch_per_step=None):
    """x: (seq, batch, DIM_EMB) float32 -> (seq, batch, D) float32 (eval mode)."""
    S, B, E = x.shape
    assert E == DIM_EMB
    assert S % 8 == 0, "seq length must be a multiple of 8 (f32 sublane tiling)"

    if batch_per_step is None:
        # Fold the whole (small) batch into one grid step so the P independent
        # per-item chains interleave inside the kernel; batches of >8 tile in
        # groups of 8 to respect the (8, 128) sublane rule on the blocked dim.
        # TODO(synk): on v7x prefer >=2 grid steps (e.g. batch_per_step=B//2
        # for even B) so both TensorCores stay busy.
        batch_per_step = B if (B <= 8 or B % 8) else 8
    P = batch_per_step
    assert B % P == 0, "batch_per_step must divide batch"

    def const_spec(arr):                                  # resident weight block
        zeros = (0,) * arr.ndim
        return pl.BlockSpec(arr.shape, lambda b, _z=zeros: _z)

    ordered = [params[k] for k in _PARAM_ORDER]
    # batch blocked on its natural middle dim -> no wrapper transposes
    in_specs = [pl.BlockSpec((S, P, E), lambda b: (0, b, 0))]
    in_specs += [const_spec(p) for p in ordered]
    out_spec = pl.BlockSpec((S, P, D), lambda b: (0, b, 0))

    return pl.pallas_call(
        _block_kernel,
        grid=(B // P,),
        in_specs=in_specs,
        out_specs=out_spec,
        out_shape=jax.ShapeDtypeStruct((S, B, D), jnp.float32),
        compiler_params=pltpu.CompilerParams(
            dimension_semantics=("parallel",)),           # dual-TC sharding on v7x
    )(x, *ordered)


if __name__ == "__main__":
    SEQ, BATCH = 8, 2
    key = jax.random.PRNGKey(0)
    kx, kp = jax.random.split(key)
    x = jax.random.normal(kx, (SEQ, BATCH, DIM_EMB), dtype=jnp.float32)
    params = init_params(kp)

    y = jax.jit(linear_weight_block)(x, params)
    y = jax.block_until_ready(y)

    assert y.shape == (SEQ, BATCH, D), y.shape
    assert bool(jnp.all(jnp.isfinite(y)))
    print("KERNEL_OK")
</pallas_src>

<mosaic_0001>
module attributes {stable_mosaic.version = 11 : i64} {
  func.func @_block_kernel(%arg0: i32, %arg1: memref<8x2x256xf32, #tpu.memory_space<vmem>>, %arg2: memref<256x16xbf16, #tpu.memory_space<vmem>>, %arg3: memref<16x16xf32, #tpu.memory_space<vmem>>, %arg4: memref<2x16x48xbf16, #tpu.memory_space<vmem>>, %arg5: memref<2x1x48xf32, #tpu.memory_space<vmem>>, %arg6: memref<2x16x16xbf16, #tpu.memory_space<vmem>>, %arg7: memref<2x16x2048xbf16, #tpu.memory_space<vmem>>, %arg8: memref<2x1x2048xf32, #tpu.memory_space<vmem>>, %arg9: memref<2x2048x16xbf16, #tpu.memory_space<vmem>>, %arg10: memref<16x256xbf16, #tpu.memory_space<vmem>>, %arg11: memref<16x256xbf16, #tpu.memory_space<vmem>>, %arg12: memref<256x16xbf16, #tpu.memory_space<vmem>>, %arg13: memref<8x2x16xf32, #tpu.memory_space<vmem>>) attributes {dimension_semantics = [#tpu.dimension_semantics<parallel>], iteration_bounds = array<i64: 1>, scalar_prefetch = 0 : i64, scratch_operands = 0 : i64, tpu.core_type = #tpu.core_type<tc>, window_params = [{transform_indices = @transform_0, window_bounds = array<i64: 8, 2, 256>}, {pipeline_mode = #tpu.pipeline_mode<synchronous>, transform_indices = @transform_1, window_bounds = array<i64: 256, 16>}, {pipeline_mode = #tpu.pipeline_mode<synchronous>, transform_indices = @transform_2, window_bounds = array<i64: 16, 16>}, {pipeline_mode = #tpu.pipeline_mode<synchronous>, transform_indices = @transform_3, window_bounds = array<i64: 2, 16, 48>}, {pipeline_mode = #tpu.pipeline_mode<synchronous>, transform_indices = @transform_4, window_bounds = array<i64: 2, 1, 48>}, {pipeline_mode = #tpu.pipeline_mode<synchronous>, transform_indices = @transform_5, window_bounds = array<i64: 2, 16, 16>}, {pipeline_mode = #tpu.pipeline_mode<synchronous>, transform_indices = @transform_6, window_bounds = array<i64: 2, 16, 2048>}, {pipeline_mode = #tpu.pipeline_mode<synchronous>, transform_indices = @transform_7, window_bounds = array<i64: 2, 1, 2048>}, {pipeline_mode = #tpu.pipeline_mode<synchronous>, transform_indices = @transform_8, window_bounds = array<i64: 2, 2048, 16>}, {pipeline_mode = #tpu.pipeline_mode<synchronous>, transform_indices = @transform_9, window_bounds = array<i64: 16, 256>}, {pipeline_mode = #tpu.pipeline_mode<synchronous>, transform_indices = @transform_10, window_bounds = array<i64: 16, 256>}, {pipeline_mode = #tpu.pipeline_mode<synchronous>, transform_indices = @transform_11, window_bounds = array<i64: 256, 16>}, {transform_indices = @transform_12, window_bounds = array<i64: 8, 2, 16>}]} {
    %c0 = arith.constant 0 : index
    %c0_0 = arith.constant 0 : index
    %0 = vector.load %arg3[%c0, %c0_0] : memref<16x16xf32, #tpu.memory_space<vmem>>, vector<16x16xf32>
    %c0_1 = arith.constant 0 : index
    %c0_2 = arith.constant 0 : index
    %c0_3 = arith.constant 0 : index
    %1 = vector.load %arg1[%c0_1, %c0_2, %c0_3] : memref<8x2x256xf32, #tpu.memory_space<vmem>>, vector<8x2x256xf32>
    %2 = vector.extract_strided_slice %1 {offsets = [0, 0, 0], sizes = [8, 1, 256], strides = [1, 1, 1]} : vector<8x2x256xf32> to vector<8x1x256xf32>
    %3 = vector.shape_cast %2 : vector<8x1x256xf32> to vector<8x256xf32>
    %4 = vector.extract_strided_slice %1 {offsets = [0, 1, 0], sizes = [8, 1, 256], strides = [1, 1, 1]} : vector<8x2x256xf32> to vector<8x1x256xf32>
    %5 = vector.shape_cast %4 : vector<8x1x256xf32> to vector<8x256xf32>
    %6 = tpu.concatenate %3, %5 in 0 : vector<8x256xf32>, vector<8x256xf32> -> vector<16x256xf32>
    %7 = arith.truncf %6 : vector<16x256xf32> to vector<16x256xbf16>
    %c0_4 = arith.constant 0 : index
    %c0_5 = arith.constant 0 : index
    %8 = vector.load %arg2[%c0_4, %c0_5] : memref<256x16xbf16, #tpu.memory_space<vmem>>, vector<256x16xbf16>
    %cst = arith.constant dense<0.000000e+00> : vector<16x16xf32>
    %9 = tpu.matmul %7, %8, %cst {dimension_numbers = #tpu.dot_dimension_numbers<[1], [0], [0], [1], [0, 0, 1, 1], [], []>} : vector<16x256xbf16>, vector<256x16xbf16>, vector<16x16xf32> -> vector<16x16xf32>
    %10 = vector.extract_strided_slice %0 {offsets = [0, 0], sizes = [1, 16], strides = [1, 1]} : vector<16x16xf32> to vector<1x16xf32>
    %11 = vector.broadcast %10 : vector<1x16xf32> to vector<16x16xf32>
    %12 = arith.addf %9, %11 : vector<16x16xf32>
    %13 = vector.extract_strided_slice %0 {offsets = [1, 0], sizes = [1, 16], strides = [1, 1]} : vector<16x16xf32> to vector<1x16xf32>
    %14 = vector.extract_strided_slice %0 {offsets = [2, 0], sizes = [1, 16], strides = [1, 1]} : vector<16x16xf32> to vector<1x16xf32>
    %cst_6 = arith.constant dense<0.000000e+00> : vector<16xf32>
    %15 = vector.multi_reduction <add>, %12, %cst_6 [1] : vector<16x16xf32> to vector<16xf32>
    %16 = vector.shape_cast %15 : vector<16xf32> to vector<16x1xf32>
    %cst_7 = arith.constant 1.600000e+01 : f32
    %17 = vector.broadcast %cst_7 : f32 to vector<16x1xf32>
    %18 = arith.divf %16, %17 : vector<16x1xf32>
    %19 = vector.broadcast %18 : vector<16x1xf32> to vector<16x16xf32>
    %20 = arith.subf %12, %19 : vector<16x16xf32>
    %21 = arith.mulf %20, %20 : vector<16x16xf32>
    %cst_8 = arith.constant dense<0.000000e+00> : vector<16xf32>
    %22 = vector.multi_reduction <add>, %21, %cst_8 [1] : vector<16x16xf32> to vector<16xf32>
    %23 = vector.shape_cast %22 : vector<16xf32> to vector<16x1xf32>
    %cst_9 = arith.constant 1.600000e+01 : f32
    %24 = vector.broadcast %cst_9 : f32 to vector<16x1xf32>
    %25 = arith.divf %23, %24 : vector<16x1xf32>
    %26 = vector.broadcast %18 : vector<16x1xf32> to vector<16x16xf32>
    %27 = arith.subf %12, %26 : vector<16x16xf32>
    %cst_10 = arith.constant 9.99999974E-6 : f32
    %28 = vector.broadcast %cst_10 : f32 to vector<16x1xf32>
    %29 = arith.addf %25, %28 : vector<16x1xf32>
    %30 = math.rsqrt %29 : vector<16x1xf32>
    %31 = vector.broadcast %30 : vector<16x1xf32> to vector<16x16xf32>
    %32 = arith.mulf %27, %31 : vector<16x16xf32>
    %33 = vector.broadcast %13 : vector<1x16xf32> to vector<16x16xf32>
    %34 = arith.mulf %32, %33 : vector<16x16xf32>
    %35 = vector.broadcast %14 : vector<1x16xf32> to vector<16x16xf32>
    %36 = arith.addf %34, %35 : vector<16x16xf32>
    %37 = arith.truncf %36 : vector<16x16xf32> to vector<16x16xbf16>
    %c0_11 = arith.constant 0 : index
    %c0_12 = arith.constant 0 : index
    %c0_13 = arith.constant 0 : index
    %38 = vector.load %arg4[%c0_11, %c0_12, %c0_13] : memref<2x16x48xbf16, #tpu.memory_space<vmem>>, vector<1x16x48xbf16>
    %39 = vector.shape_cast %38 : vector<1x16x48xbf16> to vector<16x48xbf16>
    %cst_14 = arith.constant dense<0.000000e+00> : vector<16x48xf32>
    %40 = tpu.matmul %37, %39, %cst_14 {dimension_numbers = #tpu.dot_dimension_numbers<[1], [0], [0], [1], [0, 0, 1, 1], [], []>} : vector<16x16xbf16>, vector<16x48xbf16>, vector<16x48xf32> -> vector<16x48xf32>
    %c0_15 = arith.constant 0 : index
    %c0_16 = arith.constant 0 : index
    %c0_17 = arith.constant 0 : index
    %41 = vector.load %arg5[%c0_15, %c0_16, %c0_17] : memref<2x1x48xf32, #tpu.memory_space<vmem>>, vector<1x1x48xf32>
    %42 = vector.shape_cast %41 : vector<1x1x48xf32> to vector<1x48xf32>
    %43 = vector.broadcast %42 : vector<1x48xf32> to vector<16x48xf32>
    %44 = arith.addf %40, %43 : vector<16x48xf32>
    %45 = vector.extract_strided_slice %44 {offsets = [0, 0], sizes = [8, 48], strides = [1, 1]} : vector<16x48xf32> to vector<8x48xf32>
    %46 = vector.extract_strided_slice %45 {offsets = [0, 0], sizes = [8, 8], strides = [1, 1]} : vector<8x48xf32> to vector<8x8xf32>
    %47 = vector.extract_strided_slice %45 {offsets = [0, 16], sizes = [8, 8], strides = [1, 1]} : vector<8x48xf32> to vector<8x8xf32>
    %48 = vector.extract_strided_slice %45 {offsets = [0, 32], sizes = [8, 8], strides = [1, 1]} : vector<8x48xf32> to vector<8x8xf32>
    %cst_18 = arith.constant dense<0.000000e+00> : vector<8x8xf32>
    %49 = tpu.matmul %46, %47, %cst_18 {dimension_numbers = #tpu.dot_dimension_numbers<[1], [1], [0], [0], [0, 0, 1, 0], [], []>} : vector<8x8xf32>, vector<8x8xf32>, vector<8x8xf32> -> vector<8x8xf32>
    %cst_19 = arith.constant dense<0xFF800000> : vector<8xf32>
    %50 = vector.multi_reduction <maximumf>, %49, %cst_19 [1] : vector<8x8xf32> to vector<8xf32>
    %51 = vector.shape_cast %50 : vector<8xf32> to vector<8x1xf32>
    %52 = vector.broadcast %51 : vector<8x1xf32> to vector<8x8xf32>
    %53 = arith.subf %49, %52 : vector<8x8xf32>
    %54 = math.exp %53 : vector<8x8xf32>
    %cst_20 = arith.constant dense<0.000000e+00> : vector<8xf32>
    %55 = vector.multi_reduction <add>, %54, %cst_20 [1] : vector<8x8xf32> to vector<8xf32>
    %56 = vector.shape_cast %55 : vector<8xf32> to vector<8x1xf32>
    %57 = tpu.reciprocal %56 {approx = true} : vector<8x1xf32> -> vector<8x1xf32>
    %58 = vector.broadcast %57 : vector<8x1xf32> to vector<8x8xf32>
    %59 = arith.mulf %54, %58 : vector<8x8xf32>
    %cst_21 = arith.constant dense<0.000000e+00> : vector<8x8xf32>
    %60 = tpu.matmul %59, %48, %cst_21 {dimension_numbers = #tpu.dot_dimension_numbers<[1], [0], [0], [1], [0, 0, 1, 1], [], []>} : vector<8x8xf32>, vector<8x8xf32>, vector<8x8xf32> -> vector<8x8xf32>
    %61 = vector.extract_strided_slice %45 {offsets = [0, 8], sizes = [8, 8], strides = [1, 1]} : vector<8x48xf32> to vector<8x8xf32>
    %62 = vector.extract_strided_slice %45 {offsets = [0, 24], sizes = [8, 8], strides = [1, 1]} : vector<8x48xf32> to vector<8x8xf32>
    %63 = vector.extract_strided_slice %45 {offsets = [0, 40], sizes = [8, 8], strides = [1, 1]} : vector<8x48xf32> to vector<8x8xf32>
    %cst_22 = arith.constant dense<0.000000e+00> : vector<8x8xf32>
    %64 = tpu.matmul %61, %62, %cst_22 {dimension_numbers = #tpu.dot_dimension_numbers<[1], [1], [0], [0], [0, 0, 1, 0], [], []>} : vector<8x8xf32>, vector<8x8xf32>, vector<8x8xf32> -> vector<8x8xf32>
    %cst_23 = arith.constant dense<0xFF800000> : vector<8xf32>
    %65 = vector.multi_reduction <maximumf>, %64, %cst_23 [1] : vector<8x8xf32> to vector<8xf32>
    %66 = vector.shape_cast %65 : vector<8xf32> to vector<8x1xf32>
    %67 = vector.broadcast %66 : vector<8x1xf32> to vector<8x8xf32>
    %68 = arith.subf %64, %67 : vector<8x8xf32>
    %69 = math.exp %68 : vector<8x8xf32>
    %cst_24 = arith.constant dense<0.000000e+00> : vector<8xf32>
    %70 = vector.multi_reduction <add>, %69, %cst_24 [1] : vector<8x8xf32> to vector<8xf32>
    %71 = vector.shape_cast %70 : vector<8xf32> to vector<8x1xf32>
    %72 = tpu.reciprocal %71 {approx = true} : vector<8x1xf32> -> vector<8x1xf32>
    %73 = vector.broadcast %72 : vector<8x1xf32> to vector<8x8xf32>
    %74 = arith.mulf %69, %73 : vector<8x8xf32>
    %cst_25 = arith.constant dense<0.000000e+00> : vector<8x8xf32>
    %75 = tpu.matmul %74, %63, %cst_25 {dimension_numbers = #tpu.dot_dimension_numbers<[1], [0], [0], [1], [0, 0, 1, 1], [], []>} : vector<8x8xf32>, vector<8x8xf32>, vector<8x8xf32> -> vector<8x8xf32>
    %76 = tpu.concatenate %60, %75 in 1 : vector<8x8xf32>, vector<8x8xf32> -> vector<8x16xf32>
    %77 = vector.extract_strided_slice %44 {offsets = [8, 0], sizes = [8, 48], strides = [1, 1]} : vector<16x48xf32> to vector<8x48xf32>
    %78 = vector.extract_strided_slice %77 {offsets = [0, 0], sizes = [8, 8], strides = [1, 1]} : vector<8x48xf32> to vector<8x8xf32>
    %79 = vector.extract_strided_slice %77 {offsets = [0, 16], sizes = [8, 8], strides = [1, 1]} : vector<8x48xf32> to vector<8x8xf32>
    %80 = vector.extract_strided_slice %77 {offsets = [0, 32], sizes = [8, 8], strides = [1, 1]} : vector<8x48xf32> to vector<8x8xf32>
    %cst_26 = arith.constant dense<0.000000e+00> : vector<8x8xf32>
    %81 = tpu.matmul %78, %79, %cst_26 {dimension_numbers = #tpu.dot_dimension_numbers<[1], [1], [0], [0], [0, 0, 1, 0], [], []>} : vector<8x8xf32>, vector<8x8xf32>, vector<8x8xf32> -> vector<8x8xf32>
    %cst_27 = arith.constant dense<0xFF800000> : vector<8xf32>
    %82 = vector.multi_reduction <maximumf>, %81, %cst_27 [1] : vector<8x8xf32> to vector<8xf32>
    %83 = vector.shape_cast %82 : vector<8xf32> to vector<8x1xf32>
    %84 = vector.broadcast %83 : vector<8x1xf32> to vector<8x8xf32>
    %85 = arith.subf %81, %84 : vector<8x8xf32>
    %86 = math.exp %85 : vector<8x8xf32>
    %cst_28 = arith.constant dense<0.000000e+00> : vector<8xf32>
    %87 = vector.multi_reduction <add>, %86, %cst_28 [1] : vector<8x8xf32> to vector<8xf32>
    %88 = vector.shape_cast %87 : vector<8xf32> to vector<8x1xf32>
    %89 = tpu.reciprocal %88 {approx = true} : vector<8x1xf32> -> vector<8x1xf32>
    %90 = vector.broadcast %89 : vector<8x1xf32> to vector<8x8xf32>
    %91 = arith.mulf %86, %90 : vector<8x8xf32>
    %cst_29 = arith.constant dense<0.000000e+00> : vector<8x8xf32>
    %92 = tpu.matmul %91, %80, %cst_29 {dimension_numbers = #tpu.dot_dimension_numbers<[1], [0], [0], [1], [0, 0, 1, 1], [], []>} : vector<8x8xf32>, vector<8x8xf32>, vector<8x8xf32> -> vector<8x8xf32>
    %93 = vector.extract_strided_slice %77 {offsets = [0, 8], sizes = [8, 8], strides = [1, 1]} : vector<8x48xf32> to vector<8x8xf32>
    %94 = vector.extract_strided_slice %77 {offsets = [0, 24], sizes = [8, 8], strides = [1, 1]} : vector<8x48xf32> to vector<8x8xf32>
    %95 = vector.extract_strided_slice %77 {offsets = [0, 40], sizes = [8, 8], strides = [1, 1]} : vector<8x48xf32> to vector<8x8xf32>
    %cst_30 = arith.constant dense<0.000000e+00> : vector<8x8xf32>
    %96 = tpu.matmul %93, %94, %cst_30 {dimension_numbers = #tpu.dot_dimension_numbers<[1], [1], [0], [0], [0, 0, 1, 0], [], []>} : vector<8x8xf32>, vector<8x8xf32>, vector<8x8xf32> -> vector<8x8xf32>
    %cst_31 = arith.constant dense<0xFF800000> : vector<8xf32>
    %97 = vector.multi_reduction <maximumf>, %96, %cst_31 [1] : vector<8x8xf32> to vector<8xf32>
    %98 = vector.shape_cast %97 : vector<8xf32> to vector<8x1xf32>
    %99 = vector.broadcast %98 : vector<8x1xf32> to vector<8x8xf32>
    %100 = arith.subf %96, %99 : vector<8x8xf32>
    %101 = math.exp %100 : vector<8x8xf32>
    %cst_32 = arith.constant dense<0.000000e+00> : vector<8xf32>
    %102 = vector.multi_reduction <add>, %101, %cst_32 [1] : vector<8x8xf32> to vector<8xf32>
    %103 = vector.shape_cast %102 : vector<8xf32> to vector<8x1xf32>
    %104 = tpu.reciprocal %103 {approx = true} : vector<8x1xf32> -> vector<8x1xf32>
    %105 = vector.broadcast %104 : vector<8x1xf32> to vector<8x8xf32>
    %106 = arith.mulf %101, %105 : vector<8x8xf32>
    %cst_33 = arith.constant dense<0.000000e+00> : vector<8x8xf32>
    %107 = tpu.matmul %106, %95, %cst_33 {dimension_numbers = #tpu.dot_dimension_numbers<[1], [0], [0], [1], [0, 0, 1, 1], [], []>} : vector<8x8xf32>, vector<8x8xf32>, vector<8x8xf32> -> vector<8x8xf32>
    %108 = tpu.concatenate %92, %107 in 1 : vector<8x8xf32>, vector<8x8xf32> -> vector<8x16xf32>
    %109 = tpu.concatenate %76, %108 in 0 : vector<8x16xf32>, vector<8x16xf32> -> vector<16x16xf32>
    %110 = arith.truncf %109 : vector<16x16xf32> to vector<16x16xbf16>
    %c0_34 = arith.constant 0 : index
    %c0_35 = arith.constant 0 : index
    %c0_36 = arith.constant 0 : index
    %111 = vector.load %arg6[%c0_34, %c0_35, %c0_36] : memref<2x16x16xbf16, #tpu.memory_space<vmem>>, vector<1x16x16xbf16>
    %112 = vector.shape_cast %111 : vector<1x16x16xbf16> to vector<16x16xbf16>
    %cst_37 = arith.constant dense<0.000000e+00> : vector<16x16xf32>
    %113 = tpu.matmul %110, %112, %cst_37 {dimension_numbers = #tpu.dot_dimension_numbers<[1], [0], [0], [1], [0, 0, 1, 1], [], []>} : vector<16x16xbf16>, vector<16x16xbf16>, vector<16x16xf32> -> vector<16x16xf32>
    %114 = vector.extract_strided_slice %0 {offsets = [3, 0], sizes = [1, 16], strides = [1, 1]} : vector<16x16xf32> to vector<1x16xf32>
    %115 = vector.broadcast %114 : vector<1x16xf32> to vector<16x16xf32>
    %116 = arith.addf %113, %115 : vector<16x16xf32>
    %117 = arith.addf %36, %116 : vector<16x16xf32>
    %118 = vector.extract_strided_slice %0 {offsets = [4, 0], sizes = [1, 16], strides = [1, 1]} : vector<16x16xf32> to vector<1x16xf32>
    %119 = vector.extract_strided_slice %0 {offsets = [5, 0], sizes = [1, 16], strides = [1, 1]} : vector<16x16xf32> to vector<1x16xf32>
    %cst_38 = arith.constant dense<0.000000e+00> : vector<16xf32>
    %120 = vector.multi_reduction <add>, %117, %cst_38 [1] : vector<16x16xf32> to vector<16xf32>
    %121 = vector.shape_cast %120 : vector<16xf32> to vector<16x1xf32>
    %cst_39 = arith.constant 1.600000e+01 : f32
    %122 = vector.broadcast %cst_39 : f32 to vector<16x1xf32>
    %123 = arith.divf %121, %122 : vector<16x1xf32>
    %124 = vector.broadcast %123 : vector<16x1xf32> to vector<16x16xf32>
    %125 = arith.subf %117, %124 : vector<16x16xf32>
    %126 = arith.mulf %125, %125 : vector<16x16xf32>
    %cst_40 = arith.constant dense<0.000000e+00> : vector<16xf32>
    %127 = vector.multi_reduction <add>, %126, %cst_40 [1] : vector<16x16xf32> to vector<16xf32>
    %128 = vector.shape_cast %127 : vector<16xf32> to vector<16x1xf32>
    %cst_41 = arith.constant 1.600000e+01 : f32
    %129 = vector.broadcast %cst_41 : f32 to vector<16x1xf32>
    %130 = arith.divf %128, %129 : vector<16x1xf32>
    %131 = vector.broadcast %123 : vector<16x1xf32> to vector<16x16xf32>
    %132 = arith.subf %117, %131 : vector<16x16xf32>
    %cst_42 = arith.constant 9.99999974E-6 : f32
    %133 = vector.broadcast %cst_42 : f32 to vector<16x1xf32>
    %134 = arith.addf %130, %133 : vector<16x1xf32>
    %135 = math.rsqrt %134 : vector<16x1xf32>
    %136 = vector.broadcast %135 : vector<16x1xf32> to vector<16x16xf32>
    %137 = arith.mulf %132, %136 : vector<16x16xf32>
    %138 = vector.broadcast %118 : vector<1x16xf32> to vector<16x16xf32>
    %139 = arith.mulf %137, %138 : vector<16x16xf32>
    %140 = vector.broadcast %119 : vector<1x16xf32> to vector<16x16xf32>
    %141 = arith.addf %139, %140 : vector<16x16xf32>
    %142 = arith.truncf %141 : vector<16x16xf32> to vector<16x16xbf16>
    %c0_43 = arith.constant 0 : index
    %c0_44 = arith.constant 0 : index
    %c0_45 = arith.constant 0 : index
    %143 = vector.load %arg7[%c0_43, %c0_44, %c0_45] : memref<2x16x2048xbf16, #tpu.memory_space<vmem>>, vector<1x16x2048xbf16>
    %144 = vector.shape_cast %143 : vector<1x16x2048xbf16> to vector<16x2048xbf16>
    %cst_46 = arith.constant dense<0.000000e+00> : vector<16x2048xf32>
    %145 = tpu.matmul %142, %144, %cst_46 {dimension_numbers = #tpu.dot_dimension_numbers<[1], [0], [0], [1], [0, 0, 1, 1], [], []>} : vector<16x16xbf16>, vector<16x2048xbf16>, vector<16x2048xf32> -> vector<16x2048xf32>
    %c0_47 = arith.constant 0 : index
    %c0_48 = arith.constant 0 : index
    %c0_49 = arith.constant 0 : index
    %146 = vector.load %arg8[%c0_47, %c0_48, %c0_49] : memref<2x1x2048xf32, #tpu.memory_space<vmem>>, vector<1x1x2048xf32>
    %147 = vector.shape_cast %146 : vector<1x1x2048xf32> to vector<1x2048xf32>
    %148 = vector.broadcast %147 : vector<1x2048xf32> to vector<16x2048xf32>
    %149 = arith.addf %145, %148 : vector<16x2048xf32>
    %cst_50 = arith.constant 0.000000e+00 : f32
    %150 = vector.broadcast %cst_50 : f32 to vector<16x2048xf32>
    %151 = arith.maximumf %149, %150 : vector<16x2048xf32>
    %152 = arith.truncf %151 : vector<16x2048xf32> to vector<16x2048xbf16>
    %c0_51 = arith.constant 0 : index
    %c0_52 = arith.constant 0 : index
    %c0_53 = arith.constant 0 : index
    %153 = vector.load %arg9[%c0_51, %c0_52, %c0_53] : memref<2x2048x16xbf16, #tpu.memory_space<vmem>>, vector<1x2048x16xbf16>
    %154 = vector.shape_cast %153 : vector<1x2048x16xbf16> to vector<2048x16xbf16>
    %cst_54 = arith.constant dense<0.000000e+00> : vector<16x16xf32>
    %155 = tpu.matmul %152, %154, %cst_54 {dimension_numbers = #tpu.dot_dimension_numbers<[1], [0], [0], [1], [0, 0, 1, 1], [], []>} : vector<16x2048xbf16>, vector<2048x16xbf16>, vector<16x16xf32> -> vector<16x16xf32>
    %156 = vector.extract_strided_slice %0 {offsets = [6, 0], sizes = [1, 16], strides = [1, 1]} : vector<16x16xf32> to vector<1x16xf32>
    %157 = vector.broadcast %156 : vector<1x16xf32> to vector<16x16xf32>
    %158 = arith.addf %155, %157 : vector<16x16xf32>
    %159 = arith.addf %141, %158 : vector<16x16xf32>
    %160 = vector.extract_strided_slice %0 {offsets = [7, 0], sizes = [1, 16], strides = [1, 1]} : vector<16x16xf32> to vector<1x16xf32>
    %161 = vector.extract_strided_slice %0 {offsets = [8, 0], sizes = [1, 16], strides = [1, 1]} : vector<16x16xf32> to vector<1x16xf32>
    %cst_55 = arith.constant dense<0.000000e+00> : vector<16xf32>
    %162 = vector.multi_reduction <add>, %159, %cst_55 [1] : vector<16x16xf32> to vector<16xf32>
    %163 = vector.shape_cast %162 : vector<16xf32> to vector<16x1xf32>
    %cst_56 = arith.constant 1.600000e+01 : f32
    %164 = vector.broadcast %cst_56 : f32 to vector<16x1xf32>
    %165 = arith.divf %163, %164 : vector<16x1xf32>
    %166 = vector.broadcast %165 : vector<16x1xf32> to vector<16x16xf32>
    %167 = arith.subf %159, %166 : vector<16x16xf32>
    %168 = arith.mulf %167, %167 : vector<16x16xf32>
    %cst_57 = arith.constant dense<0.000000e+00> : vector<16xf32>
    %169 = vector.multi_reduction <add>, %168, %cst_57 [1] : vector<16x16xf32> to vector<16xf32>
    %170 = vector.shape_cast %169 : vector<16xf32> to vector<16x1xf32>
    %cst_58 = arith.constant 1.600000e+01 : f32
    %171 = vector.broadcast %cst_58 : f32 to vector<16x1xf32>
    %172 = arith.divf %170, %171 : vector<16x1xf32>
    %173 = vector.broadcast %165 : vector<16x1xf32> to vector<16x16xf32>
    %174 = arith.subf %159, %173 : vector<16x16xf32>
    %cst_59 = arith.constant 9.99999974E-6 : f32
    %175 = vector.broadcast %cst_59 : f32 to vector<16x1xf32>
    %176 = arith.addf %172, %175 : vector<16x1xf32>
    %177 = math.rsqrt %176 : vector<16x1xf32>
    %178 = vector.broadcast %177 : vector<16x1xf32> to vector<16x16xf32>
    %179 = arith.mulf %174, %178 : vector<16x16xf32>
    %180 = vector.broadcast %160 : vector<1x16xf32> to vector<16x16xf32>
    %181 = arith.mulf %179, %180 : vector<16x16xf32>
    %182 = vector.broadcast %161 : vector<1x16xf32> to vector<16x16xf32>
    %183 = arith.addf %181, %182 : vector<16x16xf32>
    %184 = arith.truncf %183 : vector<16x16xf32> to vector<16x16xbf16>
    %c1 = arith.constant 1 : index
    %c0_60 = arith.constant 0 : index
    %c0_61 = arith.constant 0 : index
    %185 = vector.load %arg4[%c1, %c0_60, %c0_61] : memref<2x16x48xbf16, #tpu.memory_space<vmem>>, vector<1x16x48xbf16>
    %186 = vector.shape_cast %185 : vector<1x16x48xbf16> to vector<16x48xbf16>
    %cst_62 = arith.constant dense<0.000000e+00> : vector<16x48xf32>
    %187 = tpu.matmul %184, %186, %cst_62 {dimension_numbers = #tpu.dot_dimension_numbers<[1], [0], [0], [1], [0, 0, 1, 1], [], []>} : vector<16x16xbf16>, vector<16x48xbf16>, vector<16x48xf32> -> vector<16x48xf32>
    %c1_63 = arith.constant 1 : index
    %c0_64 = arith.constant 0 : index
    %c0_65 = arith.constant 0 : index
    %188 = vector.load %arg5[%c1_63, %c0_64, %c0_65] : memref<2x1x48xf32, #tpu.memory_space<vmem>>, vector<1x1x48xf32>
    %189 = vector.shape_cast %188 : vector<1x1x48xf32> to vector<1x48xf32>
    %190 = vector.broadcast %189 : vector<1x48xf32> to vector<16x48xf32>
    %191 = arith.addf %187, %190 : vector<16x48xf32>
    %192 = vector.extract_strided_slice %191 {offsets = [0, 0], sizes = [8, 48], strides = [1, 1]} : vector<16x48xf32> to vector<8x48xf32>
    %193 = vector.extract_strided_slice %192 {offsets = [0, 0], sizes = [8, 8], strides = [1, 1]} : vector<8x48xf32> to vector<8x8xf32>
    %194 = vector.extract_strided_slice %192 {offsets = [0, 16], sizes = [8, 8], strides = [1, 1]} : vector<8x48xf32> to vector<8x8xf32>
    %195 = vector.extract_strided_slice %192 {offsets = [0, 32], sizes = [8, 8], strides = [1, 1]} : vector<8x48xf32> to vector<8x8xf32>
    %cst_66 = arith.constant dense<0.000000e+00> : vector<8x8xf32>
    %196 = tpu.matmul %193, %194, %cst_66 {dimension_numbers = #tpu.dot_dimension_numbers<[1], [1], [0], [0], [0, 0, 1, 0], [], []>} : vector<8x8xf32>, vector<8x8xf32>, vector<8x8xf32> -> vector<8x8xf32>
    %cst_67 = arith.constant dense<0xFF800000> : vector<8xf32>
    %197 = vector.multi_reduction <maximumf>, %196, %cst_67 [1] : vector<8x8xf32> to vector<8xf32>
    %198 = vector.shape_cast %197 : vector<8xf32> to vector<8x1xf32>
    %199 = vector.broadcast %198 : vector<8x1xf32> to vector<8x8xf32>
    %200 = arith.subf %196, %199 : vector<8x8xf32>
    %201 = math.exp %200 : vector<8x8xf32>
    %cst_68 = arith.constant dense<0.000000e+00> : vector<8xf32>
    %202 = vector.multi_reduction <add>, %201, %cst_68 [1] : vector<8x8xf32> to vector<8xf32>
    %203 = vector.shape_cast %202 : vector<8xf32> to vector<8x1xf32>
    %204 = tpu.reciprocal %203 {approx = true} : vector<8x1xf32> -> vector<8x1xf32>
    %205 = vector.broadcast %204 : vector<8x1xf32> to vector<8x8xf32>
    %206 = arith.mulf %201, %205 : vector<8x8xf32>
    %cst_69 = arith.constant dense<0.000000e+00> : vector<8x8xf32>
    %207 = tpu.matmul %206, %195, %cst_69 {dimension_numbers = #tpu.dot_dimension_numbers<[1], [0], [0], [1], [0, 0, 1, 1], [], []>} : vector<8x8xf32>, vector<8x8xf32>, vector<8x8xf32> -> vector<8x8xf32>
    %208 = vector.extract_strided_slice %192 {offsets = [0, 8], sizes = [8, 8], strides = [1, 1]} : vector<8x48xf32> to vector<8x8xf32>
    %209 = vector.extract_strided_slice %192 {offsets = [0, 24], sizes = [8, 8], strides = [1, 1]} : vector<8x48xf32> to vector<8x8xf32>
    %210 = vector.extract_strided_slice %192 {offsets = [0, 40], sizes = [8, 8], strides = [1, 1]} : vector<8x48xf32> to vector<8x8xf32>
    %cst_70 = arith.constant dense<0.000000e+00> : vector<8x8xf32>
    %211 = tpu.matmul %208, %209, %cst_70 {dimension_numbers = #tpu.dot_dimension_numbers<[1], [1], [0], [0], [0, 0, 1, 0], [], []>} : vector<8x8xf32>, vector<8x8xf32>, vector<8x8xf32> -> vector<8x8xf32>
    %cst_71 = arith.constant dense<0xFF800000> : vector<8xf32>
    %212 = vector.multi_reduction <maximumf>, %211, %cst_71 [1] : vector<8x8xf32> to vector<8xf32>
    %213 = vector.shape_cast %212 : vector<8xf32> to vector<8x1xf32>
    %214 = vector.broadcast %213 : vector<8x1xf32> to vector<8x8xf32>
    %215 = arith.subf %211, %214 : vector<8x8xf32>
    %216 = math.exp %215 : vector<8x8xf32>
    %cst_72 = arith.constant dense<0.000000e+00> : vector<8xf32>
    %217 = vector.multi_reduction <add>, %216, %cst_72 [1] : vector<8x8xf32> to vector<8xf32>
    %218 = vector.shape_cast %217 : vector<8xf32> to vector<8x1xf32>
    %219 = tpu.reciprocal %218 {approx = true} : vector<8x1xf32> -> vector<8x1xf32>
    %220 = vector.broadcast %219 : vector<8x1xf32> to vector<8x8xf32>
    %221 = arith.mulf %216, %220 : vector<8x8xf32>
    %cst_73 = arith.constant dense<0.000000e+00> : vector<8x8xf32>
    %222 = tpu.matmul %221, %210, %cst_73 {dimension_numbers = #tpu.dot_dimension_numbers<[1], [0], [0], [1], [0, 0, 1, 1], [], []>} : vector<8x8xf32>, vector<8x8xf32>, vector<8x8xf32> -> vector<8x8xf32>
    %223 = tpu.concatenate %207, %222 in 1 : vector<8x8xf32>, vector<8x8xf32> -> vector<8x16xf32>
    %224 = vector.extract_strided_slice %191 {offsets = [8, 0], sizes = [8, 48], strides = [1, 1]} : vector<16x48xf32> to vector<8x48xf32>
    %225 = vector.extract_strided_slice %224 {offsets = [0, 0], sizes = [8, 8], strides = [1, 1]} : vector<8x48xf32> to vector<8x8xf32>
    %226 = vector.extract_strided_slice %224 {offsets = [0, 16], sizes = [8, 8], strides = [1, 1]} : vector<8x48xf32> to vector<8x8xf32>
    %227 = vector.extract_strided_slice %224 {offsets = [0, 32], sizes = [8, 8], strides = [1, 1]} : vector<8x48xf32> to vector<8x8xf32>
    %cst_74 = arith.constant dense<0.000000e+00> : vector<8x8xf32>
    %228 = tpu.matmul %225, %226, %cst_74 {dimension_numbers = #tpu.dot_dimension_numbers<[1], [1], [0], [0], [0, 0, 1, 0], [], []>} : vector<8x8xf32>, vector<8x8xf32>, vector<8x8xf32> -> vector<8x8xf32>
    %cst_75 = arith.constant dense<0xFF800000> : vector<8xf32>
    %229 = vector.multi_reduction <maximumf>, %228, %cst_75 [1] : vector<8x8xf32> to vector<8xf32>
    %230 = vector.shape_cast %229 : vector<8xf32> to vector<8x1xf32>
    %231 = vector.broadcast %230 : vector<8x1xf32> to vector<8x8xf32>
    %232 = arith.subf %228, %231 : vector<8x8xf32>
    %233 = math.exp %232 : vector<8x8xf32>
    %cst_76 = arith.constant dense<0.000000e+00> : vector<8xf32>
    %234 = vector.multi_reduction <add>, %233, %cst_76 [1] : vector<8x8xf32> to vector<8xf32>
    %235 = vector.shape_cast %234 : vector<8xf32> to vector<8x1xf32>
    %236 = tpu.reciprocal %235 {approx = true} : vector<8x1xf32> -> vector<8x1xf32>
    %237 = vector.broadcast %236 : vector<8x1xf32> to vector<8x8xf32>
    %238 = arith.mulf %233, %237 : vector<8x8xf32>
    %cst_77 = arith.constant dense<0.000000e+00> : vector<8x8xf32>
    %239 = tpu.matmul %238, %227, %cst_77 {dimension_numbers = #tpu.dot_dimension_numbers<[1], [0], [0], [1], [0, 0, 1, 1], [], []>} : vector<8x8xf32>, vector<8x8xf32>, vector<8x8xf32> -> vector<8x8xf32>
    %240 = vector.extract_strided_slice %224 {offsets = [0, 8], sizes = [8, 8], strides = [1, 1]} : vector<8x48xf32> to vector<8x8xf32>
    %241 = vector.extract_strided_slice %224 {offsets = [0, 24], sizes = [8, 8], strides = [1, 1]} : vector<8x48xf32> to vector<8x8xf32>
    %242 = vector.extract_strided_slice %224 {offsets = [0, 40], sizes = [8, 8], strides = [1, 1]} : vector<8x48xf32> to vector<8x8xf32>
    %cst_78 = arith.constant dense<0.000000e+00> : vector<8x8xf32>
    %243 = tpu.matmul %240, %241, %cst_78 {dimension_numbers = #tpu.dot_dimension_numbers<[1], [1], [0], [0], [0, 0, 1, 0], [], []>} : vector<8x8xf32>, vector<8x8xf32>, vector<8x8xf32> -> vector<8x8xf32>
    %cst_79 = arith.constant dense<0xFF800000> : vector<8xf32>
    %244 = vector.multi_reduction <maximumf>, %243, %cst_79 [1] : vector<8x8xf32> to vector<8xf32>
    %245 = vector.shape_cast %244 : vector<8xf32> to vector<8x1xf32>
    %246 = vector.broadcast %245 : vector<8x1xf32> to vector<8x8xf32>
    %247 = arith.subf %243, %246 : vector<8x8xf32>
    %248 = math.exp %247 : vector<8x8xf32>
    %cst_80 = arith.constant dense<0.000000e+00> : vector<8xf32>
    %249 = vector.multi_reduction <add>, %248, %cst_80 [1] : vector<8x8xf32> to vector<8xf32>
    %250 = vector.shape_cast %249 : vector<8xf32> to vector<8x1xf32>
    %251 = tpu.reciprocal %250 {approx = true} : vector<8x1xf32> -> vector<8x1xf32>
    %252 = vector.broadcast %251 : vector<8x1xf32> to vector<8x8xf32>
    %253 = arith.mulf %248, %252 : vector<8x8xf32>
    %cst_81 = arith.constant dense<0.000000e+00> : vector<8x8xf32>
    %254 = tpu.matmul %253, %242, %cst_81 {dimension_numbers = #tpu.dot_dimension_numbers<[1], [0], [0], [1], [0, 0, 1, 1], [], []>} : vector<8x8xf32>, vector<8x8xf32>, vector<8x8xf32> -> vector<8x8xf32>
    %255 = tpu.concatenate %239, %254 in 1 : vector<8x8xf32>, vector<8x8xf32> -> vector<8x16xf32>
    %256 = tpu.concatenate %223, %255 in 0 : vector<8x16xf32>, vector<8x16xf32> -> vector<16x16xf32>
    %257 = arith.truncf %256 : vector<16x16xf32> to vector<16x16xbf16>
    %c1_82 = arith.constant 1 : index
    %c0_83 = arith.constant 0 : index
    %c0_84 = arith.constant 0 : index
    %258 = vector.load %arg6[%c1_82, %c0_83, %c0_84] : memref<2x16x16xbf16, #tpu.memory_space<vmem>>, vector<1x16x16xbf16>
    %259 = vector.shape_cast %258 : vector<1x16x16xbf16> to vector<16x16xbf16>
    %cst_85 = arith.constant dense<0.000000e+00> : vector<16x16xf32>
    %260 = tpu.matmul %257, %259, %cst_85 {dimension_numbers = #tpu.dot_dimension_numbers<[1], [0], [0], [1], [0, 0, 1, 1], [], []>} : vector<16x16xbf16>, vector<16x16xbf16>, vector<16x16xf32> -> vector<16x16xf32>
    %261 = vector.extract_strided_slice %0 {offsets = [9, 0], sizes = [1, 16], strides = [1, 1]} : vector<16x16xf32> to vector<1x16xf32>
    %262 = vector.broadcast %261 : vector<1x16xf32> to vector<16x16xf32>
    %263 = arith.addf %260, %262 : vector<16x16xf32>
    %264 = arith.addf %183, %263 : vector<16x16xf32>
    %265 = vector.extract_strided_slice %0 {offsets = [10, 0], sizes = [1, 16], strides = [1, 1]} : vector<16x16xf32> to vector<1x16xf32>
    %266 = vector.extract_strided_slice %0 {offsets = [11, 0], sizes = [1, 16], strides = [1, 1]} : vector<16x16xf32> to vector<1x16xf32>
    %cst_86 = arith.constant dense<0.000000e+00> : vector<16xf32>
    %267 = vector.multi_reduction <add>, %264, %cst_86 [1] : vector<16x16xf32> to vector<16xf32>
    %268 = vector.shape_cast %267 : vector<16xf32> to vector<16x1xf32>
    %cst_87 = arith.constant 1.600000e+01 : f32
    %269 = vector.broadcast %cst_87 : f32 to vector<16x1xf32>
    %270 = arith.divf %268, %269 : vector<16x1xf32>
    %271 = vector.broadcast %270 : vector<16x1xf32> to vector<16x16xf32>
    %272 = arith.subf %264, %271 : vector<16x16xf32>
    %273 = arith.mulf %272, %272 : vector<16x16xf32>
    %cst_88 = arith.constant dense<0.000000e+00> : vector<16xf32>
    %274 = vector.multi_reduction <add>, %273, %cst_88 [1] : vector<16x16xf32> to vector<16xf32>
    %275 = vector.shape_cast %274 : vector<16xf32> to vector<16x1xf32>
    %cst_89 = arith.constant 1.600000e+01 : f32
    %276 = vector.broadcast %cst_89 : f32 to vector<16x1xf32>
    %277 = arith.divf %275, %276 : vector<16x1xf32>
    %278 = vector.broadcast %270 : vector<16x1xf32> to vector<16x16xf32>
    %279 = arith.subf %264, %278 : vector<16x16xf32>
    %cst_90 = arith.constant 9.99999974E-6 : f32
    %280 = vector.broadcast %cst_90 : f32 to vector<16x1xf32>
    %281 = arith.addf %277, %280 : vector<16x1xf32>
    %282 = math.rsqrt %281 : vector<16x1xf32>
    %283 = vector.broadcast %282 : vector<16x1xf32> to vector<16x16xf32>
    %284 = arith.mulf %279, %283 : vector<16x16xf32>
    %285 = vector.broadcast %265 : vector<1x16xf32> to vector<16x16xf32>
    %286 = arith.mulf %284, %285 : vector<16x16xf32>
    %287 = vector.broadcast %266 : vector<1x16xf32> to vector<16x16xf32>
    %288 = arith.addf %286, %287 : vector<16x16xf32>
    %289 = arith.truncf %288 : vector<16x16xf32> to vector<16x16xbf16>
    %c1_91 = arith.constant 1 : index
    %c0_92 = arith.constant 0 : index
    %c0_93 = arith.constant 0 : index
    %290 = vector.load %arg7[%c1_91, %c0_92, %c0_93] : memref<2x16x2048xbf16, #tpu.memory_space<vmem>>, vector<1x16x2048xbf16>
    %291 = vector.shape_cast %290 : vector<1x16x2048xbf16> to vector<16x2048xbf16>
    %cst_94 = arith.constant dense<0.000000e+00> : vector<16x2048xf32>
    %292 = tpu.matmul %289, %291, %cst_94 {dimension_numbers = #tpu.dot_dimension_numbers<[1], [0], [0], [1], [0, 0, 1, 1], [], []>} : vector<16x16xbf16>, vector<16x2048xbf16>, vector<16x2048xf32> -> vector<16x2048xf32>
    %c1_95 = arith.constant 1 : index
    %c0_96 = arith.constant 0 : index
    %c0_97 = arith.constant 0 : index
    %293 = vector.load %arg8[%c1_95, %c0_96, %c0_97] : memref<2x1x2048xf32, #tpu.memory_space<vmem>>, vector<1x1x2048xf32>
    %294 = vector.shape_cast %293 : vector<1x1x2048xf32> to vector<1x2048xf32>
    %295 = vector.broadcast %294 : vector<1x2048xf32> to vector<16x2048xf32>
    %296 = arith.addf %292, %295 : vector<16x2048xf32>
    %cst_98 = arith.constant 0.000000e+00 : f32
    %297 = vector.broadcast %cst_98 : f32 to vector<16x2048xf32>
    %298 = arith.maximumf %296, %297 : vector<16x2048xf32>
    %299 = arith.truncf %298 : vector<16x2048xf32> to vector<16x2048xbf16>
    %c1_99 = arith.constant 1 : index
    %c0_100 = arith.constant 0 : index
    %c0_101 = arith.constant 0 : index
    %300 = vector.load %arg9[%c1_99, %c0_100, %c0_101] : memref<2x2048x16xbf16, #tpu.memory_space<vmem>>, vector<1x2048x16xbf16>
    %301 = vector.shape_cast %300 : vector<1x2048x16xbf16> to vector<2048x16xbf16>
    %cst_102 = arith.constant dense<0.000000e+00> : vector<16x16xf32>
    %302 = tpu.matmul %299, %301, %cst_102 {dimension_numbers = #tpu.dot_dimension_numbers<[1], [0], [0], [1], [0, 0, 1, 1], [], []>} : vector<16x2048xbf16>, vector<2048x16xbf16>, vector<16x16xf32> -> vector<16x16xf32>
    %303 = vector.extract_strided_slice %0 {offsets = [12, 0], sizes = [1, 16], strides = [1, 1]} : vector<16x16xf32> to vector<1x16xf32>
    %304 = vector.broadcast %303 : vector<1x16xf32> to vector<16x16xf32>
    %305 = arith.addf %302, %304 : vector<16x16xf32>
    %306 = arith.addf %288, %305 : vector<16x16xf32>
    %307 = vector.extract_strided_slice %0 {offsets = [13, 0], sizes = [1, 16], strides = [1, 1]} : vector<16x16xf32> to vector<1x16xf32>
    %308 = vector.extract_strided_slice %0 {offsets = [14, 0], sizes = [1, 16], strides = [1, 1]} : vector<16x16xf32> to vector<1x16xf32>
    %cst_103 = arith.constant dense<0.000000e+00> : vector<16xf32>
    %309 = vector.multi_reduction <add>, %306, %cst_103 [1] : vector<16x16xf32> to vector<16xf32>
    %310 = vector.shape_cast %309 : vector<16xf32> to vector<16x1xf32>
    %cst_104 = arith.constant 1.600000e+01 : f32
    %311 = vector.broadcast %cst_104 : f32 to vector<16x1xf32>
    %312 = arith.divf %310, %311 : vector<16x1xf32>
    %313 = vector.broadcast %312 : vector<16x1xf32> to vector<16x16xf32>
    %314 = arith.subf %306, %313 : vector<16x16xf32>
    %315 = arith.mulf %314, %314 : vector<16x16xf32>
    %cst_105 = arith.constant dense<0.000000e+00> : vector<16xf32>
    %316 = vector.multi_reduction <add>, %315, %cst_105 [1] : vector<16x16xf32> to vector<16xf32>
    %317 = vector.shape_cast %316 : vector<16xf32> to vector<16x1xf32>
    %cst_106 = arith.constant 1.600000e+01 : f32
    %318 = vector.broadcast %cst_106 : f32 to vector<16x1xf32>
    %319 = arith.divf %317, %318 : vector<16x1xf32>
    %320 = vector.broadcast %312 : vector<16x1xf32> to vector<16x16xf32>
    %321 = arith.subf %306, %320 : vector<16x16xf32>
    %cst_107 = arith.constant 9.99999974E-6 : f32
    %322 = vector.broadcast %cst_107 : f32 to vector<16x1xf32>
    %323 = arith.addf %319, %322 : vector<16x1xf32>
    %324 = math.rsqrt %323 : vector<16x1xf32>
    %325 = vector.broadcast %324 : vector<16x1xf32> to vector<16x16xf32>
    %326 = arith.mulf %321, %325 : vector<16x16xf32>
    %327 = vector.broadcast %307 : vector<1x16xf32> to vector<16x16xf32>
    %328 = arith.mulf %326, %327 : vector<16x16xf32>
    %329 = vector.broadcast %308 : vector<1x16xf32> to vector<16x16xf32>
    %330 = arith.addf %328, %329 : vector<16x16xf32>
    %331 = arith.truncf %330 : vector<16x16xf32> to vector<16x16xbf16>
    %c0_108 = arith.constant 0 : index
    %c0_109 = arith.constant 0 : index
    %332 = vector.load %arg10[%c0_108, %c0_109] : memref<16x256xbf16, #tpu.memory_space<vmem>>, vector<16x256xbf16>
    %cst_110 = arith.constant dense<0.000000e+00> : vector<16x256xf32>
    %333 = tpu.matmul %331, %332, %cst_110 {dimension_numbers = #tpu.dot_dimension_numbers<[1], [0], [0], [1], [0, 0, 1, 1], [], []>} : vector<16x16xbf16>, vector<16x256xbf16>, vector<16x256xf32> -> vector<16x256xf32>
    %334 = arith.truncf %36 : vector<16x16xf32> to vector<16x16xbf16>
    %c0_111 = arith.constant 0 : index
    %c0_112 = arith.constant 0 : index
    %335 = vector.load %arg11[%c0_111, %c0_112] : memref<16x256xbf16, #tpu.memory_space<vmem>>, vector<16x256xbf16>
    %cst_113 = arith.constant dense<0.000000e+00> : vector<16x256xf32>
    %336 = tpu.matmul %334, %335, %cst_113 {dimension_numbers = #tpu.dot_dimension_numbers<[1], [0], [0], [1], [0, 0, 1, 1], [], []>} : vector<16x16xbf16>, vector<16x256xbf16>, vector<16x256xf32> -> vector<16x256xf32>
    %337 = arith.mulf %333, %336 : vector<16x256xf32>
    %338 = arith.truncf %337 : vector<16x256xf32> to vector<16x256xbf16>
    %c0_114 = arith.constant 0 : index
    %c0_115 = arith.constant 0 : index
    %339 = vector.load %arg12[%c0_114, %c0_115] : memref<256x16xbf16, #tpu.memory_space<vmem>>, vector<256x16xbf16>
    %cst_116 = arith.constant dense<0.000000e+00> : vector<16x16xf32>
    %340 = tpu.matmul %338, %339, %cst_116 {dimension_numbers = #tpu.dot_dimension_numbers<[1], [0], [0], [1], [0, 0, 1, 1], [], []>} : vector<16x256xbf16>, vector<256x16xbf16>, vector<16x16xf32> -> vector<16x16xf32>
    %341 = vector.extract_strided_slice %0 {offsets = [15, 0], sizes = [1, 16], strides = [1, 1]} : vector<16x16xf32> to vector<1x16xf32>
    %342 = vector.broadcast %341 : vector<1x16xf32> to vector<16x16xf32>
    %343 = arith.addf %340, %342 : vector<16x16xf32>
    %cst_117 = arith.constant 5.000000e-01 : f32
    %344 = vector.broadcast %cst_117 : f32 to vector<16x16xf32>
    %345 = arith.mulf %344, %343 : vector<16x16xf32>
    %cst_118 = arith.constant 0.707106769 : f32
    %346 = vector.broadcast %cst_118 : f32 to vector<16x16xf32>
    %347 = arith.mulf %343, %346 : vector<16x16xf32>
    %cst_119 = arith.constant 0.000000e+00 : f32
    %348 = vector.broadcast %cst_119 : f32 to vector<16x16xf32>
    %349 = arith.cmpf olt, %347, %348 : vector<16x16xf32>
    %cst_120 = arith.constant -1.000000e+00 : f32
    %cst_121 = arith.constant 1.000000e+00 : f32
    %350 = vector.broadcast %cst_120 : f32 to vector<16x16xf32>
    %351 = vector.broadcast %cst_121 : f32 to vector<16x16xf32>
    %352 = arith.select %349, %350, %351 : vector<16x16xi1>, vector<16x16xf32>
    %353 = math.absf %347 : vector<16x16xf32>
    %cst_122 = arith.constant 0.327591091 : f32
    %354 = vector.broadcast %cst_122 : f32 to vector<16x16xf32>
    %355 = arith.mulf %354, %353 : vector<16x16xf32>
    %cst_123 = arith.constant 1.000000e+00 : f32
    %356 = vector.broadcast %cst_123 : f32 to vector<16x16xf32>
    %357 = arith.addf %356, %355 : vector<16x16xf32>
    %cst_124 = arith.constant 1.000000e+00 : f32
    %358 = vector.broadcast %cst_124 : f32 to vector<16x16xf32>
    %359 = arith.divf %358, %357 : vector<16x16xf32>
    %cst_125 = arith.constant 1.06140542 : f32
    %360 = vector.broadcast %cst_125 : f32 to vector<16x16xf32>
    %361 = arith.mulf %360, %359 : vector<16x16xf32>
    %cst_126 = arith.constant -1.45315206 : f32
    %362 = vector.broadcast %cst_126 : f32 to vector<16x16xf32>
    %363 = arith.addf %361, %362 : vector<16x16xf32>
    %364 = arith.mulf %363, %359 : vector<16x16xf32>
    %cst_127 = arith.constant 1.42141378 : f32
    %365 = vector.broadcast %cst_127 : f32 to vector<16x16xf32>
    %366 = arith.addf %364, %365 : vector<16x16xf32>
    %367 = arith.mulf %366, %359 : vector<16x16xf32>
    %cst_128 = arith.constant -0.284496725 : f32
    %368 = vector.broadcast %cst_128 : f32 to vector<16x16xf32>
    %369 = arith.addf %367, %368 : vector<16x16xf32>
    %370 = arith.mulf %369, %359 : vector<16x16xf32>
    %cst_129 = arith.constant 0.254829586 : f32
    %371 = vector.broadcast %cst_129 : f32 to vector<16x16xf32>
    %372 = arith.addf %370, %371 : vector<16x16xf32>
    %373 = arith.mulf %372, %359 : vector<16x16xf32>
    %cst_130 = arith.constant 0.000000e+00 : f32
    %374 = vector.broadcast %cst_130 : f32 to vector<16x16xf32>
    %375 = arith.subf %374, %353 : vector<16x16xf32>
    %376 = arith.mulf %375, %353 : vector<16x16xf32>
    %377 = math.exp %376 : vector<16x16xf32>
    %378 = arith.mulf %373, %377 : vector<16x16xf32>
    %cst_131 = arith.constant 1.000000e+00 : f32
    %379 = vector.broadcast %cst_131 : f32 to vector<16x16xf32>
    %380 = arith.subf %379, %378 : vector<16x16xf32>
    %381 = arith.mulf %352, %380 : vector<16x16xf32>
    %cst_132 = arith.constant 1.000000e+00 : f32
    %382 = vector.broadcast %cst_132 : f32 to vector<16x16xf32>
    %383 = arith.addf %382, %381 : vector<16x16xf32>
    %384 = arith.mulf %345, %383 : vector<16x16xf32>
    %385 = vector.extract_strided_slice %384 {offsets = [0, 0], sizes = [8, 16], strides = [1, 1]} : vector<16x16xf32> to vector<8x16xf32>
    %386 = vector.shape_cast %385 : vector<8x16xf32> to vector<8x1x16xf32>
    %c0_133 = arith.constant 0 : index
    %c0_134 = arith.constant 0 : index
    %c0_135 = arith.constant 0 : index
    %387 = vector.load %arg13[%c0_133, %c0_134, %c0_135] : memref<8x2x16xf32, #tpu.memory_space<vmem>>, vector<8x1x16xf32>
    tpu.vector_store %arg13[%c0_133, %c0_134, %c0_135], %386 {strides = array<i32>} : memref<8x2x16xf32, #tpu.memory_space<vmem>>, vector<8x1x16xf32>,
    %388 = vector.extract_strided_slice %384 {offsets = [8, 0], sizes = [8, 16], strides = [1, 1]} : vector<16x16xf32> to vector<8x16xf32>
    %389 = vector.shape_cast %388 : vector<8x16xf32> to vector<8x1x16xf32>
    %c0_136 = arith.constant 0 : index
    %c1_137 = arith.constant 1 : index
    %c0_138 = arith.constant 0 : index
    %390 = vector.load %arg13[%c0_136, %c1_137, %c0_138] : memref<8x2x16xf32, #tpu.memory_space<vmem>>, vector<8x1x16xf32>
    tpu.vector_store %arg13[%c0_136, %c1_137, %c0_138], %389 {strides = array<i32>} : memref<8x2x16xf32, #tpu.memory_space<vmem>>, vector<8x1x16xf32>,
    return
  }
  func.func @transform_0(%arg0: i32) -> (i32, i32, i32) {
    %c0_i32 = arith.constant 0 : i32
    %c0_i32_0 = arith.constant 0 : i32
    %c0_i32_1 = arith.constant 0 : i32
    return %c0_i32, %arg0, %c0_i32_0 : i32, i32, i32
  }
  func.func @transform_1(%arg0: i32) -> (i32, i32) {
    %c0_i32 = arith.constant 0 : i32
    %c0_i32_0 = arith.constant 0 : i32
    %c0_i32_1 = arith.constant 0 : i32
    return %c0_i32, %c0_i32_0 : i32, i32
  }
  func.func @transform_2(%arg0: i32) -> (i32, i32) {
    %c0_i32 = arith.constant 0 : i32
    %c0_i32_0 = arith.constant 0 : i32
    %c0_i32_1 = arith.constant 0 : i32
    return %c0_i32, %c0_i32_0 : i32, i32
  }
  func.func @transform_3(%arg0: i32) -> (i32, i32, i32) {
    %c0_i32 = arith.constant 0 : i32
    %c0_i32_0 = arith.constant 0 : i32
    %c0_i32_1 = arith.constant 0 : i32
    %c0_i32_2 = arith.constant 0 : i32
    return %c0_i32, %c0_i32_0, %c0_i32_1 : i32, i32, i32
  }
  func.func @transform_4(%arg0: i32) -> (i32, i32, i32) {
    %c0_i32 = arith.constant 0 : i32
    %c0_i32_0 = arith.constant 0 : i32
    %c0_i32_1 = arith.constant 0 : i32
    %c0_i32_2 = arith.constant 0 : i32
    return %c0_i32, %c0_i32_0, %c0_i32_1 : i32, i32, i32
  }
  func.func @transform_5(%arg0: i32) -> (i32, i32, i32) {
    %c0_i32 = arith.constant 0 : i32
    %c0_i32_0 = arith.constant 0 : i32
    %c0_i32_1 = arith.constant 0 : i32
    %c0_i32_2 = arith.constant 0 : i32
    return %c0_i32, %c0_i32_0, %c0_i32_1 : i32, i32, i32
  }
  func.func @transform_6(%arg0: i32) -> (i32, i32, i32) {
    %c0_i32 = arith.constant 0 : i32
    %c0_i32_0 = arith.constant 0 : i32
    %c0_i32_1 = arith.constant 0 : i32
    %c0_i32_2 = arith.constant 0 : i32
    return %c0_i32, %c0_i32_0, %c0_i32_1 : i32, i32, i32
  }
  func.func @transform_7(%arg0: i32) -> (i32, i32, i32) {
    %c0_i32 = arith.constant 0 : i32
    %c0_i32_0 = arith.constant 0 : i32
    %c0_i32_1 = arith.constant 0 : i32
    %c0_i32_2 = arith.constant 0 : i32
    return %c0_i32, %c0_i32_0, %c0_i32_1 : i32, i32, i32
  }
  func.func @transform_8(%arg0: i32) -> (i32, i32, i32) {
    %c0_i32 = arith.constant 0 : i32
    %c0_i32_0 = arith.constant 0 : i32
    %c0_i32_1 = arith.constant 0 : i32
    %c0_i32_2 = arith.constant 0 : i32
    return %c0_i32, %c0_i32_0, %c0_i32_1 : i32, i32, i32
  }
  func.func @transform_9(%arg0: i32) -> (i32, i32) {
    %c0_i32 = arith.constant 0 : i32
    %c0_i32_0 = arith.constant 0 : i32
    %c0_i32_1 = arith.constant 0 : i32
    return %c0_i32, %c0_i32_0 : i32, i32
  }
  func.func @transform_10(%arg0: i32) -> (i32, i32) {
    %c0_i32 = arith.constant 0 : i32
    %c0_i32_0 = arith.constant 0 : i32
    %c0_i32_1 = arith.constant 0 : i32
    return %c0_i32, %c0_i32_0 : i32, i32
  }
  func.func @transform_11(%arg0: i32) -> (i32, i32) {
    %c0_i32 = arith.constant 0 : i32
    %c0_i32_0 = arith.constant 0 : i32
    %c0_i32_1 = arith.constant 0 : i32
    return %c0_i32, %c0_i32_0 : i32, i32
  }
  func.func @transform_12(%arg0: i32) -> (i32, i32, i32) {
    %c0_i32 = arith.constant 0 : i32
    %c0_i32_0 = arith.constant 0 : i32
    %c0_i32_1 = arith.constant 0 : i32
    return %c0_i32, %arg0, %c0_i32_0 : i32, i32, i32
  }
}

</mosaic_0001>

<bundles_post_ra>
// kernel: linear_weight_block.1
= control target key start
LH: loop header
LB: loop body
LE: loop exit
PB: predicated region body
PF: predicated region fallthrough
CT: control target
= control target key end

     0   :  { %vm77_vm0 = vcmask 1041409   ;;  %vm79_vm1 = vcmask 1042434   ;;  %vm81_vm2 = vcmask 1043459   ;;  %vm83_vm3 = vcmask 1044484   ;;  %s8678_s0 = inlined_call_operand.vmem [shape: f32[8,2,256], index: 0, kind: input, shape index: {}]   ;;  %s8679_s1 = inlined_call_operand.vmem [shape: bf16[256,16], index: 1, kind: input, shape index: {}]   ;;  %s8680_s2 = inlined_call_operand.vmem [shape: f32[16,16], index: 2, kind: input, shape index: {}]   ;;  %s8681_s3 = inlined_call_operand.vmem [shape: bf16[2,16,48], index: 3, kind: input, shape index: {}]   ;;  %s8682_s4 = inlined_call_operand.vmem [shape: f32[2,1,48], index: 4, kind: input, shape index: {}]   ;;  %s8683_s5 = inlined_call_operand.vmem [shape: bf16[2,16,16], index: 5, kind: input, shape index: {}]   ;;  %s8684_s6 = inlined_call_operand.vmem [shape: bf16[2,16,2048], index: 6, kind: input, shape index: {}]   ;;  %s8685_s7 = inlined_call_operand.vmem [shape: f32[2,1,2048], index: 7, kind: input, shape index: {}]   ;;  %s8686_s8 = inlined_call_operand.vmem [shape: bf16[2,2048,16], index: 8, kind: input, shape index: {}]   ;;  %s8687_s9 = inlined_call_operand.vmem [shape: bf16[16,256], index: 9, kind: input, shape index: {}]   ;;  %s8688_s10 = inlined_call_operand.vmem [shape: bf16[16,256], index: 10, kind: input, shape index: {}]   ;;  %s8689_s11 = inlined_call_operand.vmem [shape: bf16[256,16], index: 11, kind: input, shape index: {}]   ;;  %s8690_s12 = inlined_call_operand.hbm [shape: f32[8,2,16], index: 12, kind: output, shape index: {}]  }
   0x1   :  { %v6582_v0 = vld [vmem:[%s8679_s1 + $0x38] sm:$0xff]  ;;  %v6581_v2 = vld [vmem:[%s8679_s1 + $0x30] sm:$0xff]  ;;  %v6580_v4 = vld [vmem:[%s8679_s1 + $0x28] sm:$0xff]  ;;  %vm85_vm4 = vcmask 1045509  }
   0x2   :  { %v6590_v1 = vld [vmem:[%s8679_s1 + $0x78] sm:$0xff]  ;;  %263 = vmatpush.bf16.msra.mxu0 %v6582_v0  ;;  %v6589_v3 = vld [vmem:[%s8679_s1 + $0x70] sm:$0xff]  ;;  %v7110_v5 = vld [vmem:[%s8678_s0] sm:$0xf] }
   0x3   :  { %277 = vmatpush.bf16.msra.mxu1 %v6590_v1  ;;  %v7115_v6 = vld [vmem:[%s8678_s0 + $0x4] sm:$0xf]  ;;  %v6588_v7 = vld [vmem:[%s8679_s1 + $0x68] sm:$0xff]  ;;  %v61_v10 = vperm.slane %v7110_v5, 0  ;;  %v7139_v14 = vld [vmem:[%s8678_s0 + $0x10] sm:$0xf] }
   0x4   :  { %v7123_v8 = vld [vmem:[%s8678_s0 + $0x8] sm:$0xf]  ;;  %v7128_v9 = vld [vmem:[%s8678_s0 + $0xc] sm:$0xf]  ;;  %v63_v11 = vperm.slane %v7115_v6, 0  ;;  %v6579_v13 = vld [vmem:[%s8679_s1 + $0x20] sm:$0xff] }
   0x5   :  { %v65_v12 = vperm.slane %v7123_v8, 0  ;;  %v67_v15 = vperm.slane %v7128_v9, 0  ;;  %v6587_v16 = vld [vmem:[%s8679_s1 + $0x60] sm:$0xff]  ;;  %v100_v18 = vperm.slane %v7110_v5, 1  ;;  %v102_v19 = vperm.slane %v7115_v6, 1 }
   0x6   :  { %264 = vmatpush.bf16.msra.mxu0 %v6581_v2  ;;  %v78_v17 = vsel %vm77_vm0, %v63_v11, %v61_v10  ;;  %v104_v20 = vperm.slane %v7123_v8, 1  ;;  %v7152_v21 = vld [vmem:[%s8678_s0 + $0x14] sm:$0xf]  ;;  %v106_v23 = vperm.slane %v7128_v9, 1 }
   0x7   :  { %278 = vmatpush.bf16.msra.mxu1 %v6589_v3  ;;  %v80_v22 = vsel %vm79_vm1, %v65_v12, %v78_v17 }
   0xa   :  { %265 = vmatpush.bf16.msra.mxu0 %v6580_v4 }
   0xb   :  { %279 = vmatpush.bf16.msra.mxu1 %v6588_v7 }
   0xc   :  { %17 = vsyncpa [#allocation3], 0  ;;  %v7159_v24 = vld [vmem:[%s8678_s0 + $0x18] sm:$0xf]  ;;  %v7164_v25 = vld [vmem:[%s8678_s0 + $0x1c] sm:$0xf]  ;;  %v116_v28 = vsel %vm77_vm0, %v102_v19, %v100_v18  ;;  %v82_v29 = vsel %vm81_vm2, %v67_v15, %v80_v22 }
   0xd   :  { %v69_v26 = vperm.slane %v7139_v14, 0  ;;  %v108_v27 = vperm.slane %v7139_v14, 1  ;;  %v117_v30 = vsel %vm79_vm1, %v104_v20, %v116_v28  ;;  %v62_v31 = vperm.slane %v7110_v5, 2  ;;  %v6578_v33 = vld [vmem:[%s8679_s1 + $0x18] sm:$0xff]  ;;  %v6577_v49 = vld [vmem:[%s8679_s1 + $0x10] sm:$0xff]  ;;  %v6576_v3 = vld [vmem:[%s8679_s1 + $0x8] sm:$0xff] }
   0xe   :  { %v64_v32 = vperm.slane %v7115_v6, 2  ;;  %266 = vmatpush.bf16.msra.mxu0 %v6579_v13  ;;  %v6586_v34 = vld [vmem:[%s8679_s1 + $0x58] sm:$0xff]  ;;  %vm87_vm5 = vcmask 1046534   ;;  %vm89_vm6 = vcmask 1047559   ;;  %v118_v35 = vsel %vm81_vm2, %v106_v23, %v117_v30  ;;  %v6585_v50 = vld [vmem:[%s8679_s1 + $0x50] sm:$0xff]  ;;  %v6584_v4 = vld [vmem:[%s8679_s1 + $0x48] sm:$0xff] }
   0xf   :  { %280 = vmatpush.bf16.msra.mxu1 %v6587_v16  ;;  %v66_v36 = vperm.slane %v7123_v8, 2  ;;  %v71_v37 = vperm.slane %v7152_v21, 0  ;;  %v73_v38 = vperm.slane %v7159_v24, 0  ;;  %v75_v39 = vperm.slane %v7164_v25, 0  ;;  %v6575_v15 = vld [vmem:[%s8679_s1] sm:$0xff]  ;;  %s7017_s0 = smov 120  }
  0x10   :  { %v68_v40 = vperm.slane %v7128_v9, 2  ;;  %v84_v41 = vsel %vm83_vm3, %v69_v26, %v82_v29  ;;  %v110_v42 = vperm.slane %v7152_v21, 1  ;;  %v119_v43 = vsel %vm83_vm3, %v108_v27, %v118_v35  ;;  %v6583_v16 = vld [vmem:[%s8679_s1 + $0x40] sm:$0xff]  ;;  %s7018_s19 = smov 112   ;;  %s7019_s20 = smov 104  }
  0x11   :  { %v70_v44 = vperm.slane %v7139_v14, 2  ;;  %v72_v45 = vperm.slane %v7152_v21, 2  ;;  %v91_v46 = vsel %vm77_vm0, %v64_v32, %v62_v31  ;;  %v101_v47 = vperm.slane %v7110_v5, 3  ;;  %v7243_v22 = vld [vmem:[%s8680_s2] sm:$0xff]  ;;  %s7020_s21 = smov 96   ;;  %s7021_s22 = smov 88  }
  0x12   :  { %v103_v48 = vperm.slane %v7115_v6, 3  ;;  %267 = vmatpush.bf16.msra.mxu0 %v6578_v33  ;;  %v112_v51 = vperm.slane %v7159_v24, 1  ;;  %v92_v52 = vsel %vm79_vm1, %v66_v36, %v91_v46  ;;  %v105_v53 = vperm.slane %v7123_v8, 3  ;;  %s7022_s23 = smov 8   ;;  %s7025_s16 = smov 32  }
  0x13   :  { %281 = vmatpush.bf16.msra.mxu1 %v6586_v34  ;;  %v107_v54 = vperm.slane %v7128_v9, 3  ;;  %v86_v55 = vsel %vm85_vm4, %v71_v37, %v84_v41  ;;  %v74_v56 = vperm.slane %v7159_v24, 2  ;;  %v93_v57 = vsel %vm81_vm2, %v68_v40, %v92_v52  ;;  %s7026_s17 = smov 2  }
  0x14   :  { %v109_v58 = vperm.slane %v7139_v14, 3  ;;  %v120_v59 = vsel %vm85_vm4, %v110_v42, %v119_v43  ;;  %v94_v60 = vsel %vm83_vm3, %v70_v44, %v93_v57  ;;  %v111_v61 = vperm.slane %v7152_v21, 3 }
  0x15   :  { %v123_v62 = vsel %vm77_vm0, %v103_v48, %v101_v47  ;;  %v114_v63 = vperm.slane %v7164_v25, 1  ;;  %v95_v0 = vsel %vm85_vm4, %v72_v45, %v94_v60  ;;  %v113_v1 = vperm.slane %v7159_v24, 3 }
  0x16   :  { %v124_v2 = vsel %vm79_vm1, %v105_v53, %v123_v62  ;;  %268 = vmatpush.bf16.msra.mxu0 %v6577_v49  ;;  %v88_v5 = vsel %vm87_vm5, %v73_v38, %v86_v55  ;;  %v76_v6 = vperm.slane %v7164_v25, 2  ;;  %v115_v7 = vperm.slane %v7164_v25, 3 }
  0x17   :  { %282 = vmatpush.bf16.msra.mxu1 %v6585_v50  ;;  %v125_v8 = vsel %vm81_vm2, %v107_v54, %v124_v2  ;;  %v121_v9 = vsel %vm87_vm5, %v112_v51, %v120_v59  ;;  %v96_v10 = vsel %vm87_vm5, %v74_v56, %v95_v0  ;;  %v90_v13 = vsel %vm89_vm6, %v75_v39, %v88_v5  ;;  %v6591_v51 = vld [vmem:[%s8681_s3] sm:$0xff] }
  0x18   :  { %v126_v11 = vsel %vm83_vm3, %v109_v58, %v125_v8  ;;  %v122_v17 = vsel %vm89_vm6, %v114_v63, %v121_v9  ;;  %v97_v18 = vsel %vm89_vm6, %v76_v6, %v96_v10  ;;  %v166_v23 = vperm.slane %v7243_v22, 0  ;;  %372 = vmatpush.bf16.msra.mxu2 %v6591_v51 }
  0x19   :  { %v127_v12 = vsel %vm85_vm4, %v111_v61, %v126_v11  ;;  %v132_v20 = vpack.c.bf16 %v122_v17, %v90_v13  ;;  %vm291_vm7 = vcmask 130048   ;;  %v7016_v34 = vmov 16.0   ;;  %v6924_v17 = vld [vmem:[%s8682_s4] ss:$0 sm:$0xff] }
  0x1a   :  { %v128_v14 = vsel %vm87_vm5, %v113_v1, %v127_v12  ;;  %269 = vmatpush.bf16.msra.mxu0 %v6576_v3  ;;  %6926 = vrcp.f32 %v7016_v34  ;;  %v346_v12 = vperm.slane %v7243_v22, 2  ;;  %vm382_vm15 = vcmask 64512  }
  0x1b   :  { %283 = vmatpush.bf16.msra.mxu1 %v6584_v4  ;;  %v129_v19 = vsel %vm89_vm6, %v115_v7, %v128_v14  ;;  %v343_v7 = vperm.slane %v7243_v22, 1 }
  0x1c   :  { %v133_v21 = vpack.c.bf16 %v129_v19, %v97_v18 }
  0x1e   :  { %270 = vmatpush.bf16.msra.mxu0 %v6575_v15 }
  0x1f   :  { %284 = vmatpush.bf16.msra.mxu1 %v6583_v16 }
  0x20   :  { %v6927_v35 = vpop.eup %6926 }
  0x21   :  { %271 = vmatmul.bf16.vlgmr.msra.gmra.mxu0 %v132_v20  ;;  %v299_v36 = vmul.f32 16.0, %v6927_v35  ;;  %vm303_vm8 = vweird.f32 %v6927_v35 }
  0x22   :  { %285 = vmatmul.bf16.vlgmr.msra.gmra.mxu1 %v133_v21 }
  0x23   :  { %v300_v37 = vsub.f32 1.0, %v299_v36 }
  0x25   :  { %v301_v38 = vmul.f32 %v6927_v35, %v300_v37 }
  0x27   :  { %v302_v39 = vadd.f32 %v6927_v35, %v301_v38 }
  0x29   :  { %v7248_v40 = vsel %vm303_vm8, %v6927_v35, %v302_v39 }
  0x9e   :  { %v272_v24 = vpop.f32.mrf.mxu0 }
  0x9f   :  { %v286_v25 = vpop.f32.mrf.mxu1  ;;  %v273_v26 = vadd.f32 %v272_v24, %v166_v23 }
  0xa1   :  { %v287_v27 = vadd.f32 %v286_v25, %v273_v26 }
  0xa3   :  { %v292_v28 = vsel %vm291_vm7, %v287_v27, 0.0 }
  0xa4   :  { %293 = vadd.xlane.f32.xlu0 %v292_v28 }
  0xa6   :  { %v274_v29 = vpop.f32.mrf.mxu0 }
  0xa7   :  { %v275_v30 = vadd.f32 %v274_v29, %v166_v23  ;;  %v288_v31 = vpop.f32.mrf.mxu1 }
  0xa9   :  { %v289_v32 = vadd.f32 %v288_v31, %v275_v30 }
  0xab   :  { %v295_v33 = vsel %vm291_vm7, %v289_v32, 0.0 }
  0xac   :  { %296 = vadd.xlane.f32.xlu0 %v295_v33 }
 0x117   :  { %v294_v41 = vpop.xlane.xlu0 %293 }
 0x118   :  { %v305_v42 = vmul.f32 %v7248_v40, %v294_v41 }
 0x11a   :  { %v307_v43 = vsub.f32 %v287_v27, %v305_v42 }
 0x11c   :  { %v309_v44 = vmul.f32 %v307_v43, %v307_v43 }
 0x11e   :  { %v311_v45 = vsel %vm291_vm7, %v309_v44, 0.0 }
 0x11f   :  { %312 = vadd.xlane.f32.xlu1 %v311_v45  ;;  %v297_v46 = vpop.xlane.xlu0 %296 }
 0x120   :  { %v306_v47 = vmul.f32 %v7248_v40, %v297_v46 }
 0x122   :  { %v308_v48 = vsub.f32 %v289_v32, %v306_v47 }
 0x124   :  { %v310_v49 = vmul.f32 %v308_v48, %v308_v48 }
 0x126   :  { %v314_v50 = vsel %vm291_vm7, %v310_v49, 0.0 }
 0x127   :  { %315 = vadd.xlane.f32.xlu1 %v314_v50 }
 0x192   :  { %v313_v52 = vpop.xlane.xlu1 %312 }
 0x193   :  { %v317_v53 = vmul.f32 %v313_v52, %v7248_v40 }
 0x195   :  { %v319_v54 = vadd.f32 1e-05, %v317_v53 }
 0x197   :  { %6928 = vrsqrt.f32 %v319_v54  ;;  %vm327_vm10 = vweird.f32 %v319_v54 }
 0x19a   :  { %v316_v55 = vpop.xlane.xlu1 %315 }
 0x19b   :  { %v318_v56 = vmul.f32 %v316_v55, %v7248_v40 }
 0x19d   :  { %v6929_v57 = vpop.eup %6928  ;;  %v320_v58 = vadd.f32 1e-05, %v318_v56 }
 0x19e   :  { %v322_v59 = vmul.f32 %v6929_v57, %v319_v54  ;;  %vm328_vm9 = vweird.f32 %v6929_v57 }
 0x19f   :  { %6930 = vrsqrt.f32 %v320_v58  ;;  %vm329_vm11 = vmor %vm327_vm10, %vm328_vm9  ;;  %vm337_vm13 = vweird.f32 %v320_v58 }
 0x1a0   :  { %v323_v60 = vmul.f32 %v6929_v57, %v322_v59 }
 0x1a2   :  { %v324_v61 = vmul.f32 0.5, %v323_v60 }
 0x1a4   :  { %v325_v62 = vsub.f32 1.5, %v324_v61 }
 0x1a5   :  { %v6931_v63 = vpop.eup %6930 }
 0x1a6   :  { %v326_v0 = vmul.f32 %v6929_v57, %v325_v62  ;;  %v332_v1 = vmul.f32 %v6931_v63, %v320_v58  ;;  %vm338_vm12 = vweird.f32 %v6931_v63 }
 0x1a7   :  { %vm339_vm14 = vmor %vm337_vm13, %vm338_vm12 }
 0x1a8   :  { %v333_v2 = vmul.f32 %v6931_v63, %v332_v1  ;;  %v330_v3 = vsel %vm329_vm11, %v6929_v57, %v326_v0 }
 0x1a9   :  { %v341_v6 = vmul.f32 %v330_v3, %v307_v43 }
 0x1aa   :  { %v334_v4 = vmul.f32 0.5, %v333_v2 }
 0x1ab   :  { %v344_v11 = vmul.f32 %v343_v7, %v341_v6 }
 0x1ac   :  { %v335_v5 = vsub.f32 1.5, %v334_v4 }
 0x1ad   :  { %v7261_v14 = vadd.f32 %v346_v12, %v344_v11 }
 0x1ae   :  { %v336_v8 = vmul.f32 %v6931_v63, %v335_v5 }
 0x1b0   :  { %v340_v9 = vsel %vm339_vm14, %v6931_v63, %v336_v8 }
 0x1b1   :  { %v342_v10 = vmul.f32 %v340_v9, %v308_v48 }
 0x1b3   :  { %v345_v13 = vmul.f32 %v343_v7, %v342_v10 }
 0x1b5   :  { %v7263_v15 = vadd.f32 %v346_v12, %v345_v13 }
 0x1b7   :  { %v7267_v16 = vpack.c.bf16 %v7263_v15, %v7261_v14 }
 0x1b9   :  { %4988 = vmatmul.msk.bf16.vlgmr.msra.gmra.mxu2 %vm291_vm7, %v7267_v16 }
 0x23c   :  { %v374_v18 = vpop.f32.mrf.mxu2 }
 0x23d   :  { %v7274_v19 = vadd.f32 %v6924_v17, %v374_v18  ;;  %v6592_v18 = vld [vmem:[%s8683_s5] sm:$0xff] }
 0x23f   :  { %444 = vrot.lane.b32.xlu0 %v7274_v19, %s7017_s0  ;;  %380 = vrot.lane.b32.xlu2 %v7274_v19, %s7018_s19 }
 0x244   :  { %v376_v20 = vpop.f32.mrf.mxu2 }
 0x245   :  { %v7280_v21 = vadd.f32 %v6924_v17, %v376_v20 }
 0x247   :  { %515 = vrot.lane.b32.xlu1 %v7280_v21, %s7018_s19  ;;  %446 = vrot.lane.b32.xlu2 %v7274_v19, %s7019_s20 }
 0x24f   :  { %580 = vrot.lane.b32.xlu2 %v7280_v21, %s7019_s20 }
 0x257   :  { %578 = vrot.lane.b32.xlu2 %v7280_v21, %s7017_s0 }
 0x299   :  { %v381_v23 = vpop.permute.xlu2 %380 }
 0x29a   :  { %4989 = vmatpush.xpose.msk.msrb.mxu2 %vm382_vm15, %v381_v23 }
 0x29d   :  { %4990 = vmatmul.msk.f32.vlgmr.msrb.gmra.mxu2 %vm382_vm15, %v7274_v19 }
 0x2a1   :  { %v447_v24 = vpop.permute.xlu2 %446 }
 0x2a2   :  { %4992 = vmatpush.xpose.msk.msra.mxu2 %vm382_vm15, %v447_v24 }
 0x2a9   :  { %v581_v27 = vpop.permute.xlu2 %580 }
 0x2b1   :  { %v445_v25 = vpop.permute.xlu0 %444  ;;  %v579_v28 = vpop.permute.xlu2 %578 }
 0x2b2   :  { %4993 = vmatmul.msk.f32.vlgmr.msra.gmra.mxu2 %vm382_vm15, %v445_v25 }
 0x2b9   :  { %v516_v26 = vpop.permute.xlu1 %515 }
 0x2ba   :  { %4995 = vmatpush.xpose.msk.msrb.mxu2 %vm382_vm15, %v516_v26  ;;  %v651_v26 = vperm.slane %v7243_v22, 3 }
 0x2bd   :  { %4996 = vmatmul.msk.f32.vlgmr.msrb.gmra.mxu2 %vm382_vm15, %v7280_v21 }
 0x2be   :  { %4998 = vmatpush.xpose.msk.msra.mxu2 %vm382_vm15, %v581_v27 }
 0x2c2   :  { %668 = vmatpush.bf16.msrb.mxu2 %v6592_v18 }
 0x2c5   :  { %4999 = vmatmul.msk.f32.vlgmr.msra.gmra.mxu2 %vm382_vm15, %v579_v28 }
 0x320   :  { %v404_v29 = vpop.f32.mrf.mxu2 }
 0x321   :  { %v407_v30 = vsel %vm382_vm15, %v404_v29, -inf }
 0x322   :  { %408 = vmax.xlane.f32.xlu2 %v407_v30 }
 0x335   :  { %v469_v31 = vpop.f32.mrf.mxu2 }
 0x336   :  { %v472_v32 = vsel %vm382_vm15, %v469_v31, -inf }
 0x337   :  { %473 = vmax.xlane.f32.xlu0 %v472_v32 }
 0x340   :  { %v538_v33 = vpop.f32.mrf.mxu2 }
 0x341   :  { %v541_v34 = vsel %vm382_vm15, %v538_v33, -inf }
 0x342   :  { %542 = vmax.xlane.f32.xlu1 %v541_v34 }
 0x348   :  { %v603_v35 = vpop.f32.mrf.mxu2 }
 0x349   :  { %v606_v36 = vsel %vm382_vm15, %v603_v35, -inf }
 0x34a   :  { %607 = vmax.xlane.f32.xlu2 %v606_v36 }
 0x35b   :  { %418 = vrot.lane.b32.xlu1 %v7274_v19, %s7020_s21 }
 0x363   :  { %617 = vrot.lane.b32.xlu1 %v7280_v21, %s7021_s22 }
 0x395   :  { %v409_v37 = vpop.xlane.xlu2 %408 }
 0x396   :  { %v410_v38 = vsub.f32 %v404_v29, %v409_v37 }
 0x398   :  { %v411_v39 = vmul.f32 1.442695, %v410_v38 }
 0x39a   :  { %6932 = vpow2.f32 %v411_v39 }
 0x3a0   :  { %v6933_v41 = vpop.eup %6932 }
 0x3a1   :  { %v413_v42 = vsel %vm382_vm15, %v6933_v41, 0.0 }
 0x3a2   :  { %414 = vadd.xlane.f32.xlu0 %v413_v42 }
 0x3aa   :  { %v474_v43 = vpop.xlane.xlu0 %473 }
 0x3ab   :  { %v475_v44 = vsub.f32 %v469_v31, %v474_v43 }
 0x3ad   :  { %v476_v45 = vmul.f32 1.442695, %v475_v44 }
 0x3af   :  { %6934 = vpow2.f32 %v476_v45 }
 0x3b5   :  { %v6935_v46 = vpop.eup %6934  ;;  %v543_v47 = vpop.xlane.xlu1 %542 }
 0x3b6   :  { %v544_v48 = vsub.f32 %v538_v33, %v543_v47  ;;  %v478_v49 = vsel %vm382_vm15, %v6935_v46, 0.0  ;;  %v6601_v47 = vld [vmem:[%s8684_s6 + $0x3c] sm:$0xf0] }
 0x3b7   :  { %479 = vadd.xlane.f32.xlu2 %v478_v49 }
 0x3b8   :  { %v545_v50 = vmul.f32 1.442695, %v544_v48  ;;  %v6593_v48 = vld [vmem:[%s8684_s6 + $0x4] sm:$0xf] }
 0x3ba   :  { %6936 = vpow2.f32 %v545_v50 }
 0x3bd   :  { %v608_v51 = vpop.xlane.xlu2 %607 }
 0x3be   :  { %v609_v52 = vsub.f32 %v603_v35, %v608_v51  ;;  %v5010_v51 = vld [vmem:[%s8684_s6 + $0x40] sm:$0xf0] }
 0x3c0   :  { %v6937_v53 = vpop.eup %6936  ;;  %v610_v54 = vmul.f32 1.442695, %v609_v52  ;;  %v6594_v52 = vld [vmem:[%s8684_s6 + $0xc] sm:$0xf] }
 0x3c1   :  { %v547_v55 = vsel %vm382_vm15, %v6937_v53, 0.0 }
 0x3c2   :  { %6938 = vpow2.f32 %v610_v54  ;;  %548 = vadd.xlane.f32.xlu0 %v547_v55  ;;  %v5018_v54 = vld [vmem:[%s8684_s6 + $0x48] sm:$0xf0]  ;;  %v6595_v55 = vld [vmem:[%s8684_s6 + $0x14] sm:$0xf] }
 0x3c8   :  { %v6939_v56 = vpop.eup %6938 }
 0x3c9   :  { %v612_v57 = vsel %vm382_vm15, %v6939_v56, 0.0 }
 0x3ca   :  { %613 = vadd.xlane.f32.xlu0 %v612_v57  ;;  %v5021_v57 = vor.u32 %v6594_v52, %v5018_v54  ;;  %v5066_v52 = vld [vmem:[%s8684_s6 + $0x78] sm:$0xf0] }
 0x3cc   :  { %912 = vmatpush.bf16.msra.mxu2 %v5021_v57  ;;  %v6608_v57 = vld [vmem:[%s8684_s6 + $0x74] sm:$0xf0] }
 0x3cd   :  { %v419_v58 = vpop.permute.xlu1 %418 }
 0x3ce   :  { %439 = vmatpush.msra.mxu3 %v419_v58 }
 0x3cf   :  { %483 = vrot.lane.b32.xlu2 %v7274_v19, %s7021_s22 }
 0x3d5   :  { %v618_v7 = vpop.permute.xlu1 %617 }
 0x3de   :  { %552 = vrot.lane.b32.xlu0 %v7280_v21, %s7020_s21 }
 0x415   :  { %v415_v59 = vpop.xlane.xlu0 %414 }
 0x416   :  { %6940 = vrcp.f32 %v415_v59 }
 0x41c   :  { %v6941_v60 = vpop.eup %6940 }
 0x41d   :  { %v417_v61 = vmul.f32 %v6941_v60, %v6933_v41  ;;  %v5016_v60 = vld [vmem:[%s8684_s6 + $0x8] sm:$0xf] }
 0x41f   :  { %4991 = vmatmul.msk.f32.vlgmr.msra.gmra.mxu3 %vm382_vm15, %v417_v61  ;;  %v6602_v61 = vld [vmem:[%s8684_s6 + $0x44] sm:$0xf0] }
 0x42a   :  { %v480_v62 = vpop.xlane.xlu2 %479 }
 0x42b   :  { %6942 = vrcp.f32 %v480_v62  ;;  %v5024_v62 = vld [vmem:[%s8684_s6 + $0x10] sm:$0xf] }
 0x431   :  { %v6943_v63 = vpop.eup %6942 }
 0x432   :  { %v484_v0 = vpop.permute.xlu2 %483  ;;  %v482_v1 = vmul.f32 %v6943_v63, %v6935_v46  ;;  %v5008_v46 = vld [vmem:[%s8684_s6] sm:$0xf] }
 0x433   :  { %504 = vmatpush.msrb.mxu3 %v484_v0  ;;  %v5009_v50 = vor.u32 %v6601_v47, %v5008_v46  ;;  %v5017_v0 = vor.u32 %v6602_v61, %v5016_v60  ;;  %v5048_v47 = vld [vmem:[%s8684_s6 + $0x28] sm:$0xf]  ;;  %v6616_v60 = vld [vmem:[%s8686_s8 + $0x38] sm:$0xff] }
 0x434   :  { %4994 = vmatmul.msk.f32.vlgmr.msrb.gmra.mxu3 %vm382_vm15, %v482_v1  ;;  %v6603_v1 = vld [vmem:[%s8684_s6 + $0x4c] sm:$0xf0]  ;;  %v6640_v61 = vld [vmem:[%s8686_s8 + $0xf8] sm:$0xff] }
 0x435   :  { %v549_v2 = vpop.xlane.xlu0 %548 }
 0x436   :  { %6944 = vrcp.f32 %v549_v2  ;;  %v6596_v2 = vld [vmem:[%s8684_s6 + $0x1c] sm:$0xf] }
 0x43c   :  { %v6945_v4 = vpop.eup %6944 }
 0x43d   :  { %v614_v3 = vpop.xlane.xlu0 %613  ;;  %v551_v5 = vmul.f32 %v6945_v4, %v6937_v53  ;;  %v5013_v53 = vor.u32 %v6593_v48, %v5010_v51  ;;  %v5025_v4 = vor.u32 %v6603_v1, %v5024_v62  ;;  %v6606_v48 = vld [vmem:[%s8684_s6 + $0x64] sm:$0xf0]  ;;  %v6600_v51 = vld [vmem:[%s8684_s6 + $0x3c] sm:$0xf]  ;;  %v6623_v62 = vld [vmem:[%s8686_s8 + $0x70] sm:$0xff] }
 0x43e   :  { %6946 = vrcp.f32 %v614_v3  ;;  %v5034_v3 = vld [vmem:[%s8684_s6 + $0x58] sm:$0xf0]  ;;  %v6622_v1 = vld [vmem:[%s8686_s8 + $0x68] sm:$0xff] }
 0x43f   :  { %884 = vmatpush.bf16.msrb.mxu1 %v5013_v53  ;;  %v5049_v53 = vor.u32 %v6606_v48, %v5048_v47  ;;  %v6644_v47 = vld [vmem:[%s8686_s8 + $0x118] sm:$0xff] }
 0x440   :  { %v6668_v48 = vld [vmem:[%s8686_s8 + $0x1d8] sm:$0xff] }
 0x443   :  { %898 = vmatpush.bf16.msra.mxu1 %v5017_v0  ;;  %v6639_v0 = vld [vmem:[%s8686_s8 + $0xf0] sm:$0xff] }
 0x444   :  { %v6947_v8 = vpop.eup %6946 }
 0x445   :  { %v616_v9 = vmul.f32 %v6947_v8, %v6939_v56  ;;  %v5026_v56 = vld [vmem:[%s8684_s6 + $0x50] sm:$0xf0] }
 0x446   :  { %v5029_v58 = vor.u32 %v6595_v55, %v5026_v56  ;;  %v5069_v55 = vor.u32 %v6600_v51, %v5066_v52  ;;  %v5064_v56 = vld [vmem:[%s8684_s6 + $0x38] sm:$0xf]  ;;  %v6643_v51 = vld [vmem:[%s8686_s8 + $0x110] sm:$0xff] }
 0x447   :  { %v6667_v52 = vld [vmem:[%s8686_s8 + $0x1d0] sm:$0xff] }
 0x448   :  { %940 = vmatpush.bf16.msrb.mxu0 %v5029_v58  ;;  %v5065_v58 = vor.u32 %v6608_v57, %v5064_v56  ;;  %v6666_v56 = vld [vmem:[%s8686_s8 + $0x1c8] sm:$0xff]  ;;  %v6660_v57 = vld [vmem:[%s8686_s8 + $0x198] sm:$0xff] }
 0x450   :  { %v553_v6 = vpop.permute.xlu0 %552 }
 0x451   :  { %573 = vmatpush.msra.mxu3 %v553_v6  ;;  %v6597_v6 = vld [vmem:[%s8684_s6 + $0x24] sm:$0xf] }
 0x452   :  { %4997 = vmatmul.msk.f32.vlgmr.msra.gmra.mxu3 %vm382_vm15, %v551_v5  ;;  %v5037_v5 = vor.u32 %v6596_v2, %v5034_v3  ;;  %v6614_v2 = vld [vmem:[%s8686_s8 + $0x28] sm:$0xff] }
 0x453   :  { %638 = vmatpush.msrb.mxu3 %v618_v7  ;;  %v5042_v7 = vld [vmem:[%s8684_s6 + $0x60] sm:$0xf0]  ;;  %v6638_v3 = vld [vmem:[%s8686_s8 + $0xe8] sm:$0xff] }
 0x455   :  { %870 = vmatpush.bf16.msra.mxu3 %v5009_v50  ;;  %v6607_v50 = vld [vmem:[%s8684_s6 + $0x6c] sm:$0xf0] }
 0x45a   :  { %5000 = vmatmul.msk.f32.vlgmr.msrb.gmra.mxu3 %vm382_vm15, %v616_v9 }
 0x45b   :  { %926 = vmatpush.bf16.msrb.mxu3 %v5025_v4  ;;  %v6621_v4 = vld [vmem:[%s8686_s8 + $0x60] sm:$0xff] }
 0x4a2   :  { %v441_v10 = vpop.f32.mrf.mxu3 }
 0x4b7   :  { %v506_v11 = vpop.f32.mrf.mxu3 }
 0x4d5   :  { %v575_v12 = vpop.f32.mrf.mxu3 }
 0x4dd   :  { %v640_v13 = vpop.f32.mrf.mxu3 }
 0x4de   :  { %v6914_v17 = vpack.i.bf16 %v640_v13, %v506_v11 }
 0x4e0   :  { %6915 = vrot.lane.b32.xlu2 %v6914_v17, %s7022_s23 }
 0x53a   :  { %v6916_v19 = vpop.permute.xlu2 %6915 }
 0x53b   :  { %v6918_v20 = vunpack.i.h.bf16 %v6916_v19  ;;  %v6917_v21 = vunpack.i.l.bf16 %v6916_v19 }
 0x53d   :  { %v647_v23 = vsel %vm382_vm15, %v575_v12, %v6918_v20  ;;  %v513_v24 = vsel %vm382_vm15, %v441_v10, %v6917_v21  ;;  %v5045_v10 = vor.u32 %v6597_v6, %v5042_v7  ;;  %v6637_v6 = vld [vmem:[%s8686_s8 + $0xe0] sm:$0xff]  ;;  %v6632_v7 = vld [vmem:[%s8686_s8 + $0xb8] sm:$0xff] }
 0x53e   :  { %v648_v25 = vpack.c.bf16 %v647_v23, %v513_v24 }
 0x53f   :  { %996 = vmatpush.bf16.msra.mxu0 %v5045_v10  ;;  %v6636_v10 = vld [vmem:[%s8686_s8 + $0xd8] sm:$0xff] }
 0x540   :  { %5005 = vmatmul.msk.bf16.vlgmr.msrb.gmra.mxu2 %vm291_vm7, %v648_v25 }
 0x541   :  { %968 = vmatpush.bf16.msrb.mxu2 %v5037_v5  ;;  %v6613_v5 = vld [vmem:[%s8686_s8 + $0x20] sm:$0xff] }
 0x5c3   :  { %v670_v27 = vpop.f32.mrf.mxu2 }
 0x5c4   :  { %v671_v28 = vadd.f32 %v670_v27, %v651_v26 }
 0x5c6   :  { %v675_v29 = vadd.f32 %v671_v28, %v7261_v14 }
 0x5c8   :  { %v677_v30 = vsel %vm291_vm7, %v675_v29, 0.0 }
 0x5c9   :  { %678 = vadd.xlane.f32.xlu1 %v677_v30  ;;  %v724_v30 = vperm.slane %v7243_v22, 5 }
 0x5cb   :  { %v672_v31 = vpop.f32.mrf.mxu2 }
 0x5cc   :  { %v673_v32 = vadd.f32 %v672_v31, %v651_v26  ;;  %v721_v26 = vperm.slane %v7243_v22, 4  ;;  %v6605_v22 = vld [vmem:[%s8684_s6 + $0x5c] sm:$0xf0] }
 0x5ce   :  { %v676_v33 = vadd.f32 %v673_v32, %v7263_v15 }
 0x5d0   :  { %v680_v34 = vsel %vm291_vm7, %v676_v33, 0.0 }
 0x5d1   :  { %681 = vadd.xlane.f32.xlu2 %v680_v34  ;;  %v5032_v34 = vld [vmem:[%s8684_s6 + $0x18] sm:$0xf] }
 0x63c   :  { %v679_v35 = vpop.xlane.xlu1 %678 }
 0x63d   :  { %v683_v36 = vmul.f32 %v679_v35, %v7248_v40  ;;  %v6604_v35 = vld [vmem:[%s8684_s6 + $0x54] sm:$0xf0] }
 0x63f   :  { %v7333_v37 = vsub.f32 %v675_v29, %v683_v36  ;;  %v5040_v36 = vld [vmem:[%s8684_s6 + $0x20] sm:$0xf] }
 0x641   :  { %v687_v38 = vmul.f32 %v7333_v37, %v7333_v37 }
 0x643   :  { %v689_v14 = vsel %vm291_vm7, %v687_v38, 0.0 }
 0x644   :  { %v682_v39 = vpop.xlane.xlu2 %681  ;;  %690 = vadd.xlane.f32.xlu0 %v689_v14 }
 0x645   :  { %v684_v41 = vmul.f32 %v682_v39, %v7248_v40  ;;  %v5050_v39 = vld [vmem:[%s8684_s6 + $0x68] sm:$0xf0] }
 0x647   :  { %v7339_v42 = vsub.f32 %v676_v33, %v684_v41  ;;  %v6599_v41 = vld [vmem:[%s8684_s6 + $0x34] sm:$0xf] }
 0x649   :  { %v688_v15 = vmul.f32 %v7339_v42, %v7339_v42 }
 0x64b   :  { %v692_v43 = vsel %vm291_vm7, %v688_v15, 0.0 }
 0x64c   :  { %693 = vadd.xlane.f32.xlu1 %v692_v43  ;;  %v5033_v43 = vor.u32 %v6604_v35, %v5032_v34  ;;  %v6671_v34 = vld [vmem:[%s8686_s8 + $0x1f0] sm:$0xff]  ;;  %v6654_v35 = vld [vmem:[%s8686_s8 + $0x168] sm:$0xff] }
 0x6b7   :  { %v691_v44 = vpop.xlane.xlu0 %690 }
 0x6b8   :  { %v695_v45 = vmul.f32 %v691_v44, %v7248_v40  ;;  %v5041_v44 = vor.u32 %v6605_v22, %v5040_v36  ;;  %v6626_v36 = vld [vmem:[%s8686_s8 + $0x88] sm:$0xff]  ;;  %v6653_v22 = vld [vmem:[%s8686_s8 + $0x160] sm:$0xff] }
 0x6ba   :  { %v697_v49 = vadd.f32 1e-05, %v695_v45 }
 0x6bc   :  { %6948 = vrsqrt.f32 %v697_v49  ;;  %vm705_vm1 = vweird.f32 %v697_v49 }
 0x6bf   :  { %v694_v59 = vpop.xlane.xlu1 %693 }
 0x6c0   :  { %v696_v63 = vmul.f32 %v694_v59, %v7248_v40  ;;  %v6624_v59 = vld [vmem:[%s8686_s8 + $0x78] sm:$0xff] }
 0x6c2   :  { %v6949_v8 = vpop.eup %6948  ;;  %v698_v9 = vadd.f32 1e-05, %v696_v63  ;;  %v6615_v63 = vld [vmem:[%s8686_s8 + $0x30] sm:$0xff] }
 0x6c3   :  { %v700_v11 = vmul.f32 %v6949_v8, %v697_v49  ;;  %vm706_vm0 = vweird.f32 %v6949_v8  ;;  %v5056_v49 = vld [vmem:[%s8684_s6 + $0x30] sm:$0xf] }
 0x6c4   :  { %6950 = vrsqrt.f32 %v698_v9  ;;  %vm707_vm2 = vmor %vm705_vm1, %vm706_vm0  ;;  %vm715_vm4 = vweird.f32 %v698_v9  ;;  %v5057_v54 = vor.u32 %v6607_v50, %v5056_v49  ;;  %v6650_v49 = vld [vmem:[%s8686_s8 + $0x148] sm:$0xff] }
 0x6c5   :  { %v701_v12 = vmul.f32 %v6949_v8, %v700_v11  ;;  %v6631_v11 = vld [vmem:[%s8686_s8 + $0xb0] sm:$0xff]  ;;  %v6662_v50 = vld [vmem:[%s8686_s8 + $0x1a8] sm:$0xff] }
 0x6c7   :  { %v702_v13 = vmul.f32 0.5, %v701_v12  ;;  %v6619_v12 = vld [vmem:[%s8686_s8 + $0x50] sm:$0xff] }
 0x6c9   :  { %v703_v17 = vsub.f32 1.5, %v702_v13  ;;  %v6611_v13 = vld [vmem:[%s8686_s8 + $0x10] sm:$0xff] }
 0x6ca   :  { %v6951_v18 = vpop.eup %6950 }
 0x6cb   :  { %v704_v19 = vmul.f32 %v6949_v8, %v703_v17  ;;  %v710_v20 = vmul.f32 %v6951_v18, %v698_v9  ;;  %vm716_vm3 = vweird.f32 %v6951_v18  ;;  %v6612_v9 = vld [vmem:[%s8686_s8 + $0x18] sm:$0xff]  ;;  %v6635_v17 = vld [vmem:[%s8686_s8 + $0xd0] sm:$0xff] }
 0x6cc   :  { %vm717_vm5 = vmor %vm715_vm4, %vm716_vm3 }
 0x6cd   :  { %v711_v21 = vmul.f32 %v6951_v18, %v710_v20  ;;  %v708_v23 = vsel %vm707_vm2, %v6949_v8, %v704_v19  ;;  %v6620_v8 = vld [vmem:[%s8686_s8 + $0x58] sm:$0xff]  ;;  %v6618_v19 = vld [vmem:[%s8686_s8 + $0x48] sm:$0xff] }
 0x6ce   :  { %v719_v27 = vmul.f32 %v708_v23, %v7333_v37  ;;  %v6598_v37 = vld [vmem:[%s8684_s6 + $0x2c] sm:$0xf]  ;;  %v6629_v23 = vld [vmem:[%s8686_s8 + $0xa0] sm:$0xff] }
 0x6cf   :  { %v712_v24 = vmul.f32 0.5, %v711_v21  ;;  %v5053_v45 = vor.u32 %v6598_v37, %v5050_v39  ;;  %v6610_v20 = vld [vmem:[%s8686_s8 + $0x8] sm:$0xff] }
 0x6d0   :  { %v722_v31 = vmul.f32 %v721_v26, %v719_v27  ;;  %v6634_v21 = vld [vmem:[%s8686_s8 + $0xc8] sm:$0xff]  ;;  %v6633_v27 = vld [vmem:[%s8686_s8 + $0xc0] sm:$0xff] }
 0x6d1   :  { %v713_v25 = vsub.f32 1.5, %v712_v24  ;;  %v6617_v24 = vld [vmem:[%s8686_s8 + $0x40] sm:$0xff]  ;;  %v6646_v37 = vld [vmem:[%s8686_s8 + $0x128] sm:$0xff] }
 0x6d2   :  { %v7413_v38 = vadd.f32 %v724_v30, %v722_v31  ;;  %v6655_v31 = vld [vmem:[%s8686_s8 + $0x170] sm:$0xff]  ;;  %v6670_v39 = vld [vmem:[%s8686_s8 + $0x1e8] sm:$0xff] }
 0x6d3   :  { %v714_v28 = vmul.f32 %v6951_v18, %v713_v25  ;;  %v6656_v25 = vld [vmem:[%s8686_s8 + $0x178] sm:$0xff] }
 0x6d5   :  { %v718_v29 = vsel %vm717_vm5, %v6951_v18, %v714_v28  ;;  %v6630_v18 = vld [vmem:[%s8686_s8 + $0xa8] sm:$0xff]  ;;  %v6628_v28 = vld [vmem:[%s8686_s8 + $0x98] sm:$0xff] }
 0x6d6   :  { %v720_v32 = vmul.f32 %v718_v29, %v7339_v42  ;;  %v5058_v42 = vld [vmem:[%s8684_s6 + $0x70] sm:$0xf0]  ;;  %v6648_v29 = vld [vmem:[%s8686_s8 + $0x138] sm:$0xff] }
 0x6d7   :  { %v5061_v46 = vor.u32 %v6599_v41, %v5058_v42  ;;  %v6625_v41 = vld [vmem:[%s8686_s8 + $0x80] sm:$0xff]  ;;  %v6652_v42 = vld [vmem:[%s8686_s8 + $0x158] sm:$0xff] }
 0x6d8   :  { %v723_v33 = vmul.f32 %v721_v26, %v720_v32  ;;  %v6609_v26 = vld [vmem:[%s8686_s8] sm:$0xff]  ;;  %v6627_v32 = vld [vmem:[%s8686_s8 + $0x90] sm:$0xff] }
 0x6da   :  { %v7415_v14 = vadd.f32 %v724_v30, %v723_v33  ;;  %v6672_v30 = vld [vmem:[%s8686_s8 + $0x1f8] sm:$0xff]  ;;  %v6647_v33 = vld [vmem:[%s8686_s8 + $0x130] sm:$0xff] }
 0x6dc   :  { %v7428_v15 = vpack.c.bf16 %v7415_v14, %v7413_v38 }
 0x6de   :  { %5070 = vmatmul.msk.bf16.vlgmr.msra.gmra.mxu3 %vm291_vm7, %v7428_v15  ;;  %5071 = vmatmul.msk.bf16.vlgmr.msrb.gmra.mxu1 %vm291_vm7, %v7428_v15 }
 0x6df   :  { %5073 = vmatmul.msk.bf16.vlgmr.msra.gmra.mxu2 %vm291_vm7, %v7428_v15  ;;  %5075 = vmatmul.msk.bf16.vlgmr.msrb.gmra.mxu0 %vm291_vm7, %v7428_v15 }
 0x6e0   :  { %954 = vmatpush.bf16.msrb.mxu1 %v5033_v43  ;;  %982 = vmatpush.bf16.msra.mxu3 %v5041_v44  ;;  %v6645_v43 = vld [vmem:[%s8686_s8 + $0x120] sm:$0xff] }
 0x6e1   :  { %1024 = vmatpush.bf16.msra.mxu2 %v5053_v45  ;;  %1052 = vmatpush.bf16.msrb.mxu0 %v5061_v46  ;;  %v6669_v44 = vld [vmem:[%s8686_s8 + $0x1e0] sm:$0xff]  ;;  %v6651_v45 = vld [vmem:[%s8686_s8 + $0x150] sm:$0xff] }
 0x6e2   :  { %v6663_v46 = vld [vmem:[%s8686_s8 + $0x1b0] sm:$0xff] }
 0x6ee   :  { %5072 = vmatmul.msk.bf16.vlgmr.msra.gmra.mxu1 %vm291_vm7, %v7428_v15  ;;  %5074 = vmatmul.msk.bf16.vlgmr.msrb.gmra.mxu3 %vm291_vm7, %v7428_v15 }
 0x6ef   :  { %5077 = vmatmul.msk.bf16.vlgmr.msrb.gmra.mxu2 %vm291_vm7, %v7428_v15  ;;  %5079 = vmatmul.msk.bf16.vlgmr.msra.gmra.mxu0 %vm291_vm7, %v7428_v15 }
 0x6f0   :  { %1010 = vmatpush.bf16.msra.mxu1 %v5049_v53  ;;  %1038 = vmatpush.bf16.msrb.mxu3 %v5057_v54  ;;  %v6649_v53 = vld [vmem:[%s8686_s8 + $0x140] sm:$0xff] }
 0x6f1   :  { %1080 = vmatpush.bf16.msrb.mxu2 %v5069_v55  ;;  %2174 = vmatpush.bf16.msra.mxu0 %v6624_v59  ;;  %v6661_v54 = vld [vmem:[%s8686_s8 + $0x1a0] sm:$0xff]  ;;  %v6642_v55 = vld [vmem:[%s8686_s8 + $0x108] sm:$0xff] }
 0x6f2   :  { %v6665_v59 = vld [vmem:[%s8686_s8 + $0x1c0] sm:$0xff] }
 0x6f5   :  { %2175 = vmatpush.bf16.msra.mxu0 %v6623_v62  ;;  %v6657_v62 = vld [vmem:[%s8686_s8 + $0x180] sm:$0xff] }
 0x6f9   :  { %2176 = vmatpush.bf16.msra.mxu0 %v6622_v1 }
 0x6fd   :  { %2177 = vmatpush.bf16.msra.mxu0 %v6621_v4 }
 0x6fe   :  { %5076 = vmatmul.msk.bf16.vlgmr.msrb.gmra.mxu1 %vm291_vm7, %v7428_v15  ;;  %5078 = vmatmul.msk.bf16.vlgmr.msra.gmra.mxu3 %vm291_vm7, %v7428_v15 }
 0x6ff   :  { %5081 = vmatmul.msk.bf16.vlgmr.msra.gmra.mxu2 %vm291_vm7, %v7428_v15  ;;  %5083 = vmatmul.msk.bf16.vlgmr.msrb.gmra.mxu0 %vm291_vm7, %v7428_v15 }
 0x700   :  { %1066 = vmatpush.bf16.msrb.mxu1 %v5065_v58  ;;  %2160 = vmatpush.bf16.msra.mxu3 %v6616_v60  ;;  %v6641_v58 = vld [vmem:[%s8686_s8 + $0x100] sm:$0xff]  ;;  %v6659_v60 = vld [vmem:[%s8686_s8 + $0x190] sm:$0xff] }
 0x701   :  { %2202 = vmatpush.bf16.msra.mxu2 %v6640_v61  ;;  %2178 = vmatpush.bf16.msra.mxu0 %v6620_v8  ;;  %v6658_v61 = vld [vmem:[%s8686_s8 + $0x188] sm:$0xff] }
 0x704   :  { %2161 = vmatpush.bf16.msra.mxu3 %v6615_v63  ;;  %v7681_v63 = vld [vmem:[%s8685_s7] sm:$0xff] }
 0x705   :  { %2203 = vmatpush.bf16.msra.mxu2 %v6639_v0  ;;  %2179 = vmatpush.bf16.msra.mxu0 %v6619_v12  ;;  %v749_v1 = vperm.slane %v7681_v63, 1  ;;  %v6688_v12 = vld [vmem:[%s8686_s8 + $0x278] sm:$0xff] }
 0x708   :  { %2162 = vmatpush.bf16.msra.mxu3 %v6614_v2 }
 0x709   :  { %2204 = vmatpush.bf16.msra.mxu2 %v6638_v3  ;;  %2180 = vmatpush.bf16.msra.mxu0 %v6618_v19 }
 0x70c   :  { %2163 = vmatpush.bf16.msra.mxu3 %v6613_v5 }
 0x70d   :  { %2205 = vmatpush.bf16.msra.mxu2 %v6637_v6  ;;  %2181 = vmatpush.bf16.msra.mxu0 %v6617_v24 }
 0x70e   :  { %5080 = vmatmul.msk.bf16.vlgmr.msra.gmra.mxu1 %vm291_vm7, %v7428_v15  ;;  %5082 = vmatmul.msk.bf16.vlgmr.msrb.gmra.mxu3 %vm291_vm7, %v7428_v15 }
 0x70f   :  { %5085 = vmatmul.msk.bf16.vlgmr.msrb.gmra.mxu2 %vm291_vm7, %v7428_v15  ;;  %2188 = vmatpush.bf16.msra.mxu1 %v6632_v7  ;;  %v748_v7 = vperm.slane %v7681_v63, 0 }
 0x710   :  { %2164 = vmatpush.bf16.msra.mxu3 %v6612_v9  ;;  %v751_v9 = vperm.slane %v7681_v63, 3 }
 0x711   :  { %2206 = vmatpush.bf16.msra.mxu2 %v6636_v10  ;;  %2230 = vmatpush.bf16.msrb.mxu0 %v6656_v25 }
 0x713   :  { %2189 = vmatpush.bf16.msra.mxu1 %v6631_v11 }
 0x714   :  { %2165 = vmatpush.bf16.msra.mxu3 %v6611_v13 }
 0x715   :  { %2207 = vmatpush.bf16.msra.mxu2 %v6635_v17  ;;  %2231 = vmatpush.bf16.msrb.mxu0 %v6655_v31  ;;  %v6680_v31 = vld [vmem:[%s8686_s8 + $0x238] sm:$0xff] }
 0x717   :  { %2190 = vmatpush.bf16.msra.mxu1 %v6630_v18 }
 0x718   :  { %2166 = vmatpush.bf16.msra.mxu3 %v6610_v20 }
 0x719   :  { %2208 = vmatpush.bf16.msra.mxu2 %v6634_v21  ;;  %2232 = vmatpush.bf16.msrb.mxu0 %v6654_v35  ;;  %v753_v35 = vperm.slane %v7681_v63, 5 }
 0x71b   :  { %2191 = vmatpush.bf16.msra.mxu1 %v6629_v23 }
 0x71c   :  { %2167 = vmatpush.bf16.msra.mxu3 %v6609_v26  ;;  %v6687_v26 = vld [vmem:[%s8686_s8 + $0x270] sm:$0xff] }
 0x71d   :  { %2209 = vmatpush.bf16.msra.mxu2 %v6633_v27  ;;  %2233 = vmatpush.bf16.msrb.mxu0 %v6653_v22  ;;  %v6686_v22 = vld [vmem:[%s8686_s8 + $0x268] sm:$0xff] }
 0x71e   :  { %5084 = vmatmul.msk.bf16.vlgmr.msrb.gmra.mxu1 %vm291_vm7, %v7428_v15  ;;  %v6664_v15 = vld [vmem:[%s8686_s8 + $0x1b8] sm:$0xff] }
 0x71f   :  { %2192 = vmatpush.bf16.msra.mxu1 %v6628_v28 }
 0x720   :  { %2216 = vmatpush.bf16.msrb.mxu3 %v6648_v29 }
 0x721   :  { %2258 = vmatpush.bf16.msrb.mxu2 %v6672_v30  ;;  %2234 = vmatpush.bf16.msrb.mxu0 %v6652_v42 }
 0x723   :  { %2193 = vmatpush.bf16.msra.mxu1 %v6627_v32 }
 0x724   :  { %2217 = vmatpush.bf16.msrb.mxu3 %v6647_v33  ;;  %v750_v33 = vperm.slane %v7681_v63, 2 }
 0x725   :  { %2259 = vmatpush.bf16.msrb.mxu2 %v6671_v34  ;;  %2235 = vmatpush.bf16.msrb.mxu0 %v6651_v45  ;;  %v6704_v34 = vld [vmem:[%s8686_s8 + $0x2f8] sm:$0xff] }
 0x727   :  { %2194 = vmatpush.bf16.msra.mxu1 %v6626_v36 }
 0x728   :  { %2218 = vmatpush.bf16.msrb.mxu3 %v6646_v37 }
 0x729   :  { %2260 = vmatpush.bf16.msrb.mxu2 %v6670_v39  ;;  %2236 = vmatpush.bf16.msrb.mxu0 %v6650_v49 }
 0x72b   :  { %2195 = vmatpush.bf16.msra.mxu1 %v6625_v41  ;;  %v6679_v41 = vld [vmem:[%s8686_s8 + $0x230] sm:$0xff] }
 0x72c   :  { %2219 = vmatpush.bf16.msrb.mxu3 %v6645_v43  ;;  %v6703_v43 = vld [vmem:[%s8686_s8 + $0x2f0] sm:$0xff] }
 0x72d   :  { %2261 = vmatpush.bf16.msrb.mxu2 %v6669_v44  ;;  %2237 = vmatpush.bf16.msrb.mxu0 %v6649_v53 }
 0x72f   :  { %2244 = vmatpush.bf16.msrb.mxu1 %v6664_v15 }
 0x730   :  { %2220 = vmatpush.bf16.msrb.mxu3 %v6644_v47 }
 0x731   :  { %2262 = vmatpush.bf16.msrb.mxu2 %v6668_v48  ;;  %v752_v48 = vperm.slane %v7681_v63, 4 }
 0x733   :  { %2245 = vmatpush.bf16.msrb.mxu1 %v6663_v46  ;;  %v6685_v46 = vld [vmem:[%s8686_s8 + $0x260] sm:$0xff] }
 0x734   :  { %2221 = vmatpush.bf16.msrb.mxu3 %v6643_v51  ;;  %v755_v51 = vperm.slane %v7681_v63, 7 }
 0x735   :  { %2263 = vmatpush.bf16.msrb.mxu2 %v6667_v52  ;;  %v6678_v52 = vld [vmem:[%s8686_s8 + $0x228] sm:$0xff] }
 0x737   :  { %2246 = vmatpush.bf16.msrb.mxu1 %v6662_v50 }
 0x738   :  { %2222 = vmatpush.bf16.msrb.mxu3 %v6642_v55  ;;  %v6702_v55 = vld [vmem:[%s8686_s8 + $0x2e8] sm:$0xff] }
 0x739   :  { %2264 = vmatpush.bf16.msrb.mxu2 %v6666_v56 }
 0x73b   :  { %2247 = vmatpush.bf16.msrb.mxu1 %v6661_v54 }
 0x73c   :  { %2223 = vmatpush.bf16.msrb.mxu3 %v6641_v58 }
 0x73d   :  { %2265 = vmatpush.bf16.msrb.mxu2 %v6665_v59 }
 0x73f   :  { %2248 = vmatpush.bf16.msrb.mxu1 %v6660_v57  ;;  %v6696_v57 = vld [vmem:[%s8686_s8 + $0x2b8] sm:$0xff] }
 0x743   :  { %2249 = vmatpush.bf16.msrb.mxu1 %v6659_v60  ;;  %v6684_v60 = vld [vmem:[%s8686_s8 + $0x258] sm:$0xff] }
 0x747   :  { %2250 = vmatpush.bf16.msrb.mxu1 %v6658_v61 }
 0x74b   :  { %2251 = vmatpush.bf16.msrb.mxu1 %v6657_v62 }
 0x75b   :  { %v886_v0 = vpop.f32.mrf.mxu1 }
 0x75c   :  { %v942_v2 = vpop.f32.mrf.mxu0  ;;  %v887_v4 = vadd.f32 %v886_v0, %v749_v1 }
 0x75d   :  { %v943_v44 = vadd.f32 %v942_v2, %v753_v35 }
 0x75e   :  { %v1088_v10 = vmax.f32 %v887_v4, 0.0  ;;  %v6701_v4 = vld [vmem:[%s8686_s8 + $0x2e0] sm:$0xff] }
 0x75f   :  { %v1092_v56 = vmax.f32 %v943_v44, 0.0  ;;  %v6698_v44 = vld [vmem:[%s8686_s8 + $0x2c8] sm:$0xff] }
 0x761   :  { %v872_v3 = vpop.f32.mrf.mxu3 }
 0x762   :  { %v914_v5 = vpop.f32.mrf.mxu2  ;;  %v873_v13 = vadd.f32 %v872_v3, %v748_v7 }
 0x763   :  { %v888_v6 = vpop.f32.mrf.mxu1  ;;  %v915_v18 = vadd.f32 %v914_v5, %v751_v9 }
 0x764   :  { %v889_v8 = vadd.f32 %v888_v6, %v749_v1  ;;  %v944_v20 = vpop.f32.mrf.mxu0  ;;  %v1087_v27 = vmax.f32 %v873_v13, 0.0  ;;  %v6677_v1 = vld [vmem:[%s8686_s8 + $0x220] sm:$0xff] }
 0x765   :  { %v1090_v29 = vmax.f32 %v915_v18, 0.0  ;;  %v945_v37 = vadd.f32 %v944_v20, %v753_v35  ;;  %v754_v20 = vperm.slane %v7681_v63, 6 }
 0x766   :  { %v1104_v11 = vmax.f32 %v889_v8, 0.0  ;;  %v7738_v8 = vld [vmem:[%s8685_s7 + $0x8] sm:$0xff] }
 0x767   :  { %v1108_v50 = vmax.f32 %v945_v37, 0.0  ;;  %v756_v35 = vperm.slane %v7738_v8, 0 }
 0x768   :  { %v1120_v17 = vpack.c.bf16 %v1104_v11, %v1088_v10  ;;  %v6683_v11 = vld [vmem:[%s8686_s8 + $0x250] sm:$0xff] }
 0x769   :  { %v874_v19 = vpop.f32.mrf.mxu3  ;;  %v1124_v61 = vpack.c.bf16 %v1108_v50, %v1092_v56  ;;  %v6697_v56 = vld [vmem:[%s8686_s8 + $0x2c0] sm:$0xff] }
 0x76a   :  { %v875_v21 = vadd.f32 %v874_v19, %v748_v7  ;;  %v916_v23 = vpop.f32.mrf.mxu2  ;;  %2182 = vmatmul.bf16.vlgmr.msra.gmra.mxu0 %v1120_v17  ;;  %v6695_v7 = vld [vmem:[%s8686_s8 + $0x2b0] sm:$0xff]  ;;  %v6676_v17 = vld [vmem:[%s8686_s8 + $0x218] sm:$0xff] }
 0x76b   :  { %v917_v24 = vadd.f32 %v916_v23, %v751_v9  ;;  %2286 = vmatpush.bf16.msra.mxu0 %v6688_v12  ;;  %v900_v25 = vpop.f32.mrf.mxu1  ;;  %v757_v23 = vperm.slane %v7738_v8, 1 }
 0x76c   :  { %v1103_v28 = vmax.f32 %v875_v21, 0.0  ;;  %v901_v42 = vadd.f32 %v900_v25, %v750_v33  ;;  %v998_v47 = vpop.f32.mrf.mxu0  ;;  %v6700_v21 = vld [vmem:[%s8686_s8 + $0x2d8] sm:$0xff]  ;;  %v6694_v25 = vld [vmem:[%s8686_s8 + $0x2a8] sm:$0xff] }
 0x76d   :  { %v1106_v30 = vmax.f32 %v917_v24, 0.0 }
 0x76e   :  { %v1119_v32 = vpack.c.bf16 %v1103_v28, %v1087_v27  ;;  %v1089_v53 = vmax.f32 %v901_v42, 0.0  ;;  %v6675_v28 = vld [vmem:[%s8686_s8 + $0x210] sm:$0xff]  ;;  %v6674_v42 = vld [vmem:[%s8686_s8 + $0x208] sm:$0xff] }
 0x76f   :  { %v1122_v36 = vpack.c.bf16 %v1106_v30, %v1090_v29  ;;  %2287 = vmatpush.bf16.msra.mxu0 %v6687_v26  ;;  %v6682_v26 = vld [vmem:[%s8686_s8 + $0x248] sm:$0xff] }
 0x770   :  { %2168 = vmatmul.bf16.vlgmr.msra.gmra.mxu3 %v1119_v32  ;;  %v999_v32 = vadd.f32 %v998_v47, %v757_v23 }
 0x771   :  { %2210 = vmatmul.bf16.vlgmr.msra.gmra.mxu2 %v1122_v36  ;;  %2272 = vmatpush.bf16.msra.mxu3 %v6680_v31  ;;  %v928_v39 = vpop.f32.mrf.mxu3  ;;  %v6699_v31 = vld [vmem:[%s8686_s8 + $0x2d0] sm:$0xff] }
 0x772   :  { %2314 = vmatpush.bf16.msra.mxu2 %v6704_v34  ;;  %v970_v15 = vpop.f32.mrf.mxu2  ;;  %v929_v58 = vadd.f32 %v928_v39, %v752_v48  ;;  %v6693_v34 = vld [vmem:[%s8686_s8 + $0x2a0] sm:$0xff]  ;;  %v759_v39 = vperm.slane %v7738_v8, 3 }
 0x773   :  { %2288 = vmatpush.bf16.msra.mxu0 %v6686_v22  ;;  %v902_v45 = vpop.f32.mrf.mxu1  ;;  %v971_v62 = vadd.f32 %v970_v15, %v755_v51  ;;  %v6681_v22 = vld [vmem:[%s8686_s8 + $0x240] sm:$0xff] }
 0x774   :  { %v903_v49 = vadd.f32 %v902_v45, %v750_v33  ;;  %v1091_v9 = vmax.f32 %v929_v58, 0.0  ;;  %v1000_v18 = vpop.f32.mrf.mxu0  ;;  %v1096_v45 = vmax.f32 %v999_v32, 0.0  ;;  %v6715_v32 = vld [vmem:[%s8686_s8 + $0x350] sm:$0xff] }
 0x775   :  { %2273 = vmatpush.bf16.msra.mxu3 %v6679_v41  ;;  %v1094_v12 = vmax.f32 %v971_v62, 0.0  ;;  %v1001_v63 = vadd.f32 %v1000_v18, %v757_v23  ;;  %v6720_v41 = vld [vmem:[%s8686_s8 + $0x378] sm:$0xff] }
 0x776   :  { %v1105_v54 = vmax.f32 %v903_v49, 0.0  ;;  %2315 = vmatpush.bf16.msra.mxu2 %v6703_v43  ;;  %v6728_v23 = vld [vmem:[%s8686_s8 + $0x3b8] sm:$0xff] }
 0x777   :  { %2289 = vmatpush.bf16.msra.mxu0 %v6685_v46  ;;  %v1112_v37 = vmax.f32 %v1001_v63, 0.0  ;;  %v6692_v46 = vld [vmem:[%s8686_s8 + $0x298] sm:$0xff] }
 0x778   :  { %v1121_v59 = vpack.c.bf16 %v1105_v54, %v1089_v53  ;;  %v6673_v53 = vld [vmem:[%s8686_s8 + $0x200] sm:$0xff] }
 0x779   :  { %2274 = vmatpush.bf16.msra.mxu3 %v6678_v52  ;;  %v930_v0 = vpop.f32.mrf.mxu3  ;;  %v1128_v49 = vpack.c.bf16 %v1112_v37, %v1096_v45  ;;  %v6719_v52 = vld [vmem:[%s8686_s8 + $0x370] sm:$0xff]  ;;  %v6714_v37 = vld [vmem:[%s8686_s8 + $0x348] sm:$0xff]  ;;  %v6725_v45 = vld [vmem:[%s8686_s8 + $0x3a0] sm:$0xff] }
 0x77a   :  { %2316 = vmatpush.bf16.msra.mxu2 %v6702_v55  ;;  %v931_v2 = vadd.f32 %v930_v0, %v752_v48  ;;  %v972_v3 = vpop.f32.mrf.mxu2  ;;  %2196 = vmatmul.bf16.vlgmr.msra.gmra.mxu1 %v1121_v59 }
 0x77b   :  { %v973_v5 = vadd.f32 %v972_v3, %v755_v51  ;;  %2238 = vmatmul.bf16.vlgmr.msrb.gmra.mxu0 %v1124_v61  ;;  %2300 = vmatpush.bf16.msra.mxu1 %v6696_v57  ;;  %v956_v6 = vpop.f32.mrf.mxu1  ;;  %v6712_v57 = vld [vmem:[%s8686_s8 + $0x338] sm:$0xff]  ;;  %v6691_v61 = vld [vmem:[%s8686_s8 + $0x290] sm:$0xff]  ;;  %v6718_v3 = vld [vmem:[%s8686_s8 + $0x368] sm:$0xff] }
 0x77c   :  { %v1107_v10 = vmax.f32 %v931_v2, 0.0  ;;  %2290 = vmatpush.bf16.msra.mxu0 %v6684_v60  ;;  %v957_v29 = vadd.f32 %v956_v6, %v754_v20  ;;  %v6736_v60 = vld [vmem:[%s8686_s8 + $0x3f8] sm:$0xff]  ;;  %v6711_v6 = vld [vmem:[%s8686_s8 + $0x330] sm:$0xff] }
 0x77d   :  { %v1110_v13 = vmax.f32 %v973_v5, 0.0  ;;  %2275 = vmatpush.bf16.msra.mxu3 %v6677_v1  ;;  %v758_v5 = vperm.slane %v7738_v8, 2 }
 0x77e   :  { %v1123_v19 = vpack.c.bf16 %v1107_v10, %v1091_v9  ;;  %2317 = vmatpush.bf16.msra.mxu2 %v6701_v4  ;;  %v1093_v15 = vmax.f32 %v957_v29, 0.0  ;;  %v6735_v9 = vld [vmem:[%s8686_s8 + $0x3f0] sm:$0xff]  ;;  %v6690_v10 = vld [vmem:[%s8686_s8 + $0x288] sm:$0xff]  ;;  %v6733_v29 = vld [vmem:[%s8686_s8 + $0x3e0] sm:$0xff] }
 0x77f   :  { %v1126_v24 = vpack.c.bf16 %v1110_v13, %v1094_v12  ;;  %2301 = vmatpush.bf16.msra.mxu1 %v6695_v7  ;;  %v6717_v12 = vld [vmem:[%s8686_s8 + $0x360] sm:$0xff] }
 0x780   :  { %2291 = vmatpush.bf16.msra.mxu0 %v6683_v11  ;;  %2224 = vmatmul.bf16.vlgmr.msrb.gmra.mxu3 %v1123_v19  ;;  %v1054_v11 = vpop.f32.mrf.mxu0  ;;  %v6734_v19 = vld [vmem:[%s8686_s8 + $0x3e8] sm:$0xff] }
 0x781   :  { %2266 = vmatmul.bf16.vlgmr.msrb.gmra.mxu2 %v1126_v24  ;;  %2276 = vmatpush.bf16.msra.mxu3 %v6676_v17  ;;  %v984_v27 = vpop.f32.mrf.mxu3  ;;  %v6710_v17 = vld [vmem:[%s8686_s8 + $0x328] sm:$0xff]  ;;  %v6716_v24 = vld [vmem:[%s8686_s8 + $0x358] sm:$0xff] }
 0x782   :  { %2318 = vmatpush.bf16.msra.mxu2 %v6700_v21  ;;  %v1026_v30 = vpop.f32.mrf.mxu2  ;;  %v985_v47 = vadd.f32 %v984_v27, %v756_v35  ;;  %v6709_v27 = vld [vmem:[%s8686_s8 + $0x320] sm:$0xff] }
 0x783   :  { %2302 = vmatpush.bf16.msra.mxu1 %v6694_v25  ;;  %v958_v33 = vpop.f32.mrf.mxu1  ;;  %v1027_v50 = vadd.f32 %v1026_v30, %v759_v39 }
 0x784   :  { %2292 = vmatpush.bf16.msra.mxu0 %v6682_v26  ;;  %v959_v36 = vadd.f32 %v958_v33, %v754_v20  ;;  %v1095_v62 = vmax.f32 %v985_v47, 0.0  ;;  %v6689_v20 = vld [vmem:[%s8686_s8 + $0x280] sm:$0xff]  ;;  %v6708_v33 = vld [vmem:[%s8686_s8 + $0x318] sm:$0xff] }
 0x785   :  { %2277 = vmatpush.bf16.msra.mxu3 %v6675_v28  ;;  %v1098_v1 = vmax.f32 %v1027_v50, 0.0  ;;  %v763_v50 = vperm.slane %v7738_v8, 7 }
 0x786   :  { %v1109_v43 = vmax.f32 %v959_v36, 0.0  ;;  %2319 = vmatpush.bf16.msra.mxu2 %v6699_v31  ;;  %v6727_v31 = vld [vmem:[%s8686_s8 + $0x3b0] sm:$0xff]  ;;  %v761_v36 = vperm.slane %v7738_v8, 5 }
 0x787   :  { %2303 = vmatpush.bf16.msra.mxu1 %v6693_v34 }
 0x788   :  { %v1125_v48 = vpack.c.bf16 %v1109_v43, %v1093_v15  ;;  %2293 = vmatpush.bf16.msra.mxu0 %v6681_v22  ;;  %v1056_v34 = vpop.f32.mrf.mxu0  ;;  %v6726_v22 = vld [vmem:[%s8686_s8 + $0x3a8] sm:$0xff]  ;;  %v1055_v15 = vadd.f32 %v1054_v11, %v761_v36 }
 0x789   :  { %2278 = vmatpush.bf16.msra.mxu3 %v6674_v42  ;;  %v986_v51 = vpop.f32.mrf.mxu3  ;;  %v6731_v42 = vld [vmem:[%s8686_s8 + $0x3d0] sm:$0xff] }
 0x78a   :  { %2320 = vmatpush.bf16.msra.mxu2 %v6698_v44  ;;  %v987_v54 = vadd.f32 %v986_v51, %v756_v35  ;;  %v1028_v55 = vpop.f32.mrf.mxu2  ;;  %2252 = vmatmul.bf16.vlgmr.msrb.gmra.mxu1 %v1125_v48  ;;  %v6732_v35 = vld [vmem:[%s8686_s8 + $0x3d8] sm:$0xff]  ;;  %v6713_v48 = vld [vmem:[%s8686_s8 + $0x340] sm:$0xff]  ;;  %v6706_v51 = vld [vmem:[%s8686_s8 + $0x308] sm:$0xff] }
 0x78b   :  { %v1029_v58 = vadd.f32 %v1028_v55, %v759_v39  ;;  %2294 = vmatmul.bf16.vlgmr.msra.gmra.mxu0 %v1128_v49  ;;  %2304 = vmatpush.bf16.msra.mxu1 %v6692_v46  ;;  %v1012_v59 = vpop.f32.mrf.mxu1  ;;  %v1057_v39 = vadd.f32 %v1056_v34, %v761_v36  ;;  %v760_v46 = vperm.slane %v7738_v8, 4 }
 0x78c   :  { %2342 = vmatpush.bf16.msrb.mxu0 %v6720_v41  ;;  %v1111_v0 = vmax.f32 %v987_v54, 0.0  ;;  %v1013_v13 = vadd.f32 %v1012_v59, %v758_v5  ;;  %v6707_v41 = vld [vmem:[%s8686_s8 + $0x310] sm:$0xff]  ;;  %v1100_v54 = vmax.f32 %v1055_v15, 0.0 }
 0x78d   :  { %v1114_v2 = vmax.f32 %v1029_v58, 0.0  ;;  %2279 = vmatpush.bf16.msra.mxu3 %v6673_v53  ;;  %v1116_v49 = vmax.f32 %v1057_v39, 0.0  ;;  %v6730_v53 = vld [vmem:[%s8686_s8 + $0x3c8] sm:$0xff] }
 0x78e   :  { %v1127_v4 = vpack.c.bf16 %v1111_v0, %v1095_v62  ;;  %2321 = vmatpush.bf16.msra.mxu2 %v6697_v56  ;;  %v1097_v25 = vmax.f32 %v1013_v13, 0.0  ;;  %v6724_v56 = vld [vmem:[%s8686_s8 + $0x398] sm:$0xff]  ;;  %v6729_v62 = vld [vmem:[%s8686_s8 + $0x3c0] sm:$0xff] }
 0x78f   :  { %v1130_v7 = vpack.c.bf16 %v1114_v2, %v1098_v1  ;;  %2305 = vmatpush.bf16.msra.mxu1 %v6691_v61  ;;  %v1132_v58 = vpack.c.bf16 %v1116_v49, %v1100_v54  ;;  %v6723_v1 = vld [vmem:[%s8686_s8 + $0x390] sm:$0xff] }
 0x790   :  { %2343 = vmatpush.bf16.msrb.mxu0 %v6719_v52  ;;  %2280 = vmatmul.bf16.vlgmr.msra.gmra.mxu3 %v1127_v4 }
 0x791   :  { %2328 = vmatpush.bf16.msrb.mxu3 %v6712_v57  ;;  %2322 = vmatmul.bf16.vlgmr.msra.gmra.mxu2 %v1130_v7  ;;  %v1040_v26 = vpop.f32.mrf.mxu3 }
 0x792   :  { %2370 = vmatpush.bf16.msrb.mxu2 %v6736_v60  ;;  %v1082_v28 = vpop.f32.mrf.mxu2  ;;  %v1041_v57 = vadd.f32 %v1040_v26, %v760_v46  ;;  %v6705_v60 = vld [vmem:[%s8686_s8 + $0x300] sm:$0xff] }
 0x793   :  { %2306 = vmatpush.bf16.msra.mxu1 %v6690_v10  ;;  %v1014_v18 = vpop.f32.mrf.mxu1  ;;  %v1083_v59 = vadd.f32 %v1082_v28, %v763_v50 }
 0x794   :  { %2344 = vmatpush.bf16.msrb.mxu0 %v6718_v3  ;;  %v1015_v21 = vadd.f32 %v1014_v18, %v758_v5  ;;  %v1099_v2 = vmax.f32 %v1041_v57, 0.0 }
 0x795   :  { %2329 = vmatpush.bf16.msrb.mxu3 %v6711_v6  ;;  %v1102_v3 = vmax.f32 %v1083_v59, 0.0  ;;  %v762_v6 = vperm.slane %v7738_v8, 6 }
 0x796   :  { %2371 = vmatpush.bf16.msrb.mxu2 %v6735_v9  ;;  %v1113_v63 = vmax.f32 %v1015_v21, 0.0  ;;  %v6722_v9 = vld [vmem:[%s8686_s8 + $0x388] sm:$0xff] }
 0x797   :  { %2307 = vmatpush.bf16.msra.mxu1 %v6689_v20 }
 0x798   :  { %2345 = vmatpush.bf16.msrb.mxu0 %v6717_v12  ;;  %v1129_v30 = vpack.c.bf16 %v1113_v63, %v1097_v25  ;;  %v6721_v12 = vld [vmem:[%s8686_s8 + $0x380] sm:$0xff] }
 0x799   :  { %2330 = vmatpush.bf16.msrb.mxu3 %v6710_v17  ;;  %v1042_v43 = vpop.f32.mrf.mxu3  ;;  %v7899_v25 = vld [vmem:[%s8680_s2] sm:$0xff] }
 0x79a   :  { %2372 = vmatpush.bf16.msrb.mxu2 %v6734_v19  ;;  %2308 = vmatmul.bf16.vlgmr.msra.gmra.mxu1 %v1129_v30  ;;  %v1084_v47 = vpop.f32.mrf.mxu2  ;;  %v1043_v52 = vadd.f32 %v1042_v43, %v760_v46  ;;  %v1391_v26 = vperm.slane %v7899_v25, 6 }
 0x79b   :  { %2356 = vmatpush.bf16.msrb.mxu1 %v6728_v23  ;;  %v1068_v44 = vpop.f32.mrf.mxu1  ;;  %v1085_v55 = vadd.f32 %v1084_v47, %v763_v50 }
 0x79c   :  { %2346 = vmatpush.bf16.msrb.mxu0 %v6716_v24  ;;  %v1115_v61 = vmax.f32 %v1043_v52, 0.0  ;;  %v1069_v11 = vadd.f32 %v1068_v44, %v762_v6 }
 0x79d   :  { %2331 = vmatpush.bf16.msrb.mxu3 %v6709_v27  ;;  %v1118_v0 = vmax.f32 %v1085_v55, 0.0 }
 0x79e   :  { %2373 = vmatpush.bf16.msrb.mxu2 %v6733_v29  ;;  %v1131_v5 = vpack.c.bf16 %v1115_v61, %v1099_v2  ;;  %v1101_v17 = vmax.f32 %v1069_v11, 0.0 }
 0x79f   :  { %2357 = vmatpush.bf16.msrb.mxu1 %v6727_v31  ;;  %v1134_v7 = vpack.c.bf16 %v1118_v0, %v1102_v3 }
 0x7a0   :  { %2347 = vmatpush.bf16.msrb.mxu0 %v6715_v32 }
 0x7a1   :  { %2332 = vmatpush.bf16.msrb.mxu3 %v6708_v33 }
 0x7a2   :  { %2374 = vmatpush.bf16.msrb.mxu2 %v6732_v35 }
 0x7a3   :  { %2358 = vmatpush.bf16.msrb.mxu1 %v6726_v22  ;;  %v1070_v4 = vpop.f32.mrf.mxu1 }
 0x7a4   :  { %2348 = vmatpush.bf16.msrb.mxu0 %v6714_v37  ;;  %v1071_v10 = vadd.f32 %v1070_v4, %v762_v6 }
 0x7a5   :  { %2333 = vmatpush.bf16.msrb.mxu3 %v6707_v41 }
 0x7a6   :  { %2375 = vmatpush.bf16.msrb.mxu2 %v6731_v42  ;;  %v1117_v13 = vmax.f32 %v1071_v10, 0.0 }
 0x7a7   :  { %2359 = vmatpush.bf16.msrb.mxu1 %v6725_v45 }
 0x7a8   :  { %2349 = vmatpush.bf16.msrb.mxu0 %v6713_v48  ;;  %v1133_v8 = vpack.c.bf16 %v1117_v13, %v1101_v17 }
 0x7a9   :  { %2334 = vmatpush.bf16.msrb.mxu3 %v6706_v51 }
 0x7aa   :  { %2376 = vmatpush.bf16.msrb.mxu2 %v6730_v53 }
 0x7ab   :  { %2350 = vmatmul.bf16.vlgmr.msrb.gmra.mxu0 %v1132_v58  ;;  %2360 = vmatpush.bf16.msrb.mxu1 %v6724_v56 }
 0x7ad   :  { %2335 = vmatpush.bf16.msrb.mxu3 %v6705_v60 }
 0x7ae   :  { %2377 = vmatpush.bf16.msrb.mxu2 %v6729_v62 }
 0x7af   :  { %2361 = vmatpush.bf16.msrb.mxu1 %v6723_v1 }
 0x7b0   :  { %2336 = vmatmul.bf16.vlgmr.msrb.gmra.mxu3 %v1131_v5 }
 0x7b1   :  { %2378 = vmatmul.bf16.vlgmr.msrb.gmra.mxu2 %v1134_v7 }
 0x7b3   :  { %2362 = vmatpush.bf16.msrb.mxu1 %v6722_v9 }
 0x7b7   :  { %2363 = vmatpush.bf16.msrb.mxu1 %v6721_v12 }
 0x7ba   :  { %2364 = vmatmul.bf16.vlgmr.msrb.gmra.mxu1 %v1133_v8 }
 0x7e7   :  { %v2183_v18 = vpop.f32.mrf.mxu0 }
 0x7ef   :  { %v2185_v23 = vpop.f32.mrf.mxu0 }
 0x7f3   :  { %v2169_v19 = vpop.f32.mrf.mxu3 }
 0x7f4   :  { %v2211_v20 = vpop.f32.mrf.mxu2  ;;  %v2170_v28 = vadd.f32 %v2169_v19, %v1391_v26 }
 0x7f6   :  { %v2184_v31 = vadd.f32 %v2183_v18, %v2170_v28 }
 0x7f7   :  { %v2197_v21 = vpop.f32.mrf.mxu1 }
 0x7f8   :  { %v2239_v29 = vpop.f32.mrf.mxu0  ;;  %v2198_v34 = vadd.f32 %v2197_v21, %v2184_v31 }
 0x7fa   :  { %v2212_v22 = vadd.f32 %v2211_v20, %v2198_v34 }
 0x7fb   :  { %v2171_v24 = vpop.f32.mrf.mxu3 }
 0x7fc   :  { %v2213_v63 = vpop.f32.mrf.mxu2  ;;  %v2172_v35 = vadd.f32 %v2171_v24, %v1391_v26 }
 0x7fe   :  { %v2186_v36 = vadd.f32 %v2185_v23, %v2172_v35 }
 0x7ff   :  { %v2199_v27 = vpop.f32.mrf.mxu1 }
 0x800   :  { %v2241_v37 = vpop.f32.mrf.mxu0  ;;  %v2200_v42 = vadd.f32 %v2199_v27, %v2186_v36 }
 0x802   :  { %v2214_v45 = vadd.f32 %v2213_v63, %v2200_v42 }
 0x803   :  { %v2225_v30 = vpop.f32.mrf.mxu3 }
 0x804   :  { %v2267_v32 = vpop.f32.mrf.mxu2  ;;  %v2226_v41 = vadd.f32 %v2225_v30, %v2212_v22 }
 0x806   :  { %v2240_v44 = vadd.f32 %v2239_v29, %v2226_v41  ;;  %v6737_v41 = vld [vmem:[%s8681_s3 + $0x8] sm:$0xff] }
 0x807   :  { %v2253_v33 = vpop.f32.mrf.mxu1  ;;  %2461 = vmatpush.bf16.msra.mxu3 %v6737_v41 }
 0x808   :  { %v2254_v46 = vadd.f32 %v2253_v33, %v2240_v44  ;;  %v2295_v48 = vpop.f32.mrf.mxu0 }
 0x80a   :  { %v2268_v51 = vadd.f32 %v2267_v32, %v2254_v46 }
 0x80b   :  { %v2227_v39 = vpop.f32.mrf.mxu3 }
 0x80c   :  { %v2269_v15 = vpop.f32.mrf.mxu2  ;;  %v2228_v47 = vadd.f32 %v2227_v39, %v2214_v45 }
 0x80e   :  { %v2242_v50 = vadd.f32 %v2241_v37, %v2228_v47 }
 0x80f   :  { %v2255_v43 = vpop.f32.mrf.mxu1 }
 0x810   :  { %v2256_v55 = vadd.f32 %v2255_v43, %v2242_v50  ;;  %v2297_v57 = vpop.f32.mrf.mxu0 }
 0x812   :  { %v2270_v59 = vadd.f32 %v2269_v15, %v2256_v55 }
 0x813   :  { %v2281_v49 = vpop.f32.mrf.mxu3 }
 0x814   :  { %v2323_v52 = vpop.f32.mrf.mxu2  ;;  %v2282_v54 = vadd.f32 %v2281_v49, %v2268_v51 }
 0x816   :  { %v2296_v56 = vadd.f32 %v2295_v48, %v2282_v54 }
 0x817   :  { %v2309_v53 = vpop.f32.mrf.mxu1 }
 0x818   :  { %v2310_v60 = vadd.f32 %v2309_v53, %v2296_v56  ;;  %v2430_v56 = vperm.slane %v7899_v25, 7 }
 0x81a   :  { %v2324_v2 = vadd.f32 %v2323_v52, %v2310_v60 }
 0x81b   :  { %v2283_v58 = vpop.f32.mrf.mxu3 }
 0x81c   :  { %v2284_v61 = vadd.f32 %v2283_v58, %v2270_v59  ;;  %v2325_v62 = vpop.f32.mrf.mxu2  ;;  %v7919_v58 = vld [vmem:[%s8680_s2 + $0x8] sm:$0xff] }
 0x81e   :  { %v2298_v1 = vadd.f32 %v2297_v57, %v2284_v61  ;;  %v2433_v61 = vperm.slane %v7919_v58, 0 }
 0x81f   :  { %v2311_v0 = vpop.f32.mrf.mxu1 }
 0x820   :  { %v2312_v6 = vadd.f32 %v2311_v0, %v2298_v1 }
 0x822   :  { %v2326_v13 = vadd.f32 %v2325_v62, %v2312_v6 }
 0x828   :  { %v2351_v3 = vpop.f32.mrf.mxu0 }
 0x830   :  { %v2353_v19 = vpop.f32.mrf.mxu0 }
 0x833   :  { %v2337_v4 = vpop.f32.mrf.mxu3 }
 0x834   :  { %v2338_v5 = vadd.f32 %v2337_v4, %v2324_v2  ;;  %v2379_v9 = vpop.f32.mrf.mxu2  ;;  %v6925_v4 = vld [vmem:[%s8682_s4 + $0x1] ss:$0 sm:$0xff] }
 0x836   :  { %v2352_v7 = vadd.f32 %v2351_v3, %v2338_v5 }
 0x837   :  { %v2365_v10 = vpop.f32.mrf.mxu1 }
 0x838   :  { %v2366_v11 = vadd.f32 %v2365_v10, %v2352_v7 }
 0x83a   :  { %v2380_v12 = vadd.f32 %v2379_v9, %v2366_v11 }
 0x83b   :  { %v2339_v17 = vpop.f32.mrf.mxu3 }
 0x83c   :  { %v2340_v8 = vadd.f32 %v2339_v17, %v2326_v13  ;;  %v2384_v18 = vadd.f32 %v2380_v12, %v7413_v38  ;;  %v2381_v26 = vpop.f32.mrf.mxu2 }
 0x83e   :  { %v2354_v20 = vadd.f32 %v2353_v19, %v2340_v8  ;;  %v2386_v21 = vsel %vm291_vm7, %v2384_v18, 0.0 }
 0x83f   :  { %v2367_v23 = vpop.f32.mrf.mxu1  ;;  %2387 = vadd.xlane.f32.xlu2 %v2386_v21 }
 0x840   :  { %v2368_v24 = vadd.f32 %v2367_v23, %v2354_v20 }
 0x842   :  { %v2382_v63 = vadd.f32 %v2381_v26, %v2368_v24 }
 0x844   :  { %v2385_v27 = vadd.f32 %v2382_v63, %v7415_v14 }
 0x846   :  { %v2389_v28 = vsel %vm291_vm7, %v2385_v27, 0.0 }
 0x847   :  { %2390 = vadd.xlane.f32.xlu0 %v2389_v28 }
 0x8b2   :  { %v2388_v29 = vpop.xlane.xlu2 %2387 }
 0x8b3   :  { %v2392_v30 = vmul.f32 %v2388_v29, %v7248_v40 }
 0x8b5   :  { %v2394_v31 = vsub.f32 %v2384_v18, %v2392_v30 }
 0x8b7   :  { %v2396_v32 = vmul.f32 %v2394_v31, %v2394_v31 }
 0x8b9   :  { %v2398_v38 = vsel %vm291_vm7, %v2396_v32, 0.0 }
 0x8ba   :  { %v2391_v33 = vpop.xlane.xlu0 %2390  ;;  %2399 = vadd.xlane.f32.xlu1 %v2398_v38 }
 0x8bb   :  { %v2393_v34 = vmul.f32 %v2391_v33, %v7248_v40 }
 0x8bd   :  { %v2395_v35 = vsub.f32 %v2385_v27, %v2393_v34 }
 0x8bf   :  { %v2397_v36 = vmul.f32 %v2395_v35, %v2395_v35 }
 0x8c1   :  { %v2401_v22 = vsel %vm291_vm7, %v2397_v36, 0.0 }
 0x8c2   :  { %2402 = vadd.xlane.f32.xlu2 %v2401_v22 }
 0x92d   :  { %v2400_v14 = vpop.xlane.xlu1 %2399 }
 0x92e   :  { %v2404_v37 = vmul.f32 %v2400_v14, %v7248_v40 }
 0x930   :  { %v2406_v39 = vadd.f32 1e-05, %v2404_v37 }
 0x932   :  { %6952 = vrsqrt.f32 %v2406_v39  ;;  %vm2414_vm8 = vweird.f32 %v2406_v39 }
 0x935   :  { %v2403_v42 = vpop.xlane.xlu2 %2402 }
 0x936   :  { %v2405_v15 = vmul.f32 %v2403_v42, %v7248_v40 }
 0x938   :  { %v6953_v43 = vpop.eup %6952  ;;  %v2407_v44 = vadd.f32 1e-05, %v2405_v15 }
 0x939   :  { %v2409_v45 = vmul.f32 %v6953_v43, %v2406_v39  ;;  %vm2415_vm6 = vweird.f32 %v6953_v43 }
 0x93a   :  { %6954 = vrsqrt.f32 %v2407_v44  ;;  %vm2416_vm9 = vmor %vm2414_vm8, %vm2415_vm6  ;;  %vm2424_vm11 = vweird.f32 %v2407_v44 }
 0x93b   :  { %v2410_v46 = vmul.f32 %v6953_v43, %v2409_v45 }
 0x93d   :  { %v2411_v47 = vmul.f32 0.5, %v2410_v46 }
 0x93f   :  { %v2412_v48 = vsub.f32 1.5, %v2411_v47 }
 0x940   :  { %v6955_v49 = vpop.eup %6954 }
 0x941   :  { %v2413_v50 = vmul.f32 %v6953_v43, %v2412_v48  ;;  %v2419_v51 = vmul.f32 %v6955_v49, %v2407_v44  ;;  %vm2425_vm10 = vweird.f32 %v6955_v49 }
 0x942   :  { %vm2426_vm12 = vmor %vm2424_vm11, %vm2425_vm10 }
 0x943   :  { %v2420_v52 = vmul.f32 %v6955_v49, %v2419_v51  ;;  %v2417_v53 = vsel %vm2416_vm9, %v6953_v43, %v2413_v50 }
 0x944   :  { %v2428_v57 = vmul.f32 %v2417_v53, %v2394_v31 }
 0x945   :  { %v2421_v54 = vmul.f32 0.5, %v2420_v52 }
 0x946   :  { %v2431_v62 = vmul.f32 %v2430_v56, %v2428_v57 }
 0x947   :  { %v2422_v55 = vsub.f32 1.5, %v2421_v54 }
 0x948   :  { %v7922_v2 = vadd.f32 %v2433_v61, %v2431_v62 }
 0x949   :  { %v2423_v59 = vmul.f32 %v6955_v49, %v2422_v55 }
 0x94b   :  { %v2427_v60 = vsel %vm2426_vm12, %v6955_v49, %v2423_v59 }
 0x94c   :  { %v2429_v0 = vmul.f32 %v2427_v60, %v2395_v35 }
 0x94e   :  { %v2432_v1 = vmul.f32 %v2430_v56, %v2429_v0 }
 0x950   :  { %v7924_v3 = vadd.f32 %v2433_v61, %v2432_v1 }
 0x952   :  { %v2436_v25 = vpack.c.bf16 %v7924_v3, %v7922_v2 }
 0x954   :  { %5605 = vmatmul.msk.bf16.vlgmr.msra.gmra.mxu3 %vm291_vm7, %v2436_v25 }
 0x9d7   :  { %v2463_v5 = vpop.f32.mrf.mxu3 }
 0x9d8   :  { %v7932_v6 = vadd.f32 %v6925_v4, %v2463_v5 }
 0x9da   :  { %2532 = vrot.lane.b32.xlu2 %v7932_v6, %s7017_s0  ;;  %2534 = vrot.lane.b32.xlu1 %v7932_v6, %s7019_s20 }
 0x9db   :  { %2469 = vrot.lane.b32.xlu0 %v7932_v6, %s7018_s19 }
 0x9df   :  { %v2465_v7 = vpop.f32.mrf.mxu3 }
 0x9e0   :  { %v2466_v9 = vadd.f32 %v6925_v4, %v2465_v7  ;;  %v6738_v4 = vld [vmem:[%s8683_s5 + $0x8] sm:$0xff] }
 0x9e2   :  { %2666 = vrot.lane.b32.xlu1 %v2466_v9, %s7017_s0 }
 0x9e3   :  { %2668 = vrot.lane.b32.xlu0 %v2466_v9, %s7019_s20 }
 0x9eb   :  { %2603 = vrot.lane.b32.xlu0 %v2466_v9, %s7018_s19 }
 0xa34   :  { %v2533_v13 = vpop.permute.xlu2 %2532 }
 0xa4c   :  { %v2535_v10 = vpop.permute.xlu1 %2534 }
 0xa4d   :  { %v2470_v11 = vpop.permute.xlu0 %2469 }
 0xa4e   :  { %5606 = vmatpush.xpose.msk.msra.mxu0 %vm382_vm15, %v2470_v11 }
 0xa51   :  { %5607 = vmatmul.msk.f32.vlgmr.msra.gmra.mxu0 %vm382_vm15, %v7932_v6 }
 0xa52   :  { %5609 = vmatpush.xpose.msk.msrb.mxu0 %vm382_vm15, %v2535_v10 }
 0xa54   :  { %v2667_v8 = vpop.permute.xlu1 %2666 }
 0xa55   :  { %v2669_v12 = vpop.permute.xlu0 %2668 }
 0xa56   :  { %5615 = vmatpush.xpose.msk.msra.mxu0 %vm382_vm15, %v2669_v12 }
 0xa59   :  { %5610 = vmatmul.msk.f32.vlgmr.msrb.gmra.mxu0 %vm382_vm15, %v2533_v13  ;;  %v2740_v13 = vperm.slane %v7919_v58, 1 }
 0xa5d   :  { %v2604_v17 = vpop.permute.xlu0 %2603 }
 0xa5e   :  { %5612 = vmatpush.xpose.msk.msra.mxu2 %vm382_vm15, %v2604_v17 }
 0xa61   :  { %5613 = vmatmul.msk.f32.vlgmr.msra.gmra.mxu2 %vm382_vm15, %v2466_v9  ;;  %5616 = vmatmul.msk.f32.vlgmr.msra.gmra.mxu0 %vm382_vm15, %v2667_v8 }
 0xa62   :  { %2757 = vmatpush.bf16.msrb.mxu2 %v6738_v4 }
 0xace   :  { %v2492_v18 = vpop.f32.mrf.mxu0 }
 0xacf   :  { %v2495_v19 = vsel %vm382_vm15, %v2492_v18, -inf }
 0xad0   :  { %2496 = vmax.xlane.f32.xlu2 %v2495_v19 }
 0xad6   :  { %v2557_v20 = vpop.f32.mrf.mxu0 }
 0xad7   :  { %v2560_v21 = vsel %vm382_vm15, %v2557_v20, -inf }
 0xad8   :  { %2561 = vmax.xlane.f32.xlu1 %v2560_v21 }
 0xade   :  { %v2691_v23 = vpop.f32.mrf.mxu0 }
 0xadf   :  { %v2694_v24 = vsel %vm382_vm15, %v2691_v23, -inf }
 0xae0   :  { %2695 = vmax.xlane.f32.xlu0 %v2694_v24 }
 0xae4   :  { %v2626_v26 = vpop.f32.mrf.mxu2 }
 0xae5   :  { %v2629_v63 = vsel %vm382_vm15, %v2626_v26, -inf }
 0xae6   :  { %2630 = vmax.xlane.f32.xlu2 %v2629_v63 }
 0xafe   :  { %2506 = vrot.lane.b32.xlu2 %v7932_v6, %s7020_s21 }
 0xb43   :  { %v2497_v27 = vpop.xlane.xlu2 %2496 }
 0xb44   :  { %v2498_v28 = vsub.f32 %v2492_v18, %v2497_v27 }
 0xb46   :  { %v2499_v29 = vmul.f32 1.442695, %v2498_v28 }
 0xb48   :  { %6956 = vpow2.f32 %v2499_v29 }
 0xb4b   :  { %v2562_v30 = vpop.xlane.xlu1 %2561 }
 0xb4c   :  { %v2563_v31 = vsub.f32 %v2557_v20, %v2562_v30 }
 0xb4e   :  { %v6957_v32 = vpop.eup %6956  ;;  %v2564_v38 = vmul.f32 1.442695, %v2563_v31 }
 0xb4f   :  { %v2501_v33 = vsel %vm382_vm15, %v6957_v32, 0.0 }
 0xb50   :  { %6958 = vpow2.f32 %v2564_v38  ;;  %2502 = vadd.xlane.f32.xlu1 %v2501_v33 }
 0xb53   :  { %v2696_v34 = vpop.xlane.xlu0 %2695 }
 0xb54   :  { %v2697_v35 = vsub.f32 %v2691_v23, %v2696_v34  ;;  %v5645_v34 = vld [vmem:[%s8684_s6 + $0x80] sm:$0xf] }
 0xb56   :  { %v6959_v36 = vpop.eup %6958  ;;  %v2698_v22 = vmul.f32 1.442695, %v2697_v35  ;;  %v6747_v35 = vld [vmem:[%s8684_s6 + $0xbc] sm:$0xf0] }
 0xb57   :  { %v2566_v14 = vsel %vm382_vm15, %v6959_v36, 0.0 }
 0xb58   :  { %6960 = vpow2.f32 %v2698_v22  ;;  %2567 = vadd.xlane.f32.xlu0 %v2566_v14  ;;  %v5646_v22 = vor.u32 %v6747_v35, %v5645_v34  ;;  %v5647_v14 = vld [vmem:[%s8684_s6 + $0xc0] sm:$0xf0]  ;;  %v5693_v35 = vld [vmem:[%s8684_s6 + $0xb0] sm:$0xf] }
 0xb59   :  { %v2631_v37 = vpop.xlane.xlu2 %2630 }
 0xb5a   :  { %v2632_v39 = vsub.f32 %v2626_v26, %v2631_v37  ;;  %v5653_v37 = vld [vmem:[%s8684_s6 + $0x88] sm:$0xf] }
 0xb5c   :  { %v2633_v41 = vmul.f32 1.442695, %v2632_v39  ;;  %v6748_v39 = vld [vmem:[%s8684_s6 + $0xc4] sm:$0xf0] }
 0xb5e   :  { %v6961_v42 = vpop.eup %6960  ;;  %6962 = vpow2.f32 %v2633_v41 }
 0xb5f   :  { %v2700_v15 = vsel %vm382_vm15, %v6961_v42, 0.0 }
 0xb60   :  { %2701 = vadd.xlane.f32.xlu1 %v2700_v15  ;;  %v5654_v15 = vor.u32 %v6748_v39, %v5653_v37  ;;  %v5701_v37 = vld [vmem:[%s8684_s6 + $0xb8] sm:$0xf] }
 0xb61   :  { %v2507_v43 = vpop.permute.xlu2 %2506  ;;  %v6754_v39 = vld [vmem:[%s8684_s6 + $0xf4] sm:$0xf0] }
 0xb62   :  { %2527 = vmatpush.msra.mxu1 %v2507_v43  ;;  %v6740_v43 = vld [vmem:[%s8684_s6 + $0x8c] sm:$0xf] }
 0xb64   :  { %v6963_v44 = vpop.eup %6962 }
 0xb65   :  { %v2635_v45 = vsel %vm382_vm15, %v6963_v44, 0.0 }
 0xb66   :  { %2636 = vadd.xlane.f32.xlu2 %v2635_v45 }
 0xb6c   :  { %2571 = vrot.lane.b32.xlu0 %v7932_v6, %s7021_s22 }
 0xb74   :  { %2640 = vrot.lane.b32.xlu0 %v2466_v9, %s7020_s21 }
 0xb79   :  { %2705 = vrot.lane.b32.xlu1 %v2466_v9, %s7021_s22 }
 0xbc3   :  { %v2503_v46 = vpop.xlane.xlu1 %2502 }
 0xbc4   :  { %6964 = vrcp.f32 %v2503_v46 }
 0xbca   :  { %v6965_v47 = vpop.eup %6964 }
 0xbcb   :  { %v2505_v48 = vmul.f32 %v6965_v47, %v6957_v32  ;;  %v2568_v49 = vpop.xlane.xlu0 %2567  ;;  %v5661_v47 = vld [vmem:[%s8684_s6 + $0x90] sm:$0xf] }
 0xbcc   :  { %6966 = vrcp.f32 %v2568_v49  ;;  %v6741_v49 = vld [vmem:[%s8684_s6 + $0x94] sm:$0xf] }
 0xbcd   :  { %5608 = vmatmul.msk.f32.vlgmr.msra.gmra.mxu1 %vm382_vm15, %v2505_v48  ;;  %v6749_v48 = vld [vmem:[%s8684_s6 + $0xcc] sm:$0xf0] }
 0xbd2   :  { %v6967_v51 = vpop.eup %6966 }
 0xbd3   :  { %v2570_v52 = vmul.f32 %v6967_v51, %v6959_v36  ;;  %v2702_v54 = vpop.xlane.xlu1 %2701  ;;  %v6739_v36 = vld [vmem:[%s8684_s6 + $0x84] sm:$0xf]  ;;  %v5662_v51 = vor.u32 %v6749_v48, %v5661_v47  ;;  %v6778_v47 = vld [vmem:[%s8686_s8 + $0x4b8] sm:$0xff] }
 0xbd4   :  { %v6762_v48 = vld [vmem:[%s8686_s8 + $0x438] sm:$0xff] }
 0xbd9   :  { %v2637_v50 = vpop.xlane.xlu2 %2636 }
 0xbda   :  { %6968 = vrcp.f32 %v2637_v50 }
 0xbdb   :  { %6970 = vrcp.f32 %v2702_v54  ;;  %v6750_v54 = vld [vmem:[%s8684_s6 + $0xd4] sm:$0xf0] }
 0xbde   :  { %v2572_v53 = vpop.permute.xlu0 %2571 }
 0xbdf   :  { %2592 = vmatpush.msrb.mxu1 %v2572_v53  ;;  %v5669_v53 = vld [vmem:[%s8684_s6 + $0x98] sm:$0xf] }
 0xbe0   :  { %5611 = vmatmul.msk.f32.vlgmr.msrb.gmra.mxu1 %vm382_vm15, %v2570_v52  ;;  %v6969_v55 = vpop.eup %6968  ;;  %v5663_v52 = vld [vmem:[%s8684_s6 + $0xd0] sm:$0xf0] }
 0xbe1   :  { %v2639_v56 = vmul.f32 %v6969_v55, %v6963_v44  ;;  %v6971_v59 = vpop.eup %6970  ;;  %v5655_v44 = vld [vmem:[%s8684_s6 + $0xc8] sm:$0xf0]  ;;  %v5666_v55 = vor.u32 %v6741_v49, %v5663_v52  ;;  %v6786_v49 = vld [vmem:[%s8686_s8 + $0x4f8] sm:$0xff]  ;;  %v6761_v52 = vld [vmem:[%s8686_s8 + $0x430] sm:$0xff] }
 0xbe2   :  { %v2704_v60 = vmul.f32 %v6971_v59, %v6961_v42  ;;  %v5650_v42 = vor.u32 %v6739_v36, %v5647_v14  ;;  %v5658_v45 = vor.u32 %v6740_v43, %v5655_v44  ;;  %v5671_v59 = vld [vmem:[%s8684_s6 + $0xd8] sm:$0xf0]  ;;  %v6753_v36 = vld [vmem:[%s8684_s6 + $0xec] sm:$0xf0]  ;;  %v5695_v14 = vld [vmem:[%s8684_s6 + $0xf0] sm:$0xf0]  ;;  %v5702_v44 = vor.u32 %v6754_v39, %v5701_v37 }
 0xbe3   :  { %v6790_v37 = vld [vmem:[%s8686_s8 + $0x518] sm:$0xff] }
 0xbe4   :  { %2975 = vmatpush.bf16.msrb.mxu0 %v5650_v42  ;;  %3003 = vmatpush.bf16.msra.mxu2 %v5658_v45  ;;  %v5703_v42 = vld [vmem:[%s8684_s6 + $0xf8] sm:$0xf0] }
 0xbe5   :  { %v6814_v39 = vld [vmem:[%s8686_s8 + $0x5d8] sm:$0xff] }
 0xbe6   :  { %v2641_v57 = vpop.permute.xlu0 %2640 }
 0xbe7   :  { %2661 = vmatpush.msrb.mxu3 %v2641_v57  ;;  %v6742_v57 = vld [vmem:[%s8684_s6 + $0x9c] sm:$0xf] }
 0xbe8   :  { %5614 = vmatmul.msk.f32.vlgmr.msrb.gmra.mxu3 %vm382_vm15, %v2639_v56  ;;  %v5670_v56 = vor.u32 %v6750_v54, %v5669_v53  ;;  %3031 = vmatpush.bf16.msra.mxu0 %v5666_v55  ;;  %v6785_v53 = vld [vmem:[%s8686_s8 + $0x4f0] sm:$0xff]  ;;  %v6768_v54 = vld [vmem:[%s8686_s8 + $0x468] sm:$0xff] }
 0xbe9   :  { %2961 = vmatpush.bf16.msra.mxu3 %v5646_v22  ;;  %v6745_v22 = vld [vmem:[%s8684_s6 + $0xb4] sm:$0xf]  ;;  %v6776_v55 = vld [vmem:[%s8686_s8 + $0x4a8] sm:$0xff] }
 0xbea   :  { %v5698_v43 = vor.u32 %v6745_v22, %v5695_v14  ;;  %v6797_v22 = vld [vmem:[%s8686_s8 + $0x550] sm:$0xff] }
 0xbeb   :  { %v2706_v61 = vpop.permute.xlu1 %2705  ;;  %v6805_v14 = vld [vmem:[%s8686_s8 + $0x590] sm:$0xff] }
 0xbec   :  { %2726 = vmatpush.msra.mxu1 %v2706_v61 }
 0xbed   :  { %5617 = vmatmul.msk.f32.vlgmr.msra.gmra.mxu1 %vm382_vm15, %v2704_v60  ;;  %3017 = vmatpush.bf16.msrb.mxu3 %v5662_v51  ;;  %v6777_v51 = vld [vmem:[%s8686_s8 + $0x4b0] sm:$0xff] }
 0xbee   :  { %2989 = vmatpush.bf16.msrb.mxu1 %v5654_v15  ;;  %v5694_v15 = vor.u32 %v6753_v36, %v5693_v35  ;;  %v6791_v35 = vld [vmem:[%s8686_s8 + $0x520] sm:$0xff] }
 0xbef   :  { %v6815_v36 = vld [vmem:[%s8686_s8 + $0x5e0] sm:$0xff] }
 0xbf2   :  { %3045 = vmatpush.bf16.msra.mxu1 %v5670_v56  ;;  %v6760_v56 = vld [vmem:[%s8686_s8 + $0x428] sm:$0xff] }
 0xc4a   :  { %v2529_v62 = vpop.f32.mrf.mxu1 }
 0xc5d   :  { %v2594_v0 = vpop.f32.mrf.mxu1 }
 0xc6a   :  { %v2728_v1 = vpop.f32.mrf.mxu1 }
 0xc6b   :  { %v6919_v25 = vpack.i.bf16 %v2728_v1, %v2594_v0  ;;  %v2663_v9 = vpop.f32.mrf.mxu3 }
 0xc6d   :  { %6920 = vrot.lane.b32.xlu0 %v6919_v25, %s7022_s23 }
 0xcdf   :  { %v6921_v5 = vpop.permute.xlu0 %6920 }
 0xce0   :  { %v6923_v6 = vunpack.i.h.bf16 %v6921_v5  ;;  %v6922_v7 = vunpack.i.l.bf16 %v6921_v5 }
 0xce2   :  { %v2735_v10 = vsel %vm382_vm15, %v2663_v9, %v6923_v6  ;;  %v2601_v11 = vsel %vm382_vm15, %v2529_v62, %v6922_v7  ;;  %v5674_v62 = vor.u32 %v6742_v57, %v5671_v59  ;;  %v6784_v57 = vld [vmem:[%s8686_s8 + $0x4e8] sm:$0xff]  ;;  %v6767_v59 = vld [vmem:[%s8686_s8 + $0x460] sm:$0xff] }
 0xce3   :  { %v2736_v12 = vpack.c.bf16 %v2735_v10, %v2601_v11 }
 0xce5   :  { %5624 = vmatmul.msk.bf16.vlgmr.msrb.gmra.mxu2 %vm291_vm7, %v2736_v12 }
 0xce6   :  { %3059 = vmatpush.bf16.msrb.mxu2 %v5674_v62  ;;  %v6783_v62 = vld [vmem:[%s8686_s8 + $0x4e0] sm:$0xff] }
 0xd68   :  { %v2759_v17 = vpop.f32.mrf.mxu2 }
 0xd69   :  { %v2760_v8 = vadd.f32 %v2759_v17, %v2740_v13 }
 0xd6b   :  { %v2764_v18 = vadd.f32 %v2760_v8, %v7922_v2 }
 0xd6d   :  { %v2766_v19 = vsel %vm291_vm7, %v2764_v18, 0.0 }
 0xd6e   :  { %2767 = vadd.xlane.f32.xlu1 %v2766_v19  ;;  %v2813_v19 = vperm.slane %v7919_v58, 3 }
 0xd70   :  { %v2761_v20 = vpop.f32.mrf.mxu2 }
 0xd71   :  { %v2762_v21 = vadd.f32 %v2761_v20, %v2740_v13  ;;  %v2810_v13 = vperm.slane %v7919_v58, 2  ;;  %v5679_v58 = vld [vmem:[%s8684_s6 + $0xe0] sm:$0xf0] }
 0xd73   :  { %v2765_v23 = vadd.f32 %v2762_v21, %v7924_v3 }
 0xd75   :  { %v2769_v24 = vsel %vm291_vm7, %v2765_v23, 0.0 }
 0xd76   :  { %2770 = vadd.xlane.f32.xlu0 %v2769_v24  ;;  %v5677_v24 = vld [vmem:[%s8684_s6 + $0xa0] sm:$0xf] }
 0xde1   :  { %v2768_v26 = vpop.xlane.xlu1 %2767 }
 0xde2   :  { %v2772_v63 = vmul.f32 %v2768_v26, %v7248_v40  ;;  %v6751_v26 = vld [vmem:[%s8684_s6 + $0xdc] sm:$0xf0] }
 0xde4   :  { %v7983_v27 = vsub.f32 %v2764_v18, %v2772_v63  ;;  %v6743_v63 = vld [vmem:[%s8684_s6 + $0xa4] sm:$0xf] }
 0xde6   :  { %v2776_v28 = vmul.f32 %v7983_v27, %v7983_v27 }
 0xde8   :  { %v2778_v2 = vsel %vm291_vm7, %v2776_v28, 0.0 }
 0xde9   :  { %v2771_v29 = vpop.xlane.xlu0 %2770  ;;  %2779 = vadd.xlane.f32.xlu2 %v2778_v2 }
 0xdea   :  { %v2773_v30 = vmul.f32 %v2771_v29, %v7248_v40  ;;  %v6752_v29 = vld [vmem:[%s8684_s6 + $0xe4] sm:$0xf0] }
 0xdec   :  { %v7989_v31 = vsub.f32 %v2765_v23, %v2773_v30  ;;  %v6744_v30 = vld [vmem:[%s8684_s6 + $0xac] sm:$0xf] }
 0xdee   :  { %v2777_v3 = vmul.f32 %v7989_v31, %v7989_v31 }
 0xdf0   :  { %v2781_v32 = vsel %vm291_vm7, %v2777_v3, 0.0 }
 0xdf1   :  { %2782 = vadd.xlane.f32.xlu2 %v2781_v32  ;;  %v5678_v32 = vor.u32 %v6751_v26, %v5677_v24  ;;  %v6818_v24 = vld [vmem:[%s8686_s8 + $0x5f8] sm:$0xff]  ;;  %v6801_v26 = vld [vmem:[%s8686_s8 + $0x570] sm:$0xff] }
 0xe5c   :  { %v2780_v38 = vpop.xlane.xlu2 %2779 }
 0xe5d   :  { %v2784_v33 = vmul.f32 %v2780_v38, %v7248_v40  ;;  %v5682_v38 = vor.u32 %v6743_v63, %v5679_v58  ;;  %v6809_v63 = vld [vmem:[%s8686_s8 + $0x5b0] sm:$0xff] }
 0xe5e   :  { %v6793_v58 = vld [vmem:[%s8686_s8 + $0x530] sm:$0xff] }
 0xe5f   :  { %v2786_v41 = vadd.f32 1e-05, %v2784_v33 }
 0xe61   :  { %6972 = vrsqrt.f32 %v2786_v41  ;;  %vm2794_vm14 = vweird.f32 %v2786_v41 }
 0xe64   :  { %v2783_v46 = vpop.xlane.xlu2 %2782 }
 0xe65   :  { %v2785_v50 = vmul.f32 %v2783_v46, %v7248_v40  ;;  %v6770_v46 = vld [vmem:[%s8686_s8 + $0x478] sm:$0xff] }
 0xe67   :  { %v6973_v60 = vpop.eup %6972  ;;  %v2787_v61 = vadd.f32 1e-05, %v2785_v50  ;;  %v6769_v50 = vld [vmem:[%s8686_s8 + $0x470] sm:$0xff] }
 0xe68   :  { %v2789_v0 = vmul.f32 %v6973_v60, %v2786_v41  ;;  %vm2795_vm13 = vweird.f32 %v6973_v60  ;;  %v6746_v41 = vld [vmem:[%s8684_s6 + $0xbc] sm:$0xf] }
 0xe69   :  { %6974 = vrsqrt.f32 %v2787_v61  ;;  %vm2796_vm15 = vmor %vm2794_vm14, %vm2795_vm13  ;;  %vm2804_vm1 = vweird.f32 %v2787_v61  ;;  %v5706_v45 = vor.u32 %v6746_v41, %v5703_v42  ;;  %v6796_v41 = vld [vmem:[%s8686_s8 + $0x548] sm:$0xff] }
 0xe6a   :  { %v2790_v1 = vmul.f32 %v6973_v60, %v2789_v0  ;;  %v6766_v0 = vld [vmem:[%s8686_s8 + $0x458] sm:$0xff]  ;;  %v6804_v42 = vld [vmem:[%s8686_s8 + $0x588] sm:$0xff] }
 0xe6c   :  { %v2791_v25 = vmul.f32 0.5, %v2790_v1  ;;  %v6774_v1 = vld [vmem:[%s8686_s8 + $0x498] sm:$0xff] }
 0xe6e   :  { %v2792_v4 = vsub.f32 1.5, %v2791_v25  ;;  %v6758_v25 = vld [vmem:[%s8686_s8 + $0x418] sm:$0xff] }
 0xe6f   :  { %v6975_v5 = vpop.eup %6974 }
 0xe70   :  { %v2793_v6 = vmul.f32 %v6973_v60, %v2792_v4  ;;  %v2799_v7 = vmul.f32 %v6975_v5, %v2787_v61  ;;  %vm2805_vm0 = vweird.f32 %v6975_v5  ;;  %v6759_v61 = vld [vmem:[%s8686_s8 + $0x420] sm:$0xff]  ;;  %v6782_v4 = vld [vmem:[%s8686_s8 + $0x4d8] sm:$0xff] }
 0xe71   :  { %vm2806_vm2 = vmor %vm2804_vm1, %vm2805_vm0 }
 0xe72   :  { %v2800_v9 = vmul.f32 %v6975_v5, %v2799_v7  ;;  %v2797_v10 = vsel %vm2796_vm15, %v6973_v60, %v2793_v6  ;;  %v6775_v60 = vld [vmem:[%s8686_s8 + $0x4a0] sm:$0xff]  ;;  %v6773_v6 = vld [vmem:[%s8686_s8 + $0x490] sm:$0xff] }
 0xe73   :  { %v2808_v17 = vmul.f32 %v2797_v10, %v7983_v27  ;;  %v5685_v27 = vld [vmem:[%s8684_s6 + $0xa8] sm:$0xf]  ;;  %v6757_v7 = vld [vmem:[%s8686_s8 + $0x410] sm:$0xff] }
 0xe74   :  { %v2801_v11 = vmul.f32 0.5, %v2800_v9  ;;  %v5686_v33 = vor.u32 %v6752_v29, %v5685_v27  ;;  %v6781_v9 = vld [vmem:[%s8686_s8 + $0x4d0] sm:$0xff]  ;;  %v6764_v10 = vld [vmem:[%s8686_s8 + $0x448] sm:$0xff] }
 0xe75   :  { %v2811_v20 = vmul.f32 %v2810_v13, %v2808_v17  ;;  %v6763_v17 = vld [vmem:[%s8686_s8 + $0x440] sm:$0xff]  ;;  %v6817_v27 = vld [vmem:[%s8686_s8 + $0x5f0] sm:$0xff]  ;;  %v6800_v29 = vld [vmem:[%s8686_s8 + $0x568] sm:$0xff] }
 0xe76   :  { %v2802_v12 = vsub.f32 1.5, %v2801_v11  ;;  %v6772_v11 = vld [vmem:[%s8686_s8 + $0x488] sm:$0xff] }
 0xe77   :  { %v8063_v28 = vadd.f32 %v2813_v19, %v2811_v20  ;;  %v6755_v20 = vld [vmem:[%s8686_s8 + $0x400] sm:$0xff] }
 0xe78   :  { %v2803_v8 = vmul.f32 %v6975_v5, %v2802_v12  ;;  %v6756_v12 = vld [vmem:[%s8686_s8 + $0x408] sm:$0xff] }
 0xe7a   :  { %v2807_v18 = vsel %vm2806_vm2, %v6975_v5, %v2803_v8  ;;  %v6765_v5 = vld [vmem:[%s8686_s8 + $0x450] sm:$0xff]  ;;  %v6771_v8 = vld [vmem:[%s8686_s8 + $0x480] sm:$0xff]  ;;  %vm4870_vm2 = vcmask 122880  }
 0xe7b   :  { %v2809_v21 = vmul.f32 %v2807_v18, %v7989_v31  ;;  %v5687_v31 = vld [vmem:[%s8684_s6 + $0xe8] sm:$0xf0]  ;;  %v6802_v18 = vld [vmem:[%s8686_s8 + $0x578] sm:$0xff] }
 0xe7c   :  { %v5690_v34 = vor.u32 %v6744_v30, %v5687_v31  ;;  %v6808_v30 = vld [vmem:[%s8686_s8 + $0x5a8] sm:$0xff]  ;;  %v6799_v31 = vld [vmem:[%s8686_s8 + $0x560] sm:$0xff] }
 0xe7d   :  { %v2812_v23 = vmul.f32 %v2810_v13, %v2809_v21  ;;  %v6780_v13 = vld [vmem:[%s8686_s8 + $0x4c8] sm:$0xff]  ;;  %v6779_v21 = vld [vmem:[%s8686_s8 + $0x4c0] sm:$0xff] }
 0xe7f   :  { %v8065_v2 = vadd.f32 %v2813_v19, %v2812_v23  ;;  %v6810_v19 = vld [vmem:[%s8686_s8 + $0x5b8] sm:$0xff] }
 0xe80   :  { %v6794_v23 = vld [vmem:[%s8686_s8 + $0x538] sm:$0xff] }
 0xe81   :  { %v8078_v3 = vpack.c.bf16 %v8065_v2, %v8063_v28 }
 0xe83   :  { %5707 = vmatmul.msk.bf16.vlgmr.msra.gmra.mxu3 %vm291_vm7, %v8078_v3  ;;  %5708 = vmatmul.msk.bf16.vlgmr.msrb.gmra.mxu0 %vm291_vm7, %v8078_v3 }
 0xe84   :  { %5709 = vmatmul.msk.bf16.vlgmr.msrb.gmra.mxu1 %vm291_vm7, %v8078_v3  ;;  %5710 = vmatmul.msk.bf16.vlgmr.msra.gmra.mxu2 %vm291_vm7, %v8078_v3 }
 0xe85   :  { %3073 = vmatpush.bf16.msra.mxu3 %v5678_v32  ;;  %3087 = vmatpush.bf16.msrb.mxu0 %v5682_v38  ;;  %v6792_v32 = vld [vmem:[%s8686_s8 + $0x528] sm:$0xff] }
 0xe86   :  { %3101 = vmatpush.bf16.msrb.mxu1 %v5686_v33  ;;  %3115 = vmatpush.bf16.msra.mxu2 %v5690_v34  ;;  %v6816_v38 = vld [vmem:[%s8686_s8 + $0x5e8] sm:$0xff]  ;;  %v6798_v33 = vld [vmem:[%s8686_s8 + $0x558] sm:$0xff] }
 0xe87   :  { %v6806_v34 = vld [vmem:[%s8686_s8 + $0x598] sm:$0xff] }
 0xe93   :  { %5711 = vmatmul.msk.bf16.vlgmr.msrb.gmra.mxu3 %vm291_vm7, %v8078_v3  ;;  %5712 = vmatmul.msk.bf16.vlgmr.msra.gmra.mxu0 %vm291_vm7, %v8078_v3 }
 0xe94   :  { %5713 = vmatmul.msk.bf16.vlgmr.msra.gmra.mxu1 %vm291_vm7, %v8078_v3  ;;  %5714 = vmatmul.msk.bf16.vlgmr.msrb.gmra.mxu2 %vm291_vm7, %v8078_v3 }
 0xe95   :  { %3129 = vmatpush.bf16.msrb.mxu3 %v5694_v15  ;;  %3143 = vmatpush.bf16.msra.mxu0 %v5698_v43  ;;  %v6789_v15 = vld [vmem:[%s8686_s8 + $0x510] sm:$0xff] }
 0xe96   :  { %3157 = vmatpush.bf16.msra.mxu1 %v5702_v44  ;;  %3171 = vmatpush.bf16.msrb.mxu2 %v5706_v45  ;;  %v6813_v43 = vld [vmem:[%s8686_s8 + $0x5d0] sm:$0xff]  ;;  %v6795_v44 = vld [vmem:[%s8686_s8 + $0x540] sm:$0xff] }
 0xe97   :  { %v6803_v45 = vld [vmem:[%s8686_s8 + $0x580] sm:$0xff] }
 0xea3   :  { %5715 = vmatmul.msk.bf16.vlgmr.msra.gmra.mxu3 %vm291_vm7, %v8078_v3  ;;  %5716 = vmatmul.msk.bf16.vlgmr.msrb.gmra.mxu0 %vm291_vm7, %v8078_v3 }
 0xea4   :  { %5717 = vmatmul.msk.bf16.vlgmr.msrb.gmra.mxu1 %vm291_vm7, %v8078_v3  ;;  %5718 = vmatmul.msk.bf16.vlgmr.msra.gmra.mxu2 %vm291_vm7, %v8078_v3 }
 0xea5   :  { %4266 = vmatpush.bf16.msrb.mxu0 %v6770_v46  ;;  %4280 = vmatpush.bf16.msrb.mxu1 %v6778_v47  ;;  %v6788_v46 = vld [vmem:[%s8686_s8 + $0x508] sm:$0xff] }
 0xea6   :  { %4252 = vmatpush.bf16.msra.mxu3 %v6762_v48  ;;  %4294 = vmatpush.bf16.msra.mxu2 %v6786_v49  ;;  %v6812_v47 = vld [vmem:[%s8686_s8 + $0x5c8] sm:$0xff]  ;;  %v6787_v48 = vld [vmem:[%s8686_s8 + $0x500] sm:$0xff] }
 0xea7   :  { %v6811_v49 = vld [vmem:[%s8686_s8 + $0x5c0] sm:$0xff] }
 0xea9   :  { %4267 = vmatpush.bf16.msrb.mxu0 %v6769_v50  ;;  %4281 = vmatpush.bf16.msrb.mxu1 %v6777_v51  ;;  %v8331_v50 = vld [vmem:[%s8685_s7 + $0x10] sm:$0xff] }
 0xeaa   :  { %4253 = vmatpush.bf16.msra.mxu3 %v6761_v52  ;;  %4295 = vmatpush.bf16.msra.mxu2 %v6785_v53  ;;  %v2840_v53 = vperm.slane %v8331_v50, 1 }
 0xead   :  { %4268 = vmatpush.bf16.msrb.mxu0 %v6768_v54  ;;  %4282 = vmatpush.bf16.msrb.mxu1 %v6776_v55  ;;  %v2841_v54 = vperm.slane %v8331_v50, 2 }
 0xeae   :  { %4254 = vmatpush.bf16.msra.mxu3 %v6760_v56  ;;  %4296 = vmatpush.bf16.msra.mxu2 %v6784_v57 }
 0xeb1   :  { %4269 = vmatpush.bf16.msrb.mxu0 %v6767_v59  ;;  %4283 = vmatpush.bf16.msrb.mxu1 %v6775_v60 }
 0xeb2   :  { %4255 = vmatpush.bf16.msra.mxu3 %v6759_v61  ;;  %4297 = vmatpush.bf16.msra.mxu2 %v6783_v62  ;;  %v2839_v61 = vperm.slane %v8331_v50, 0 }
 0xeb3   :  { %5719 = vmatmul.msk.bf16.vlgmr.msrb.gmra.mxu3 %vm291_vm7, %v8078_v3  ;;  %5720 = vmatmul.msk.bf16.vlgmr.msra.gmra.mxu0 %vm291_vm7, %v8078_v3 }
 0xeb4   :  { %5721 = vmatmul.msk.bf16.vlgmr.msra.gmra.mxu1 %vm291_vm7, %v8078_v3  ;;  %5722 = vmatmul.msk.bf16.vlgmr.msrb.gmra.mxu2 %vm291_vm7, %v8078_v3  ;;  %v6807_v3 = vld [vmem:[%s8686_s8 + $0x5a0] sm:$0xff] }
 0xeb5   :  { %4270 = vmatpush.bf16.msrb.mxu0 %v6766_v0  ;;  %4284 = vmatpush.bf16.msrb.mxu1 %v6774_v1  ;;  %v2842_v1 = vperm.slane %v8331_v50, 3 }
 0xeb6   :  { %4256 = vmatpush.bf16.msra.mxu3 %v6758_v25  ;;  %4298 = vmatpush.bf16.msra.mxu2 %v6782_v4 }
 0xeb9   :  { %4271 = vmatpush.bf16.msrb.mxu0 %v6765_v5  ;;  %4285 = vmatpush.bf16.msrb.mxu1 %v6773_v6 }
 0xeba   :  { %4257 = vmatpush.bf16.msra.mxu3 %v6757_v7  ;;  %4299 = vmatpush.bf16.msra.mxu2 %v6781_v9  ;;  %v6834_v9 = vld [vmem:[%s8686_s8 + $0x678] sm:$0xff] }
 0xebd   :  { %4272 = vmatpush.bf16.msrb.mxu0 %v6764_v10  ;;  %4286 = vmatpush.bf16.msrb.mxu1 %v6772_v11 }
 0xebe   :  { %4258 = vmatpush.bf16.msra.mxu3 %v6756_v12  ;;  %4300 = vmatpush.bf16.msra.mxu2 %v6780_v13  ;;  %v6842_v12 = vld [vmem:[%s8686_s8 + $0x6b8] sm:$0xff] }
 0xec1   :  { %4273 = vmatpush.bf16.msrb.mxu0 %v6763_v17  ;;  %4287 = vmatpush.bf16.msrb.mxu1 %v6771_v8 }
 0xec2   :  { %4259 = vmatpush.bf16.msra.mxu3 %v6755_v20  ;;  %4301 = vmatpush.bf16.msra.mxu2 %v6779_v21 }
 0xec5   :  { %4322 = vmatpush.bf16.msra.mxu0 %v6802_v18  ;;  %4336 = vmatpush.bf16.msra.mxu1 %v6810_v19 }
 0xec6   :  { %4308 = vmatpush.bf16.msrb.mxu3 %v6794_v23  ;;  %4350 = vmatpush.bf16.msrb.mxu2 %v6818_v24  ;;  %v6833_v23 = vld [vmem:[%s8686_s8 + $0x670] sm:$0xff] }
 0xec9   :  { %4323 = vmatpush.bf16.msra.mxu0 %v6801_v26  ;;  %4337 = vmatpush.bf16.msra.mxu1 %v6809_v63 }
 0xeca   :  { %4309 = vmatpush.bf16.msrb.mxu3 %v6793_v58  ;;  %4351 = vmatpush.bf16.msrb.mxu2 %v6817_v27  ;;  %v6841_v58 = vld [vmem:[%s8686_s8 + $0x6b0] sm:$0xff] }
 0xecd   :  { %4324 = vmatpush.bf16.msra.mxu0 %v6800_v29  ;;  %4338 = vmatpush.bf16.msra.mxu1 %v6808_v30  ;;  %v6826_v30 = vld [vmem:[%s8686_s8 + $0x638] sm:$0xff] }
 0xece   :  { %4310 = vmatpush.bf16.msrb.mxu3 %v6792_v32  ;;  %4352 = vmatpush.bf16.msrb.mxu2 %v6816_v38  ;;  %v6850_v32 = vld [vmem:[%s8686_s8 + $0x6f8] sm:$0xff] }
 0xed1   :  { %4325 = vmatpush.bf16.msra.mxu0 %v6799_v31  ;;  %4339 = vmatpush.bf16.msra.mxu1 %v6807_v3  ;;  %v2844_v3 = vperm.slane %v8331_v50, 5 }
 0xed2   :  { %4311 = vmatpush.bf16.msrb.mxu3 %v6791_v35  ;;  %4353 = vmatpush.bf16.msrb.mxu2 %v6815_v36  ;;  %v6840_v35 = vld [vmem:[%s8686_s8 + $0x6a8] sm:$0xff] }
 0xed5   :  { %4326 = vmatpush.bf16.msra.mxu0 %v6798_v33  ;;  %4340 = vmatpush.bf16.msra.mxu1 %v6806_v34  ;;  %v2845_v33 = vperm.slane %v8331_v50, 6  ;;  %v6832_v34 = vld [vmem:[%s8686_s8 + $0x668] sm:$0xff] }
 0xed6   :  { %4312 = vmatpush.bf16.msrb.mxu3 %v6790_v37  ;;  %4354 = vmatpush.bf16.msrb.mxu2 %v6814_v39  ;;  %v6849_v39 = vld [vmem:[%s8686_s8 + $0x6f0] sm:$0xff] }
 0xed9   :  { %4327 = vmatpush.bf16.msra.mxu0 %v6797_v22  ;;  %4341 = vmatpush.bf16.msra.mxu1 %v6805_v14  ;;  %v6825_v22 = vld [vmem:[%s8686_s8 + $0x630] sm:$0xff] }
 0xeda   :  { %4313 = vmatpush.bf16.msrb.mxu3 %v6789_v15  ;;  %4355 = vmatpush.bf16.msrb.mxu2 %v6813_v43  ;;  %v6831_v15 = vld [vmem:[%s8686_s8 + $0x660] sm:$0xff]  ;;  %v2843_v43 = vperm.slane %v8331_v50, 4 }
 0xedd   :  { %4328 = vmatpush.bf16.msra.mxu0 %v6796_v41  ;;  %4342 = vmatpush.bf16.msra.mxu1 %v6804_v42 }
 0xede   :  { %4314 = vmatpush.bf16.msrb.mxu3 %v6788_v46  ;;  %4356 = vmatpush.bf16.msrb.mxu2 %v6812_v47  ;;  %v6839_v46 = vld [vmem:[%s8686_s8 + $0x6a0] sm:$0xff]  ;;  %v2846_v47 = vperm.slane %v8331_v50, 7  ;;  %v6830_v50 = vld [vmem:[%s8686_s8 + $0x658] sm:$0xff] }
 0xee1   :  { %4329 = vmatpush.bf16.msra.mxu0 %v6795_v44  ;;  %4343 = vmatpush.bf16.msra.mxu1 %v6803_v45 }
 0xee2   :  { %4315 = vmatpush.bf16.msrb.mxu3 %v6787_v48  ;;  %4357 = vmatpush.bf16.msrb.mxu2 %v6811_v49  ;;  %v6824_v49 = vld [vmem:[%s8686_s8 + $0x628] sm:$0xff] }
 0xf00   :  { %v2977_v51 = vpop.f32.mrf.mxu0 }
 0xf01   :  { %v2991_v52 = vpop.f32.mrf.mxu1  ;;  %v2978_v56 = vadd.f32 %v2977_v51, %v2840_v53 }
 0xf02   :  { %v2992_v59 = vadd.f32 %v2991_v52, %v2841_v54 }
 0xf03   :  { %v3179_v4 = vmax.f32 %v2978_v56, 0.0 }
 0xf04   :  { %v3180_v6 = vmax.f32 %v2992_v59, 0.0  ;;  %v6838_v59 = vld [vmem:[%s8686_s8 + $0x698] sm:$0xff] }
 0xf06   :  { %v2963_v55 = vpop.f32.mrf.mxu3 }
 0xf07   :  { %v3005_v57 = vpop.f32.mrf.mxu2  ;;  %v2964_v10 = vadd.f32 %v2963_v55, %v2839_v61 }
 0xf08   :  { %v2979_v60 = vpop.f32.mrf.mxu0  ;;  %v3006_v13 = vadd.f32 %v3005_v57, %v2842_v1 }
 0xf09   :  { %v2980_v62 = vadd.f32 %v2979_v60, %v2840_v53  ;;  %v2993_v0 = vpop.f32.mrf.mxu1  ;;  %v3178_v24 = vmax.f32 %v2964_v10, 0.0  ;;  %v6848_v53 = vld [vmem:[%s8686_s8 + $0x6e8] sm:$0xff] }
 0xf0a   :  { %v2994_v25 = vadd.f32 %v2993_v0, %v2841_v54  ;;  %v3181_v27 = vmax.f32 %v3006_v13, 0.0  ;;  %v6823_v0 = vld [vmem:[%s8686_s8 + $0x620] sm:$0xff]  ;;  %v6837_v13 = vld [vmem:[%s8686_s8 + $0x690] sm:$0xff] }
 0xf0b   :  { %v3195_v5 = vmax.f32 %v2980_v62, 0.0 }
 0xf0c   :  { %v3196_v7 = vmax.f32 %v2994_v25, 0.0 }
 0xf0d   :  { %v3211_v11 = vpack.c.bf16 %v3195_v5, %v3179_v4  ;;  %v6847_v4 = vld [vmem:[%s8686_s8 + $0x6e0] sm:$0xff] }
 0xf0e   :  { %v3212_v17 = vpack.c.bf16 %v3196_v7, %v3180_v6  ;;  %v2965_v8 = vpop.f32.mrf.mxu3  ;;  %v8398_v6 = vld [vmem:[%s8685_s7 + $0x18] sm:$0xff] }
 0xf0f   :  { %v2966_v18 = vadd.f32 %v2965_v8, %v2839_v61  ;;  %v3007_v19 = vpop.f32.mrf.mxu2  ;;  %4274 = vmatmul.bf16.vlgmr.msrb.gmra.mxu0 %v3211_v11 }
 0xf10   :  { %v3008_v20 = vadd.f32 %v3007_v19, %v2842_v1  ;;  %4288 = vmatmul.bf16.vlgmr.msrb.gmra.mxu1 %v3212_v17  ;;  %4378 = vmatpush.bf16.msrb.mxu0 %v6834_v9  ;;  %v3033_v21 = vpop.f32.mrf.mxu0  ;;  %v6829_v9 = vld [vmem:[%s8686_s8 + $0x650] sm:$0xff] }
 0xf11   :  { %v3194_v26 = vmax.f32 %v2966_v18, 0.0  ;;  %4392 = vmatpush.bf16.msrb.mxu1 %v6842_v12  ;;  %v3047_v63 = vpop.f32.mrf.mxu1  ;;  %v3034_v14 = vadd.f32 %v3033_v21, %v2844_v3  ;;  %v6822_v18 = vld [vmem:[%s8686_s8 + $0x618] sm:$0xff] }
 0xf12   :  { %v3197_v29 = vmax.f32 %v3008_v20, 0.0  ;;  %v3048_v41 = vadd.f32 %v3047_v63, %v2845_v33  ;;  %v2848_v20 = vperm.slane %v8398_v6, 1  ;;  %v6846_v21 = vld [vmem:[%s8686_s8 + $0x6d8] sm:$0xff]  ;;  %v6836_v63 = vld [vmem:[%s8686_s8 + $0x688] sm:$0xff] }
 0xf13   :  { %v3210_v31 = vpack.c.bf16 %v3194_v26, %v3178_v24  ;;  %v3183_v51 = vmax.f32 %v3034_v14, 0.0  ;;  %v2849_v24 = vperm.slane %v8398_v6, 2  ;;  %v6828_v26 = vld [vmem:[%s8686_s8 + $0x648] sm:$0xff]  ;;  %v2850_v14 = vperm.slane %v8398_v6, 3 }
 0xf14   :  { %v3213_v38 = vpack.c.bf16 %v3197_v29, %v3181_v27  ;;  %4379 = vmatpush.bf16.msrb.mxu0 %v6833_v23  ;;  %v3184_v54 = vmax.f32 %v3048_v41, 0.0  ;;  %v6821_v27 = vld [vmem:[%s8686_s8 + $0x610] sm:$0xff]  ;;  %v6820_v41 = vld [vmem:[%s8686_s8 + $0x608] sm:$0xff] }
 0xf15   :  { %4393 = vmatpush.bf16.msrb.mxu1 %v6841_v58  ;;  %4260 = vmatmul.bf16.vlgmr.msra.gmra.mxu3 %v3210_v31  ;;  %v6845_v31 = vld [vmem:[%s8686_s8 + $0x6d0] sm:$0xff] }
 0xf16   :  { %4302 = vmatmul.bf16.vlgmr.msra.gmra.mxu2 %v3213_v38  ;;  %4364 = vmatpush.bf16.msra.mxu3 %v6826_v30  ;;  %v3019_v36 = vpop.f32.mrf.mxu3  ;;  %v6827_v38 = vld [vmem:[%s8686_s8 + $0x640] sm:$0xff] }
 0xf17   :  { %4406 = vmatpush.bf16.msra.mxu2 %v6850_v32  ;;  %v3061_v37 = vpop.f32.mrf.mxu2  ;;  %v3020_v56 = vadd.f32 %v3019_v36, %v2843_v43  ;;  %v6835_v36 = vld [vmem:[%s8686_s8 + $0x680] sm:$0xff] }
 0xf18   :  { %4380 = vmatpush.bf16.msrb.mxu0 %v6832_v34  ;;  %v3035_v42 = vpop.f32.mrf.mxu0  ;;  %v3062_v60 = vadd.f32 %v3061_v37, %v2846_v47 }
 0xf19   :  { %4394 = vmatpush.bf16.msrb.mxu1 %v6840_v35  ;;  %v3036_v44 = vadd.f32 %v3035_v42, %v2844_v3  ;;  %v3049_v45 = vpop.f32.mrf.mxu1  ;;  %v3182_v10 = vmax.f32 %v3020_v56, 0.0  ;;  %v6843_v56 = vld [vmem:[%s8686_s8 + $0x6c0] sm:$0xff] }
 0xf1a   :  { %v3050_v48 = vadd.f32 %v3049_v45, %v2845_v33  ;;  %4365 = vmatpush.bf16.msra.mxu3 %v6825_v22  ;;  %v3185_v17 = vmax.f32 %v3062_v60, 0.0  ;;  %v2847_v33 = vperm.slane %v8398_v6, 0  ;;  %v6866_v22 = vld [vmem:[%s8686_s8 + $0x778] sm:$0xff] }
 0xf1b   :  { %v3199_v52 = vmax.f32 %v3036_v44, 0.0  ;;  %4407 = vmatpush.bf16.msra.mxu2 %v6849_v39  ;;  %v6874_v39 = vld [vmem:[%s8686_s8 + $0x7b8] sm:$0xff] }
 0xf1c   :  { %v3200_v55 = vmax.f32 %v3050_v48, 0.0  ;;  %4381 = vmatpush.bf16.msrb.mxu0 %v6831_v15  ;;  %v6865_v48 = vld [vmem:[%s8686_s8 + $0x770] sm:$0xff]  ;;  %v6882_v60 = vld [vmem:[%s8686_s8 + $0x7f8] sm:$0xff] }
 0xf1d   :  { %v3215_v57 = vpack.c.bf16 %v3199_v52, %v3183_v51  ;;  %4395 = vmatpush.bf16.msrb.mxu1 %v6839_v46 }
 0xf1e   :  { %v3216_v61 = vpack.c.bf16 %v3200_v55, %v3184_v54  ;;  %4366 = vmatpush.bf16.msra.mxu3 %v6824_v49  ;;  %v3021_v62 = vpop.f32.mrf.mxu3  ;;  %v6819_v54 = vld [vmem:[%s8686_s8 + $0x600] sm:$0xff] }
 0xf1f   :  { %4408 = vmatpush.bf16.msra.mxu2 %v6848_v53  ;;  %v3022_v1 = vadd.f32 %v3021_v62, %v2843_v43  ;;  %v3063_v25 = vpop.f32.mrf.mxu2  ;;  %4330 = vmatmul.bf16.vlgmr.msra.gmra.mxu0 %v3215_v57  ;;  %v6844_v43 = vld [vmem:[%s8686_s8 + $0x6c8] sm:$0xff]  ;;  %v6873_v53 = vld [vmem:[%s8686_s8 + $0x7b0] sm:$0xff]  ;;  %v6858_v57 = vld [vmem:[%s8686_s8 + $0x738] sm:$0xff] }
 0xf20   :  { %v3064_v5 = vadd.f32 %v3063_v25, %v2846_v47  ;;  %4344 = vmatmul.bf16.vlgmr.msra.gmra.mxu1 %v3216_v61  ;;  %4382 = vmatpush.bf16.msrb.mxu0 %v6830_v50  ;;  %v3089_v7 = vpop.f32.mrf.mxu0 }
 0xf21   :  { %v3198_v11 = vmax.f32 %v3022_v1, 0.0  ;;  %4396 = vmatpush.bf16.msrb.mxu1 %v6838_v59  ;;  %v3103_v12 = vpop.f32.mrf.mxu1  ;;  %v3090_v29 = vadd.f32 %v3089_v7, %v2848_v20  ;;  %v6857_v7 = vld [vmem:[%s8686_s8 + $0x730] sm:$0xff] }
 0xf22   :  { %v3201_v8 = vmax.f32 %v3064_v5, 0.0  ;;  %4367 = vmatpush.bf16.msra.mxu3 %v6823_v0  ;;  %v3104_v3 = vadd.f32 %v3103_v12, %v2849_v24  ;;  %v6864_v0 = vld [vmem:[%s8686_s8 + $0x768] sm:$0xff]  ;;  %v6863_v12 = vld [vmem:[%s8686_s8 + $0x760] sm:$0xff] }
 0xf23   :  { %v3214_v19 = vpack.c.bf16 %v3198_v11, %v3182_v10  ;;  %4409 = vmatpush.bf16.msra.mxu2 %v6847_v4  ;;  %v3187_v42 = vmax.f32 %v3090_v29, 0.0  ;;  %v6872_v4 = vld [vmem:[%s8686_s8 + $0x7a8] sm:$0xff]  ;;  %v6881_v10 = vld [vmem:[%s8686_s8 + $0x7f0] sm:$0xff]  ;;  %v6854_v29 = vld [vmem:[%s8686_s8 + $0x718] sm:$0xff] }
 0xf24   :  { %v3217_v23 = vpack.c.bf16 %v3201_v8, %v3185_v17  ;;  %4383 = vmatpush.bf16.msrb.mxu0 %v6829_v9  ;;  %v3188_v44 = vmax.f32 %v3104_v3, 0.0  ;;  %v6871_v17 = vld [vmem:[%s8686_s8 + $0x7a0] sm:$0xff]  ;;  %v6856_v8 = vld [vmem:[%s8686_s8 + $0x728] sm:$0xff]  ;;  %v6878_v3 = vld [vmem:[%s8686_s8 + $0x7d8] sm:$0xff] }
 0xf25   :  { %4397 = vmatpush.bf16.msrb.mxu1 %v6837_v13  ;;  %4316 = vmatmul.bf16.vlgmr.msrb.gmra.mxu3 %v3214_v19  ;;  %v6862_v19 = vld [vmem:[%s8686_s8 + $0x758] sm:$0xff] }
 0xf26   :  { %4358 = vmatmul.bf16.vlgmr.msrb.gmra.mxu2 %v3217_v23  ;;  %4368 = vmatpush.bf16.msra.mxu3 %v6822_v18  ;;  %v3075_v58 = vpop.f32.mrf.mxu3  ;;  %v6880_v18 = vld [vmem:[%s8686_s8 + $0x7e8] sm:$0xff]  ;;  %v6855_v23 = vld [vmem:[%s8686_s8 + $0x720] sm:$0xff] }
 0xf27   :  { %4410 = vmatpush.bf16.msra.mxu2 %v6846_v21  ;;  %v3117_v30 = vpop.f32.mrf.mxu2  ;;  %v3076_v46 = vadd.f32 %v3075_v58, %v2847_v33  ;;  %v6869_v58 = vld [vmem:[%s8686_s8 + $0x790] sm:$0xff] }
 0xf28   :  { %4384 = vmatpush.bf16.msrb.mxu0 %v6828_v26  ;;  %v3091_v32 = vpop.f32.mrf.mxu0  ;;  %v3118_v49 = vadd.f32 %v3117_v30, %v2850_v14  ;;  %v6879_v26 = vld [vmem:[%s8686_s8 + $0x7e0] sm:$0xff]  ;;  %v2852_v30 = vperm.slane %v8398_v6, 5 }
 0xf29   :  { %4398 = vmatpush.bf16.msrb.mxu1 %v6836_v63  ;;  %v3092_v34 = vadd.f32 %v3091_v32, %v2848_v20  ;;  %v3105_v35 = vpop.f32.mrf.mxu1  ;;  %v3186_v61 = vmax.f32 %v3076_v46, 0.0  ;;  %v6870_v20 = vld [vmem:[%s8686_s8 + $0x798] sm:$0xff]  ;;  %v6861_v63 = vld [vmem:[%s8686_s8 + $0x750] sm:$0xff]  ;;  %v2853_v32 = vperm.slane %v8398_v6, 6  ;;  %v6867_v46 = vld [vmem:[%s8686_s8 + $0x780] sm:$0xff] }
 0xf2a   :  { %v3106_v37 = vadd.f32 %v3105_v35, %v2849_v24  ;;  %4369 = vmatpush.bf16.msra.mxu3 %v6821_v27  ;;  %v3189_v1 = vmax.f32 %v3118_v49, 0.0  ;;  %v6852_v49 = vld [vmem:[%s8686_s8 + $0x708] sm:$0xff] }
 0xf2b   :  { %v3203_v15 = vmax.f32 %v3092_v34, 0.0  ;;  %4411 = vmatpush.bf16.msra.mxu2 %v6845_v31  ;;  %v6868_v34 = vld [vmem:[%s8686_s8 + $0x788] sm:$0xff] }
 0xf2c   :  { %v3204_v45 = vmax.f32 %v3106_v37, 0.0  ;;  %4385 = vmatpush.bf16.msrb.mxu0 %v6827_v38  ;;  %v6860_v38 = vld [vmem:[%s8686_s8 + $0x748] sm:$0xff]  ;;  %v6503_v37 = vld [vmem:[%s8688_s10] sm:$0xf] }
 0xf2d   :  { %v3219_v47 = vpack.c.bf16 %v3203_v15, %v3187_v42  ;;  %4399 = vmatpush.bf16.msrb.mxu1 %v6835_v36  ;;  %v6853_v36 = vld [vmem:[%s8686_s8 + $0x710] sm:$0xff]  ;;  %v6859_v15 = vld [vmem:[%s8686_s8 + $0x740] sm:$0xff] }
 0xf2e   :  { %v3220_v51 = vpack.c.bf16 %v3204_v45, %v3188_v44  ;;  %4370 = vmatpush.bf16.msra.mxu3 %v6820_v41  ;;  %v3077_v52 = vpop.f32.mrf.mxu3 }
 0xf2f   :  { %4412 = vmatpush.bf16.msra.mxu2 %v6844_v43  ;;  %v3078_v55 = vadd.f32 %v3077_v52, %v2847_v33  ;;  %v3119_v50 = vpop.f32.mrf.mxu2  ;;  %4386 = vmatmul.bf16.vlgmr.msrb.gmra.mxu0 %v3219_v47  ;;  %v2851_v43 = vperm.slane %v8398_v6, 4  ;;  %v2854_v47 = vperm.slane %v8398_v6, 7  ;;  %v6885_v6 = vld [vmem:[%s8688_s10 + $0x4] sm:$0xf] }
 0xf30   :  { %4434 = vmatpush.bf16.msra.mxu0 %v6866_v22  ;;  %v3120_v59 = vadd.f32 %v3119_v50, %v2850_v14  ;;  %4400 = vmatmul.bf16.vlgmr.msrb.gmra.mxu1 %v3220_v51  ;;  %v3145_v11 = vpop.f32.mrf.mxu0  ;;  %v6877_v14 = vld [vmem:[%s8686_s8 + $0x7d0] sm:$0xff] }
 0xf31   :  { %4448 = vmatpush.bf16.msra.mxu1 %v6874_v39  ;;  %v3202_v62 = vmax.f32 %v3078_v55, 0.0  ;;  %v3159_v13 = vpop.f32.mrf.mxu1  ;;  %v3146_v22 = vadd.f32 %v3145_v11, %v2852_v30  ;;  %v6886_v39 = vld [vmem:[%s8688_s10 + $0x4] sm:$0xf0] }
 0xf32   :  { %v3205_v25 = vmax.f32 %v3120_v59, 0.0  ;;  %4371 = vmatpush.bf16.msra.mxu3 %v6819_v54  ;;  %v3160_v41 = vadd.f32 %v3159_v13, %v2853_v32  ;;  %v6504_v51 = vor.u32 %v6886_v39, %v6503_v37  ;;  %v6876_v54 = vld [vmem:[%s8686_s8 + $0x7c8] sm:$0xff] }
 0xf33   :  { %v3218_v5 = vpack.c.bf16 %v3202_v62, %v3186_v61  ;;  %4413 = vmatpush.bf16.msra.mxu2 %v6843_v56  ;;  %v3191_v52 = vmax.f32 %v3146_v22, 0.0  ;;  %v6505_v59 = vld [vmem:[%s8688_s10 + $0x8] sm:$0xf0]  ;;  %v6851_v62 = vld [vmem:[%s8686_s8 + $0x700] sm:$0xff] }
 0xf34   :  { %4435 = vmatpush.bf16.msra.mxu0 %v6865_v48  ;;  %v3221_v9 = vpack.c.bf16 %v3205_v25, %v3189_v1  ;;  %v3192_v55 = vmax.f32 %v3160_v41, 0.0  ;;  %v6875_v1 = vld [vmem:[%s8686_s8 + $0x7c0] sm:$0xff] }
 0xf35   :  { %4449 = vmatpush.bf16.msra.mxu1 %v6873_v53  ;;  %4372 = vmatmul.bf16.vlgmr.msra.gmra.mxu3 %v3218_v5 }
 0xf36   :  { %4420 = vmatpush.bf16.msrb.mxu3 %v6858_v57  ;;  %4414 = vmatmul.bf16.vlgmr.msra.gmra.mxu2 %v3221_v9  ;;  %v3131_v21 = vpop.f32.mrf.mxu3 }
 0xf37   :  { %4462 = vmatpush.bf16.msrb.mxu2 %v6882_v60  ;;  %v3173_v24 = vpop.f32.mrf.mxu2  ;;  %v3132_v56 = vadd.f32 %v3131_v21, %v2851_v43 }
 0xf38   :  { %4436 = vmatpush.bf16.msra.mxu0 %v6864_v0  ;;  %v3147_v27 = vpop.f32.mrf.mxu0  ;;  %v3174_v60 = vadd.f32 %v3173_v24, %v2854_v47 }
 0xf39   :  { %4450 = vmatpush.bf16.msra.mxu1 %v6872_v4  ;;  %v3161_v31 = vpop.f32.mrf.mxu1  ;;  %v3148_v33 = vadd.f32 %v3147_v27, %v2852_v30  ;;  %v6508_v4 = vor.u32 %v6885_v6, %v6505_v59  ;;  %v3190_v5 = vmax.f32 %v3132_v56, 0.0 }
 0xf3a   :  { %4421 = vmatpush.bf16.msrb.mxu3 %v6857_v7  ;;  %v3162_v35 = vadd.f32 %v3161_v31, %v2853_v32  ;;  %v3193_v7 = vmax.f32 %v3174_v60, 0.0 }
 0xf3b   :  { %4463 = vmatpush.bf16.msrb.mxu2 %v6881_v10  ;;  %v3207_v44 = vmax.f32 %v3148_v33, 0.0 }
 0xf3c   :  { %4437 = vmatpush.bf16.msra.mxu0 %v6863_v12  ;;  %v3208_v48 = vmax.f32 %v3162_v35, 0.0 }
 0xf3d   :  { %4451 = vmatpush.bf16.msra.mxu1 %v6871_v17  ;;  %v3223_v57 = vpack.c.bf16 %v3207_v44, %v3191_v52 }
 0xf3e   :  { %4422 = vmatpush.bf16.msrb.mxu3 %v6856_v8  ;;  %v3133_v42 = vpop.f32.mrf.mxu3  ;;  %v3224_v61 = vpack.c.bf16 %v3208_v48, %v3192_v55 }
 0xf3f   :  { %4464 = vmatpush.bf16.msrb.mxu2 %v6880_v18  ;;  %v3175_v45 = vpop.f32.mrf.mxu2  ;;  %v3134_v53 = vadd.f32 %v3133_v42, %v2851_v43 }
 0xf40   :  { %4438 = vmatpush.bf16.msra.mxu0 %v6862_v19  ;;  %v3176_v50 = vadd.f32 %v3175_v45, %v2854_v47 }
 0xf41   :  { %4452 = vmatpush.bf16.msra.mxu1 %v6870_v20  ;;  %v3206_v0 = vmax.f32 %v3134_v53, 0.0  ;;  %v8565_v20 = vld [vmem:[%s8680_s2 + $0x8] sm:$0xff] }
 0xf42   :  { %4423 = vmatpush.bf16.msrb.mxu3 %v6855_v23  ;;  %v3209_v25 = vmax.f32 %v3176_v50, 0.0  ;;  %v3483_v21 = vperm.slane %v8565_v20, 4 }
 0xf43   :  { %4465 = vmatpush.bf16.msrb.mxu2 %v6879_v26  ;;  %v3222_v9 = vpack.c.bf16 %v3206_v0, %v3190_v5 }
 0xf44   :  { %4439 = vmatpush.bf16.msra.mxu0 %v6861_v63  ;;  %v3225_v10 = vpack.c.bf16 %v3209_v25, %v3193_v7 }
 0xf45   :  { %4453 = vmatpush.bf16.msra.mxu1 %v6869_v58 }
 0xf46   :  { %4424 = vmatpush.bf16.msrb.mxu3 %v6854_v29 }
 0xf47   :  { %4466 = vmatpush.bf16.msrb.mxu2 %v6878_v3 }
 0xf48   :  { %4440 = vmatpush.bf16.msra.mxu0 %v6860_v38 }
 0xf49   :  { %4454 = vmatpush.bf16.msra.mxu1 %v6868_v34 }
 0xf4a   :  { %4425 = vmatpush.bf16.msrb.mxu3 %v6853_v36 }
 0xf4b   :  { %4467 = vmatpush.bf16.msrb.mxu2 %v6877_v14 }
 0xf4c   :  { %4441 = vmatpush.bf16.msra.mxu0 %v6859_v15 }
 0xf4d   :  { %4455 = vmatpush.bf16.msra.mxu1 %v6867_v46 }
 0xf4e   :  { %4426 = vmatpush.bf16.msrb.mxu3 %v6852_v49 }
 0xf4f   :  { %4468 = vmatpush.bf16.msrb.mxu2 %v6876_v54  ;;  %4442 = vmatmul.bf16.vlgmr.msra.gmra.mxu0 %v3223_v57 }
 0xf50   :  { %4456 = vmatmul.bf16.vlgmr.msra.gmra.mxu1 %v3224_v61 }
 0xf51   :  { %4591 = vmatpush.bf16.msrb.mxu1 %v6504_v51 }
 0xf52   :  { %4427 = vmatpush.bf16.msrb.mxu3 %v6851_v62 }
 0xf53   :  { %4469 = vmatpush.bf16.msrb.mxu2 %v6875_v1 }
 0xf55   :  { %4428 = vmatmul.bf16.vlgmr.msrb.gmra.mxu3 %v3222_v9 }
 0xf56   :  { %4470 = vmatmul.bf16.vlgmr.msrb.gmra.mxu2 %v3225_v10 }
 0xf57   :  { %4605 = vmatpush.bf16.msra.mxu2 %v6508_v4 }
 0xf60   :  { %6509 = vmatmul.msk.bf16.vlgmr.msrb.gmra.mxu1 %vm291_vm7, %v7267_v16 }
 0xf66   :  { %6510 = vmatmul.msk.bf16.vlgmr.msra.gmra.mxu2 %vm291_vm7, %v7267_v16 }
 0xf8c   :  { %v4275_v11 = vpop.f32.mrf.mxu0 }
 0xf8d   :  { %v4289_v13 = vpop.f32.mrf.mxu1 }
 0xf94   :  { %v4277_v8 = vpop.f32.mrf.mxu0 }
 0xf95   :  { %v4291_v19 = vpop.f32.mrf.mxu1 }
 0xf98   :  { %v4261_v12 = vpop.f32.mrf.mxu3 }
 0xf99   :  { %v4303_v17 = vpop.f32.mrf.mxu2  ;;  %v4262_v24 = vadd.f32 %v4261_v12, %v3483_v21 }
 0xf9b   :  { %v4276_v58 = vadd.f32 %v4275_v11, %v4262_v24 }
 0xf9c   :  { %v4331_v26 = vpop.f32.mrf.mxu0 }
 0xf9d   :  { %v4345_v16 = vpop.f32.mrf.mxu1  ;;  %v4290_v29 = vadd.f32 %v4289_v13, %v4276_v58 }
 0xf9f   :  { %v4304_v31 = vadd.f32 %v4303_v17, %v4290_v29 }
 0xfa0   :  { %v4263_v18 = vpop.f32.mrf.mxu3 }
 0xfa1   :  { %v4305_v23 = vpop.f32.mrf.mxu2  ;;  %v4264_v30 = vadd.f32 %v4263_v18, %v3483_v21 }
 0xfa3   :  { %v4278_v3 = vadd.f32 %v4277_v8, %v4264_v30 }
 0xfa4   :  { %v4333_v32 = vpop.f32.mrf.mxu0 }
 0xfa5   :  { %v4347_v34 = vpop.f32.mrf.mxu1  ;;  %v4292_v35 = vadd.f32 %v4291_v19, %v4278_v3 }
 0xfa7   :  { %v4306_v14 = vadd.f32 %v4305_v23, %v4292_v35 }
 0xfa8   :  { %v4317_v63 = vpop.f32.mrf.mxu3 }
 0xfa9   :  { %v4359_v27 = vpop.f32.mrf.mxu2  ;;  %v4318_v33 = vadd.f32 %v4317_v63, %v4304_v31 }
 0xfab   :  { %v4332_v22 = vadd.f32 %v4331_v26, %v4318_v33  ;;  %v6883_v33 = vld [vmem:[%s8687_s9 + $0x4] sm:$0xf] }
 0xfac   :  { %v4387_v41 = vpop.f32.mrf.mxu0 }
 0xfad   :  { %v4346_v37 = vadd.f32 %v4345_v16, %v4332_v22  ;;  %v4401_v15 = vpop.f32.mrf.mxu1 }
 0xfaf   :  { %v4360_v43 = vadd.f32 %v4359_v27, %v4346_v37  ;;  %v6894_v37 = vld [vmem:[%s8689_s11 + $0x38] sm:$0xff] }
 0xfb0   :  { %v4319_v38 = vpop.f32.mrf.mxu3 }
 0xfb1   :  { %v4361_v36 = vpop.f32.mrf.mxu2  ;;  %v4320_v39 = vadd.f32 %v4319_v38, %v4306_v14  ;;  %v6884_v38 = vld [vmem:[%s8687_s9 + $0x4] sm:$0xf0]  ;;  %v6902_v14 = vld [vmem:[%s8689_s11 + $0x78] sm:$0xff] }
 0xfb3   :  { %v4334_v44 = vadd.f32 %v4333_v32, %v4320_v39  ;;  %v6493_v32 = vld [vmem:[%s8687_s9] sm:$0xf] }
 0xfb4   :  { %v4389_v49 = vpop.f32.mrf.mxu0  ;;  %v6494_v35 = vor.u32 %v6884_v38, %v6493_v32  ;;  %v4650_v32 = vperm.slane %v8565_v20, 7 }
 0xfb5   :  { %v4348_v47 = vadd.f32 %v4347_v34, %v4334_v44  ;;  %v4403_v53 = vpop.f32.mrf.mxu1 }
 0xfb6   :  { %4551 = vmatpush.bf16.msra.mxu3 %v6494_v35 }
 0xfb7   :  { %v4362_v52 = vadd.f32 %v4361_v36, %v4348_v47  ;;  %v6495_v36 = vld [vmem:[%s8687_s9 + $0x8] sm:$0xf0]  ;;  %s4908_s9 = sshll.u32 %s8690_s12, 4  ;;  %s4909_s9 = int_to_ptr.hbm [resolvable:$true] %s4908_s9 }
 0xfb8   :  { %v4373_v42 = vpop.f32.mrf.mxu3  ;;  %v6498_v22 = vor.u32 %v6883_v33, %v6495_v36 }
 0xfb9   :  { %v4415_v45 = vpop.f32.mrf.mxu2  ;;  %v4374_v46 = vadd.f32 %v4373_v42, %v4360_v43  ;;  %v6901_v42 = vld [vmem:[%s8689_s11 + $0x70] sm:$0xff] }
 0xfba   :  { %4565 = vmatpush.bf16.msrb.mxu0 %v6498_v22  ;;  %4747 = vmatpush.bf16.msrb.mxu3 %v6894_v37 }
 0xfbb   :  { %v4388_v48 = vadd.f32 %v4387_v41, %v4374_v46  ;;  %v6900_v46 = vld [vmem:[%s8689_s11 + $0x68] sm:$0xff] }
 0xfbd   :  { %v4402_v54 = vadd.f32 %v4401_v15, %v4388_v48  ;;  %v6893_v15 = vld [vmem:[%s8689_s11 + $0x30] sm:$0xff] }
 0xfbe   :  { %4761 = vmatpush.bf16.msra.mxu0 %v6902_v14  ;;  %4748 = vmatpush.bf16.msrb.mxu3 %v6893_v15 }
 0xfbf   :  { %v4416_v56 = vadd.f32 %v4415_v45, %v4402_v54 }
 0xfc0   :  { %v4375_v51 = vpop.f32.mrf.mxu3 }
 0xfc1   :  { %v4376_v55 = vadd.f32 %v4375_v51, %v4362_v52  ;;  %v4417_v50 = vpop.f32.mrf.mxu2 }
 0xfc2   :  { %4762 = vmatpush.bf16.msra.mxu0 %v6901_v42 }
 0xfc3   :  { %v4390_v57 = vadd.f32 %v4389_v49, %v4376_v55  ;;  %v6899_v49 = vld [vmem:[%s8689_s11 + $0x60] sm:$0xff]  ;;  %v6898_v55 = vld [vmem:[%s8689_s11 + $0x58] sm:$0xff] }
 0xfc5   :  { %v4404_v62 = vadd.f32 %v4403_v53, %v4390_v57 }
 0xfc6   :  { %4763 = vmatpush.bf16.msra.mxu0 %v6900_v46 }
 0xfc7   :  { %v4418_v4 = vadd.f32 %v4417_v50, %v4404_v62 }
 0xfca   :  { %4764 = vmatpush.bf16.msra.mxu0 %v6899_v49 }
 0xfcc   :  { %v4443_v6 = vpop.f32.mrf.mxu0 }
 0xfcd   :  { %v4457_v61 = vpop.f32.mrf.mxu1 }
 0xfce   :  { %4765 = vmatpush.bf16.msra.mxu0 %v6898_v55 }
 0xfd4   :  { %v4445_v11 = vpop.f32.mrf.mxu0 }
 0xfd5   :  { %v4459_v17 = vpop.f32.mrf.mxu1 }
 0xfd8   :  { %v4429_v59 = vpop.f32.mrf.mxu3 }
 0xfd9   :  { %v4430_v60 = vadd.f32 %v4429_v59, %v4416_v56  ;;  %v4471_v1 = vpop.f32.mrf.mxu2  ;;  %v4522_v59 = vperm.slane %v8565_v20, 5 }
 0xfdb   :  { %v4444_v0 = vadd.f32 %v4443_v6, %v4430_v60 }
 0xfdd   :  { %v4458_v25 = vadd.f32 %v4457_v61, %v4444_v0  ;;  %v4525_v0 = vperm.slane %v8565_v20, 6 }
 0xfdf   :  { %v4472_v5 = vadd.f32 %v4471_v1, %v4458_v25 }
 0xfe0   :  { %v4431_v7 = vpop.f32.mrf.mxu3 }
 0xfe1   :  { %v4432_v9 = vadd.f32 %v4431_v7, %v4418_v4  ;;  %v4476_v10 = vadd.f32 %v4472_v5, %v8063_v28  ;;  %v4473_v18 = vpop.f32.mrf.mxu2 }
 0xfe3   :  { %v4446_v12 = vadd.f32 %v4445_v11, %v4432_v9  ;;  %v4478_v13 = vsel %vm291_vm7, %v4476_v10, 0.0  ;;  %v6897_v11 = vld [vmem:[%s8689_s11 + $0x50] sm:$0xff] }
 0xfe4   :  { %4479 = vadd.xlane.f32.xlu1 %v4478_v13  ;;  %4766 = vmatpush.bf16.msra.mxu0 %v6897_v11  ;;  %v6896_v13 = vld [vmem:[%s8689_s11 + $0x48] sm:$0xff] }
 0xfe5   :  { %v4460_v8 = vadd.f32 %v4459_v17, %v4446_v12  ;;  %v6890_v12 = vld [vmem:[%s8689_s11 + $0x18] sm:$0xff]  ;;  %v6889_v17 = vld [vmem:[%s8689_s11 + $0x10] sm:$0xff] }
 0xfe7   :  { %v4474_v19 = vadd.f32 %v4473_v18, %v4460_v8  ;;  %v6895_v8 = vld [vmem:[%s8689_s11 + $0x40] sm:$0xff]  ;;  %v6888_v18 = vld [vmem:[%s8689_s11 + $0x8] sm:$0xff] }
 0xfe8   :  { %4767 = vmatpush.bf16.msra.mxu0 %v6896_v13 }
 0xfe9   :  { %v4477_v21 = vadd.f32 %v4474_v19, %v8065_v2  ;;  %v6887_v19 = vld [vmem:[%s8689_s11] sm:$0xff] }
 0xfeb   :  { %v4481_v23 = vsel %vm291_vm7, %v4477_v21, 0.0 }
 0xfec   :  { %4482 = vadd.xlane.f32.xlu2 %v4481_v23  ;;  %4768 = vmatpush.bf16.msra.mxu0 %v6895_v8 }
0x1057   :  { %v4480_v24 = vpop.xlane.xlu1 %4479 }
0x1058   :  { %v4484_v26 = vmul.f32 %v4480_v24, %v7248_v40  ;;  %v4593_v24 = vpop.f32.mrf.mxu1 }
0x105a   :  { %v4486_v63 = vsub.f32 %v4476_v10, %v4484_v26  ;;  %v6891_v10 = vld [vmem:[%s8689_s11 + $0x20] sm:$0xff] }
0x105c   :  { %v4488_v58 = vmul.f32 %v4486_v63, %v4486_v63 }
0x105e   :  { %v4490_v28 = vsel %vm291_vm7, %v4488_v58, 0.0 }
0x105f   :  { %v4483_v16 = vpop.xlane.xlu2 %4482  ;;  %4491 = vadd.xlane.f32.xlu0 %v4490_v28 }
0x1060   :  { %v4485_v27 = vmul.f32 %v4483_v16, %v7248_v40 }
0x1062   :  { %v4487_v29 = vsub.f32 %v4477_v21, %v4485_v27  ;;  %v4607_v21 = vpop.f32.mrf.mxu2 }
0x1064   :  { %v4489_v30 = vmul.f32 %v4487_v29, %v4487_v29 }
0x1066   :  { %v4493_v31 = vsel %vm291_vm7, %v4489_v30, 0.0 }
0x1067   :  { %4494 = vadd.xlane.f32.xlu1 %v4493_v31 }
0x10d2   :  { %v4492_v2 = vpop.xlane.xlu0 %4491 }
0x10d3   :  { %v4496_v3 = vmul.f32 %v4492_v2, %v7248_v40 }
0x10d5   :  { %v4498_v34 = vadd.f32 1e-05, %v4496_v3 }
0x10d7   :  { %6976 = vrsqrt.f32 %v4498_v34  ;;  %vm4506_vm4 = vweird.f32 %v4498_v34 }
0x10da   :  { %v4495_v39 = vpop.xlane.xlu1 %4494 }
0x10db   :  { %v4497_v41 = vmul.f32 %v4495_v39, %v7248_v40  ;;  %v6892_v40 = vld [vmem:[%s8689_s11 + $0x28] sm:$0xff]  ;;  %s7024_s11 = smov [#allocation2]  }
0x10dc   :  { %4749 = vmatpush.bf16.msrb.mxu3 %v6892_v40  ;;  %s4906_s21 = sshll.u32 %s7024_s11, 4  ;;  %s4907_s21 = int_to_ptr.vmem [resolvable:$true] %s4906_s21 }
0x10dd   :  { %v6977_v43 = vpop.eup %6976  ;;  %v4499_v44 = vadd.f32 1e-05, %v4497_v41 }
0x10de   :  { %v4501_v45 = vmul.f32 %v6977_v43, %v4498_v34  ;;  %vm4507_vm3 = vweird.f32 %v6977_v43 }
0x10df   :  { %6978 = vrsqrt.f32 %v4499_v44  ;;  %vm4508_vm5 = vmor %vm4506_vm4, %vm4507_vm3  ;;  %vm4516_vm8 = vweird.f32 %v4499_v44 }
0x10e0   :  { %v4502_v47 = vmul.f32 %v6977_v43, %v4501_v45  ;;  %4750 = vmatpush.bf16.msrb.mxu3 %v6891_v10 }
0x10e2   :  { %v4503_v48 = vmul.f32 0.5, %v4502_v47 }
0x10e4   :  { %v4504_v51 = vsub.f32 1.5, %v4503_v48  ;;  %4751 = vmatpush.bf16.msrb.mxu3 %v6890_v12 }
0x10e5   :  { %v6979_v52 = vpop.eup %6978 }
0x10e6   :  { %v4505_v53 = vmul.f32 %v6977_v43, %v4504_v51  ;;  %v4511_v54 = vmul.f32 %v6979_v52, %v4499_v44  ;;  %vm4517_vm6 = vweird.f32 %v6979_v52 }
0x10e7   :  { %vm4518_vm9 = vmor %vm4516_vm8, %vm4517_vm6 }
0x10e8   :  { %v4512_v50 = vmul.f32 %v6979_v52, %v4511_v54  ;;  %v4509_v56 = vsel %vm4508_vm5, %v6977_v43, %v4505_v53  ;;  %4752 = vmatpush.bf16.msrb.mxu3 %v6889_v17 }
0x10e9   :  { %v4520_v60 = vmul.f32 %v4509_v56, %v4486_v63  ;;  %v4609_v63 = vpop.f32.mrf.mxu2 }
0x10ea   :  { %v4513_v57 = vmul.f32 0.5, %v4512_v50 }
0x10eb   :  { %v4523_v1 = vmul.f32 %v4522_v59, %v4520_v60 }
0x10ec   :  { %v4514_v6 = vsub.f32 1.5, %v4513_v57  ;;  %4753 = vmatpush.bf16.msrb.mxu3 %v6888_v18 }
0x10ed   :  { %v4526_v5 = vadd.f32 %v4525_v0, %v4523_v1 }
0x10ee   :  { %v4515_v61 = vmul.f32 %v6979_v52, %v4514_v6 }
0x10f0   :  { %v4519_v62 = vsel %vm4518_vm9, %v6979_v52, %v4515_v61  ;;  %4754 = vmatpush.bf16.msrb.mxu3 %v6887_v19 }
0x10f1   :  { %v4521_v25 = vmul.f32 %v4519_v62, %v4487_v29  ;;  %v4595_v29 = vpop.f32.mrf.mxu1 }
0x10f3   :  { %v4524_v4 = vmul.f32 %v4522_v59, %v4521_v25 }
0x10f5   :  { %v4527_v7 = vadd.f32 %v4525_v0, %v4524_v4 }
0x10f7   :  { %v4528_v9 = vpack.c.bf16 %v4527_v7, %v4526_v5 }
0x10f9   :  { %6499 = vmatmul.msk.bf16.vlgmr.msra.gmra.mxu3 %vm291_vm7, %v4528_v9  ;;  %6500 = vmatmul.msk.bf16.vlgmr.msrb.gmra.mxu0 %vm291_vm7, %v4528_v9 }
0x1176   :  { %v4567_v23 = vpop.f32.mrf.mxu0 }
0x1177   :  { %v4613_v28 = vmul.f32 %v4607_v21, %v4567_v23 }
0x117c   :  { %v4553_v26 = vpop.f32.mrf.mxu3 }
0x117d   :  { %v4612_v31 = vmul.f32 %v4593_v24, %v4553_v26 }
0x117e   :  { %v4569_v58 = vpop.f32.mrf.mxu0 }
0x117f   :  { %v4615_v16 = vmul.f32 %v4609_v63, %v4569_v58 }
0x1181   :  { %v4617_v27 = vpack.c.bf16 %v4615_v16, %v4613_v28 }
0x1183   :  { %4769 = vmatmul.bf16.vlgmr.msra.gmra.mxu0 %v4617_v27 }
0x1184   :  { %v4555_v30 = vpop.f32.mrf.mxu3 }
0x1185   :  { %v4614_v2 = vmul.f32 %v4595_v29, %v4555_v30 }
0x1187   :  { %v4616_v3 = vpack.c.bf16 %v4614_v2, %v4612_v31  ;;  %v7023_v31 = vmov 1.0  }
0x1189   :  { %4755 = vmatmul.bf16.vlgmr.msrb.gmra.mxu3 %v4616_v3 }
0x1200   :  { %v4770_v38 = vpop.f32.mrf.mxu0 }
0x1208   :  { %v4772_v41 = vpop.f32.mrf.mxu0 }
0x120c   :  { %v4756_v33 = vpop.f32.mrf.mxu3 }
0x120d   :  { %v4757_v34 = vadd.f32 %v4756_v33, %v4650_v32 }
0x120f   :  { %v8643_v35 = vadd.f32 %v4770_v38, %v4757_v34 }
0x1211   :  { %v8646_v36 = vmul.f32 0.70710677, %v8643_v35  ;;  %v4775_v33 = vmul.f32 0.5, %v8643_v35 }
0x1213   :  { %v4783_v22 = vand.u32 2147483647, %v8646_v36  ;;  %vm4779_vm1 = vcmp.lt.f32.partialorder %v8646_v36, 0.0 }
0x1214   :  { %v4758_v14 = vpop.f32.mrf.mxu3  ;;  %v4781_v2 = vsel %vm4779_vm1, -1.0, %v7023_v31 }
0x1215   :  { %v4785_v37 = vmul.f32 0.3275911, %v4783_v22  ;;  %v4759_v39 = vadd.f32 %v4758_v14, %v4650_v32  ;;  %v4837_v56 = vsub.f32 0.0, %v4783_v22 }
0x1217   :  { %v4787_v42 = vadd.f32 1.0, %v4785_v37  ;;  %v8649_v15 = vadd.f32 %v4772_v41, %v4759_v39  ;;  %v4839_v62 = vmul.f32 %v4837_v56, %v4783_v22 }
0x1219   :  { %6980 = vrcp.f32 %v4787_v42  ;;  %v8652_v20 = vmul.f32 0.70710677, %v8649_v15  ;;  %v4800_v48 = vand.u32 2147483648, %v4787_v42  ;;  %v4798_v51 = vand.u32 2147483647, %v4787_v42 }
0x121a   :  { %vm4794_vm10 = vweird.f32 %v4787_v42  ;;  %v4841_v9 = vmul.f32 1.442695, %v4839_v62 }
0x121b   :  { %v4784_v43 = vand.u32 2147483647, %v8652_v20  ;;  %v4801_v53 = vor.u32 1.1754944e-38, %v4800_v48  ;;  %vm4799_vm12 = vcmp.eq.f32.partialorder %v4798_v51, 8.507059e+37  ;;  %vm4780_vm3 = vcmp.lt.f32.partialorder %v8652_v20, 0.0 }
0x121c   :  { %v4776_v20 = vmul.f32 0.5, %v8649_v15 }
0x121d   :  { %v4786_v44 = vmul.f32 0.3275911, %v4784_v43  ;;  %v4838_v13 = vsub.f32 0.0, %v4784_v43 }
0x121f   :  { %v6981_v45 = vpop.eup %6980  ;;  %v4788_v40 = vadd.f32 1.0, %v4786_v44  ;;  %v4840_v21 = vmul.f32 %v4838_v13, %v4784_v43 }
0x1220   :  { %v4790_v46 = vmul.f32 %v6981_v45, %v4787_v42  ;;  %vm4795_vm7 = vweird.f32 %v6981_v45 }
0x1221   :  { %6982 = vrcp.f32 %v4788_v40  ;;  %vm4796_vm11 = vmor %vm4794_vm10, %vm4795_vm7  ;;  %v4815_v61 = vand.u32 2147483648, %v4788_v40  ;;  %v4813_v1 = vand.u32 2147483647, %v4788_v40  ;;  %vm4809_vm14 = vweird.f32 %v4788_v40 }
0x1222   :  { %v4791_v47 = vsub.f32 1.0, %v4790_v46  ;;  %6984 = vpow2.f32 %v4841_v9  ;;  %v4843_v58 = vmul.f32 1.442695, %v4840_v21  ;;  %v4782_v46 = vsel %vm4780_vm3, -1.0, %v7023_v31 }
0x1223   :  { %v4816_v7 = vor.u32 1.1754944e-38, %v4815_v61  ;;  %vm4814_vm0 = vcmp.eq.f32.partialorder %v4813_v1, 8.507059e+37 }
0x1224   :  { %v4792_v49 = vmul.f32 %v6981_v45, %v4791_v47  ;;  %6986 = vpow2.f32 %v4843_v58 }
0x1226   :  { %v4793_v52 = vadd.f32 %v6981_v45, %v4792_v49 }
0x1227   :  { %v6983_v54 = vpop.eup %6982 }
0x1228   :  { %v4797_v55 = vsel %vm4796_vm11, %v6981_v45, %v4793_v52  ;;  %v4805_v57 = vmul.f32 %v6983_v54, %v4788_v40  ;;  %vm4810_vm13 = vweird.f32 %v6983_v54  ;;  %v6985_v28 = vpop.eup %6984 }
0x1229   :  { %v4802_v50 = vsel %vm4799_vm12, %v4801_v53, %v4797_v55  ;;  %vm4811_vm15 = vmor %vm4809_vm14, %vm4810_vm13 }
0x122a   :  { %v4819_v6 = vmul.f32 1.0614054, %v4802_v50  ;;  %v4806_v59 = vsub.f32 1.0, %v4805_v57  ;;  %v6987_v14 = vpop.eup %6986 }
0x122c   :  { %v4821_v60 = vadd.f32 -1.4531521, %v4819_v6  ;;  %v4807_v0 = vmul.f32 %v6983_v54, %v4806_v59 }
0x122e   :  { %v4823_v25 = vmul.f32 %v4821_v60, %v4802_v50  ;;  %v4808_v4 = vadd.f32 %v6983_v54, %v4807_v0 }
0x1230   :  { %v4825_v5 = vadd.f32 1.4214138, %v4823_v25  ;;  %v4812_v10 = vsel %vm4811_vm15, %v6983_v54, %v4808_v4 }
0x1231   :  { %v4817_v12 = vsel %vm4814_vm0, %v4816_v7, %v4812_v10 }
0x1232   :  { %v4827_v11 = vmul.f32 %v4825_v5, %v4802_v50  ;;  %v4820_v17 = vmul.f32 1.0614054, %v4817_v12 }
0x1234   :  { %v4829_v8 = vadd.f32 -0.28449672, %v4827_v11  ;;  %v4822_v18 = vadd.f32 -1.4531521, %v4820_v17 }
0x1236   :  { %v4831_v19 = vmul.f32 %v4829_v8, %v4802_v50  ;;  %v4824_v23 = vmul.f32 %v4822_v18, %v4817_v12 }
0x1238   :  { %v4833_v24 = vadd.f32 0.2548296, %v4831_v19  ;;  %v4826_v26 = vadd.f32 1.4214138, %v4824_v23 }
0x123a   :  { %v4835_v63 = vmul.f32 %v4833_v24, %v4802_v50  ;;  %v4828_v16 = vmul.f32 %v4826_v26, %v4817_v12 }
0x123c   :  { %v4845_v27 = vmul.f32 %v6985_v28, %v4835_v63  ;;  %v4830_v29 = vadd.f32 -0.28449672, %v4828_v16 }
0x123e   :  { %v4847_v30 = vsub.f32 1.0, %v4845_v27  ;;  %v4832_v3 = vmul.f32 %v4830_v29, %v4817_v12 }
0x1240   :  { %v4849_v32 = vmul.f32 %v4847_v30, %v4781_v2  ;;  %v4834_v38 = vadd.f32 0.2548296, %v4832_v3 }
0x1242   :  { %v4851_v34 = vadd.f32 1.0, %v4849_v32  ;;  %v4836_v22 = vmul.f32 %v4834_v38, %v4817_v12 }
0x1244   :  { %v4853_v37 = vmul.f32 %v4851_v34, %v4775_v33  ;;  %v4846_v39 = vmul.f32 %v6987_v14, %v4836_v22 }
0x1246   :  { %v4856_v36 = vrot.slane %v4853_v37, 1  ;;  %v4857_v41 = vrot.slane %v4853_v37, 2  ;;  %v4858_v42 = vrot.slane %v4853_v37, 3  ;;  %4871 = vst.msk [vmem:[#allocation2] sm:$0x1] %vm4870_vm2, %v4853_v37  ;;  %v4859_v43 = vrot.slane %v4853_v37, 4 }
0x1247   :  { %v4848_v44 = vsub.f32 1.0, %v4846_v39  ;;  %v4860_v45 = vrot.slane %v4853_v37, 5  ;;  %v4861_v35 = vrot.slane %v4853_v37, 6  ;;  %v4862_v47 = vrot.slane %v4853_v37, 7 }
0x1248   :  { %4872 = vst.msk [vmem:[#allocation2 + $0x2] sm:$0x1] %vm4870_vm2, %v4856_v36 }
0x1249   :  { %4873 = vst.msk [vmem:[#allocation2 + $0x4] sm:$0x1] %vm4870_vm2, %v4857_v41  ;;  %v4850_v40 = vmul.f32 %v4848_v44, %v4782_v46 }
0x124a   :  { %4874 = vst.msk [vmem:[#allocation2 + $0x6] sm:$0x1] %vm4870_vm2, %v4858_v42 }
0x124b   :  { %4875 = vst.msk [vmem:[#allocation2 + $0x8] sm:$0x1] %vm4870_vm2, %v4859_v43  ;;  %v4852_v48 = vadd.f32 1.0, %v4850_v40 }
0x124c   :  { %4876 = vst.msk [vmem:[#allocation2 + $0xa] sm:$0x1] %vm4870_vm2, %v4860_v45 }
0x124d   :  { %4877 = vst.msk [vmem:[#allocation2 + $0xc] sm:$0x1] %vm4870_vm2, %v4861_v35  ;;  %v4854_v49 = vmul.f32 %v4852_v48, %v4776_v20 }
0x124e   :  { %4878 = vst.msk [vmem:[#allocation2 + $0xe] sm:$0x1] %vm4870_vm2, %v4862_v47 }
0x124f   :  { %v4880_v51 = vrot.slane %v4854_v49, 1  ;;  %v4881_v52 = vrot.slane %v4854_v49, 2  ;;  %v4882_v53 = vrot.slane %v4854_v49, 3  ;;  %4894 = vst.msk [vmem:[#allocation2 + $0x1] sm:$0x1] %vm4870_vm2, %v4854_v49  ;;  %v4883_v54 = vrot.slane %v4854_v49, 4 }
0x1250   :  { %v4884_v55 = vrot.slane %v4854_v49, 5  ;;  %v4885_v15 = vrot.slane %v4854_v49, 6  ;;  %v4886_v50 = vrot.slane %v4854_v49, 7 }
0x1251   :  { %4895 = vst.msk [vmem:[#allocation2 + $0x3] sm:$0x1] %vm4870_vm2, %v4880_v51 }
0x1252   :  { %4896 = vst.msk [vmem:[#allocation2 + $0x5] sm:$0x1] %vm4870_vm2, %v4881_v52 }
0x1253   :  { %4897 = vst.msk [vmem:[#allocation2 + $0x7] sm:$0x1] %vm4870_vm2, %v4882_v53 }
0x1254   :  { %4898 = vst.msk [vmem:[#allocation2 + $0x9] sm:$0x1] %vm4870_vm2, %v4883_v54 }
0x1255   :  { %4899 = vst.msk [vmem:[#allocation2 + $0xb] sm:$0x1] %vm4870_vm2, %v4884_v55 }
0x1256   :  { %4900 = vst.msk [vmem:[#allocation2 + $0xd] sm:$0x1] %vm4870_vm2, %v4885_v15 }
0x1257   :  { %4901 = vst.msk [vmem:[#allocation2 + $0xf] sm:$0x1] %vm4870_vm2, %v4886_v50 }
0x1258   :  { %4914 = dma.vmem_to_hbm [thread:$0]  %s4907_s21, 256, %s4909_s9, [#allocation3], %s7025_s16, %s7025_s16, %s7026_s17  }
0x1259   :  { %7014 = dma.done.wait [#allocation3], 256  }
0x125a   :  { %7015 = vsyncadd [#allocation3], 4294967040 }
0x125b   :  { %4919 = vsyncpa [#allocation3], 1 }

</bundles_post_ra>
